<compile_context>
chip_gen: v6e
topology: v6e:2x2x1
jax: 0.10.0
libtpu: 0.0.40
codegen_flags: <defaults>
</compile_context>

<pallas_src>
import math

import jax
import jax.numpy as jnp
from jax import lax
from jax.experimental import pallas as pl
from jax.experimental.pallas import tpu as pltpu


def transformer_block_kernel(x_ref, wqkv_ref, gamma_ref, beta_ref,
                             w1_ref, w2_ref, o_ref, attn_ref):
    Bb, S, C = x_ref.shape
    H = w1_ref.shape[1]
    inv_sqrt_s = 1.0 / math.sqrt(S)

    # ---- fused QKV projection: one (Bb*S, C) @ (C, 3C) bf16 matmul, f32 accumulate.
    #      Inputs arrive f32 and are cast on-chip (no wrapper-side cast / extra HBM copy).
    x2d = x_ref[...].reshape(Bb * S, C).astype(jnp.bfloat16)
    wqkv = wqkv_ref[...].astype(jnp.bfloat16)
    qkv = jnp.dot(x2d, wqkv, preferred_element_type=jnp.float32)     # (Bb*S, 3C) f32

    # Fold the 1/sqrt(S) attention scale into q (bb*S*C mults, not bb*C*C).
    q_all = (qkv[:, 0 * C:1 * C] * inv_sqrt_s).astype(jnp.bfloat16)  # (Bb*S, C)
    k_all = qkv[:, 1 * C:2 * C].astype(jnp.bfloat16)
    v_all = qkv[:, 2 * C:3 * C].astype(jnp.bfloat16)

    # ---- per-batch channel-channel attention; each result goes straight into
    #      the (Bb*S, C) f32 VMEM scratch slab (no concatenate, bounded liveness).
    for b in range(Bb):
        rows = slice(b * S, (b + 1) * S)
        q_b, k_b, v_b = q_all[rows], k_all[rows], v_all[rows]        # (S, C) bf16

        # score[i, j] = sum_s q[s, i] * k[s, j]                      -> (C, C) f32
        score = lax.dot_general(q_b, k_b, (((0,), (0,)), ((), ())),
                                preferred_element_type=jnp.float32)

        # softmax over last dim; kept in f32 (v5e has no bf16 VPU/EUP path).
        # Reciprocal issues on the otherwise-idle EUP slot.
        score = score - jnp.max(score, axis=-1, keepdims=True)
        p = jnp.exp(score)
        p = p * pl.reciprocal(jnp.sum(p, axis=-1, keepdims=True), approx=True)

        # attn[s, i] = sum_j v[s, j] * p[i, j]                       -> (S, C) f32
        attn_ref[rows, :] = lax.dot_general(
            v_b, p.astype(jnp.bfloat16), (((1,), (1,)), ((), ())),
            preferred_element_type=jnp.float32)

    attn = attn_ref[...]                                             # (Bb*S, C) f32

    # ---- FeedForward: LayerNorm (two-pass stats, f32) -> Linear -> GELU(erf) -> Linear
    mu = jnp.mean(attn, axis=-1, keepdims=True)
    xc = attn - mu
    var = jnp.mean(xc * xc, axis=-1, keepdims=True)
    xn = xc * lax.rsqrt(var + 1e-5)
    xn = xn * gamma_ref[...] + beta_ref[...]                         # (1, C) broadcast, f32

    h = jnp.dot(xn.astype(jnp.bfloat16), w1_ref[...].astype(jnp.bfloat16),
                preferred_element_type=jnp.float32)                  # (Bb*S, H)
    h = 0.5 * h * (1.0 + lax.erf(h * (1.0 / math.sqrt(2.0))))        # exact GELU (erf), as nn.GELU()
    ff = jnp.dot(h.astype(jnp.bfloat16), w2_ref[...].astype(jnp.bfloat16),
                 preferred_element_type=jnp.float32)                 # (Bb*S, C)

    # residual is on the attention output (matches the PyTorch module: x + FF(x) with x = attn)
    o_ref[...] = (attn + ff).reshape(Bb, S, C).astype(o_ref.dtype)


def _pick_bb(B, S):
    """Per-step batch: fill the MXU M dimension (bb*S) while preferring >=2
    grid steps so v7x's two TensorCores both get work; otherwise one big step
    (ideal on single-TC v5e/v6e)."""
    for target_m in (256, 128):          # v6e/v7x 256-tall MXU, v5e 128-tall
        bb = max(1, pl.cdiv(target_m, S))
        if B >= 2 * bb:
            return bb
    return B


def transformer_block(x, w_qkv, gamma, beta, w1, w2, *, out_dtype=jnp.float32):
    """x: (B,S,C) f32; w_qkv: (C,3C); gamma/beta: (C,); w1: (C,H); w2: (H,C)."""
    B, S, C = x.shape
    H = w1.shape[1]
    assert w_qkv.shape == (C, 3 * C) and w1.shape == (C, H) and w2.shape == (H, C)

    bb = _pick_bb(B, S)
    grid_b = pl.cdiv(B, bb)
    B_pad = grid_b * bb
    if B_pad != B:
        # pad awkward batch sizes instead of collapsing to bb=1 (padded rows are
        # computed and sliced away; all padded-row math stays finite).
        x = jnp.pad(x, ((0, B_pad - B), (0, 0), (0, 0)))

    gamma2d = gamma.reshape(1, C).astype(jnp.float32)
    beta2d = beta.reshape(1, C).astype(jnp.float32)

    # All inputs stay f32 in HBM; the kernel casts to bf16 on-chip right before
    # the MXU.  Weight / activation footprint here is KB-scale, so the default
    # scoped-VMEM limit is ample on every generation (incl. v7x's 64 MiB/TC);
    # for much larger C, single-buffer the weights or tile 3C/H instead.
    out = pl.pallas_call(
        transformer_block_kernel,
        out_shape=jax.ShapeDtypeStruct((B_pad, S, C), out_dtype),
        grid_spec=pltpu.PrefetchScalarGridSpec(
            num_scalar_prefetch=0,
            grid=(grid_b,),
            in_specs=[
                pl.BlockSpec((bb, S, C), lambda b: (b, 0, 0)),      # x block
                # constant-index weight blocks: DMA'd once, reused across steps
                pl.BlockSpec((C, 3 * C), lambda b: (0, 0)),         # packed qkv weight
                pl.BlockSpec((1, C), lambda b: (0, 0)),             # LayerNorm gamma
                pl.BlockSpec((1, C), lambda b: (0, 0)),             # LayerNorm beta
                pl.BlockSpec((C, H), lambda b: (0, 0)),             # FFN w1
                pl.BlockSpec((H, C), lambda b: (0, 0)),             # FFN w2
            ],
            out_specs=pl.BlockSpec((bb, S, C), lambda b: (b, 0, 0)),
            scratch_shapes=[pltpu.VMEM((bb * S, C), jnp.float32)],  # attn slab
        ),
        compiler_params=pltpu.CompilerParams(
            # independent batch blocks -> megacore sharding on v7x when grid >= 2
            dimension_semantics=("parallel",),
        ),
    )(x.astype(jnp.float32), w_qkv.astype(jnp.float32), gamma2d, beta2d,
      w1.astype(jnp.float32), w2.astype(jnp.float32))

    return out[:B] if B_pad != B else out


def transformer_block_ref(x, w_qkv, gamma, beta, w1, w2):
    """Pure-JAX reference of the PyTorch module forward (f32)."""
    B, S, C = x.shape
    qkv = jnp.einsum('bsc,cd->bsd', x, w_qkv)
    q, k, v = qkv[..., :C], qkv[..., C:2 * C], qkv[..., 2 * C:]
    score = jnp.einsum('bsi,bsj->bij', q, k) / math.sqrt(S)
    p = jax.nn.softmax(score, axis=-1)
    attn = jnp.einsum('bij,bsj->bsi', p, v)
    mu = attn.mean(-1, keepdims=True)
    var = ((attn - mu) ** 2).mean(-1, keepdims=True)
    xn = (attn - mu) / jnp.sqrt(var + 1e-5) * gamma + beta
    h = jnp.einsum('bsc,ch->bsh', xn, w1)
    h = 0.5 * h * (1.0 + jax.scipy.special.erf(h / math.sqrt(2.0)))
    ff = jnp.einsum('bsh,hc->bsc', h, w2)
    return attn + ff


if __name__ == "__main__":
    # Small shapes; C=128 keeps all blocks lane-dense (unmasked vst on the output).
    # B=16, S=16 -> bb=8, grid=2: bb*S=128 fills the MXU and both v7x TCs get a step.
    B, S, C = 16, 16, 128
    H = C // 4   # FeedForward default: hidden_channels = in_channels // 4

    key = jax.random.PRNGKey(0)
    kx, kqkv, kw1, kw2 = jax.random.split(key, 4)

    x = jax.random.normal(kx, (B, S, C), dtype=jnp.float32)
    # nn.Linear(C, 3C, bias=False): y = x @ W^T; store W^T directly as (C, 3C)
    w_qkv = jax.random.normal(kqkv, (C, 3 * C), dtype=jnp.float32) * (1.0 / math.sqrt(C))
    gamma = jnp.ones((C,), dtype=jnp.float32)    # LayerNorm default init
    beta = jnp.zeros((C,), dtype=jnp.float32)
    w1 = jax.random.normal(kw1, (C, H), dtype=jnp.float32) * (1.0 / math.sqrt(C))
    w2 = jax.random.normal(kw2, (H, C), dtype=jnp.float32) * (1.0 / math.sqrt(H))

    out = transformer_block(x, w_qkv, gamma, beta, w1, w2)
    jax.block_until_ready(out)
    assert out.shape == (B, S, C) and out.dtype == jnp.float32
    assert bool(jnp.all(jnp.isfinite(out)))

    # Loose sanity check vs. pure-JAX reference (bf16 MXU inputs => relaxed bound).
    ref = transformer_block_ref(x, w_qkv, gamma, beta, w1, w2)
    err = float(jnp.max(jnp.abs(out - ref)))
    assert err < 0.5, f"max abs error vs reference too large: {err}"

    print("KERNEL_OK")
</pallas_src>

<mosaic_0001>
module attributes {stable_mosaic.version = 11 : i64} {
  func.func @transformer_block_kernel(%arg0: i32, %arg1: memref<8x16x128xf32, #tpu.memory_space<vmem>>, %arg2: memref<128x384xf32, #tpu.memory_space<vmem>>, %arg3: memref<1x128xf32, #tpu.memory_space<vmem>>, %arg4: memref<1x128xf32, #tpu.memory_space<vmem>>, %arg5: memref<128x32xf32, #tpu.memory_space<vmem>>, %arg6: memref<32x128xf32, #tpu.memory_space<vmem>>, %arg7: memref<8x16x128xf32, #tpu.memory_space<vmem>>, %arg8: memref<128x128xf32, #tpu.memory_space<vmem>>) attributes {dimension_semantics = [#tpu.dimension_semantics<parallel>], iteration_bounds = array<i64: 2>, scalar_prefetch = 0 : i64, scratch_operands = 1 : i64, tpu.core_type = #tpu.core_type<tc>, window_params = [{transform_indices = @transform_0, window_bounds = array<i64: 8, 16, 128>}, {pipeline_mode = #tpu.pipeline_mode<synchronous>, transform_indices = @transform_1, window_bounds = array<i64: 128, 384>}, {pipeline_mode = #tpu.pipeline_mode<synchronous>, transform_indices = @transform_2, window_bounds = array<i64: 1, 128>}, {pipeline_mode = #tpu.pipeline_mode<synchronous>, transform_indices = @transform_3, window_bounds = array<i64: 1, 128>}, {pipeline_mode = #tpu.pipeline_mode<synchronous>, transform_indices = @transform_4, window_bounds = array<i64: 128, 32>}, {pipeline_mode = #tpu.pipeline_mode<synchronous>, transform_indices = @transform_5, window_bounds = array<i64: 32, 128>}, {transform_indices = @transform_6, window_bounds = array<i64: 8, 16, 128>}]} {
    %c0 = arith.constant 0 : index
    %c0_0 = arith.constant 0 : index
    %c0_1 = arith.constant 0 : index
    %0 = vector.load %arg1[%c0, %c0_0, %c0_1] : memref<8x16x128xf32, #tpu.memory_space<vmem>>, vector<8x16x128xf32>
    %1 = vector.shape_cast %0 : vector<8x16x128xf32> to vector<128x128xf32>
    %2 = arith.truncf %1 : vector<128x128xf32> to vector<128x128xbf16>
    %c0_2 = arith.constant 0 : index
    %c0_3 = arith.constant 0 : index
    %3 = vector.load %arg2[%c0_2, %c0_3] : memref<128x384xf32, #tpu.memory_space<vmem>>, vector<128x384xf32>
    %4 = arith.truncf %3 : vector<128x384xf32> to vector<128x384xbf16>
    %cst = arith.constant dense<0.000000e+00> : vector<128x384xf32>
    %5 = tpu.matmul %2, %4, %cst {dimension_numbers = #tpu.dot_dimension_numbers<[1], [0], [0], [1], [0, 0, 1, 1], [], []>} : vector<128x128xbf16>, vector<128x384xbf16>, vector<128x384xf32> -> vector<128x384xf32>
    %6 = vector.extract_strided_slice %5 {offsets = [0, 0], sizes = [128, 128], strides = [1, 1]} : vector<128x384xf32> to vector<128x128xf32>
    %cst_4 = arith.constant 2.500000e-01 : f32
    %7 = vector.broadcast %cst_4 : f32 to vector<128x128xf32>
    %8 = arith.mulf %6, %7 : vector<128x128xf32>
    %9 = arith.truncf %8 : vector<128x128xf32> to vector<128x128xbf16>
    %10 = vector.extract_strided_slice %5 {offsets = [0, 128], sizes = [128, 128], strides = [1, 1]} : vector<128x384xf32> to vector<128x128xf32>
    %11 = arith.truncf %10 : vector<128x128xf32> to vector<128x128xbf16>
    %12 = vector.extract_strided_slice %5 {offsets = [0, 256], sizes = [128, 128], strides = [1, 1]} : vector<128x384xf32> to vector<128x128xf32>
    %13 = arith.truncf %12 : vector<128x128xf32> to vector<128x128xbf16>
    %14 = vector.extract_strided_slice %9 {offsets = [0, 0], sizes = [16, 128], strides = [1, 1]} : vector<128x128xbf16> to vector<16x128xbf16>
    %15 = vector.extract_strided_slice %11 {offsets = [0, 0], sizes = [16, 128], strides = [1, 1]} : vector<128x128xbf16> to vector<16x128xbf16>
    %16 = vector.extract_strided_slice %13 {offsets = [0, 0], sizes = [16, 128], strides = [1, 1]} : vector<128x128xbf16> to vector<16x128xbf16>
    %cst_5 = arith.constant dense<0.000000e+00> : vector<128x128xf32>
    %17 = tpu.matmul %14, %15, %cst_5 {dimension_numbers = #tpu.dot_dimension_numbers<[0], [0], [1], [1], [0, 1, 1, 1], [], []>} : vector<16x128xbf16>, vector<16x128xbf16>, vector<128x128xf32> -> vector<128x128xf32>
    %cst_6 = arith.constant dense<0xFF800000> : vector<128xf32>
    %18 = vector.multi_reduction <maximumf>, %17, %cst_6 [1] : vector<128x128xf32> to vector<128xf32>
    %19 = vector.shape_cast %18 : vector<128xf32> to vector<128x1xf32>
    %20 = vector.broadcast %19 : vector<128x1xf32> to vector<128x128xf32>
    %21 = arith.subf %17, %20 : vector<128x128xf32>
    %22 = math.exp %21 : vector<128x128xf32>
    %cst_7 = arith.constant dense<0.000000e+00> : vector<128xf32>
    %23 = vector.multi_reduction <add>, %22, %cst_7 [1] : vector<128x128xf32> to vector<128xf32>
    %24 = vector.shape_cast %23 : vector<128xf32> to vector<128x1xf32>
    %25 = tpu.reciprocal %24 {approx = true} : vector<128x1xf32> -> vector<128x1xf32>
    %26 = vector.broadcast %25 : vector<128x1xf32> to vector<128x128xf32>
    %27 = arith.mulf %22, %26 : vector<128x128xf32>
    %28 = arith.truncf %27 : vector<128x128xf32> to vector<128x128xbf16>
    %cst_8 = arith.constant dense<0.000000e+00> : vector<16x128xf32>
    %29 = tpu.matmul %16, %28, %cst_8 {dimension_numbers = #tpu.dot_dimension_numbers<[1], [1], [0], [0], [0, 0, 1, 0], [], []>} : vector<16x128xbf16>, vector<128x128xbf16>, vector<16x128xf32> -> vector<16x128xf32>
    %c0_9 = arith.constant 0 : index
    %c0_10 = arith.constant 0 : index
    %30 = vector.load %arg8[%c0_9, %c0_10] : memref<128x128xf32, #tpu.memory_space<vmem>>, vector<16x128xf32>
    tpu.vector_store %arg8[%c0_9, %c0_10], %29 {strides = array<i32>} : memref<128x128xf32, #tpu.memory_space<vmem>>, vector<16x128xf32>,
    %31 = vector.extract_strided_slice %9 {offsets = [16, 0], sizes = [16, 128], strides = [1, 1]} : vector<128x128xbf16> to vector<16x128xbf16>
    %32 = vector.extract_strided_slice %11 {offsets = [16, 0], sizes = [16, 128], strides = [1, 1]} : vector<128x128xbf16> to vector<16x128xbf16>
    %33 = vector.extract_strided_slice %13 {offsets = [16, 0], sizes = [16, 128], strides = [1, 1]} : vector<128x128xbf16> to vector<16x128xbf16>
    %cst_11 = arith.constant dense<0.000000e+00> : vector<128x128xf32>
    %34 = tpu.matmul %31, %32, %cst_11 {dimension_numbers = #tpu.dot_dimension_numbers<[0], [0], [1], [1], [0, 1, 1, 1], [], []>} : vector<16x128xbf16>, vector<16x128xbf16>, vector<128x128xf32> -> vector<128x128xf32>
    %cst_12 = arith.constant dense<0xFF800000> : vector<128xf32>
    %35 = vector.multi_reduction <maximumf>, %34, %cst_12 [1] : vector<128x128xf32> to vector<128xf32>
    %36 = vector.shape_cast %35 : vector<128xf32> to vector<128x1xf32>
    %37 = vector.broadcast %36 : vector<128x1xf32> to vector<128x128xf32>
    %38 = arith.subf %34, %37 : vector<128x128xf32>
    %39 = math.exp %38 : vector<128x128xf32>
    %cst_13 = arith.constant dense<0.000000e+00> : vector<128xf32>
    %40 = vector.multi_reduction <add>, %39, %cst_13 [1] : vector<128x128xf32> to vector<128xf32>
    %41 = vector.shape_cast %40 : vector<128xf32> to vector<128x1xf32>
    %42 = tpu.reciprocal %41 {approx = true} : vector<128x1xf32> -> vector<128x1xf32>
    %43 = vector.broadcast %42 : vector<128x1xf32> to vector<128x128xf32>
    %44 = arith.mulf %39, %43 : vector<128x128xf32>
    %45 = arith.truncf %44 : vector<128x128xf32> to vector<128x128xbf16>
    %cst_14 = arith.constant dense<0.000000e+00> : vector<16x128xf32>
    %46 = tpu.matmul %33, %45, %cst_14 {dimension_numbers = #tpu.dot_dimension_numbers<[1], [1], [0], [0], [0, 0, 1, 0], [], []>} : vector<16x128xbf16>, vector<128x128xbf16>, vector<16x128xf32> -> vector<16x128xf32>
    %c16 = arith.constant 16 : index
    %c0_15 = arith.constant 0 : index
    %47 = vector.load %arg8[%c16, %c0_15] : memref<128x128xf32, #tpu.memory_space<vmem>>, vector<16x128xf32>
    tpu.vector_store %arg8[%c16, %c0_15], %46 {strides = array<i32>} : memref<128x128xf32, #tpu.memory_space<vmem>>, vector<16x128xf32>,
    %48 = vector.extract_strided_slice %9 {offsets = [32, 0], sizes = [16, 128], strides = [1, 1]} : vector<128x128xbf16> to vector<16x128xbf16>
    %49 = vector.extract_strided_slice %11 {offsets = [32, 0], sizes = [16, 128], strides = [1, 1]} : vector<128x128xbf16> to vector<16x128xbf16>
    %50 = vector.extract_strided_slice %13 {offsets = [32, 0], sizes = [16, 128], strides = [1, 1]} : vector<128x128xbf16> to vector<16x128xbf16>
    %cst_16 = arith.constant dense<0.000000e+00> : vector<128x128xf32>
    %51 = tpu.matmul %48, %49, %cst_16 {dimension_numbers = #tpu.dot_dimension_numbers<[0], [0], [1], [1], [0, 1, 1, 1], [], []>} : vector<16x128xbf16>, vector<16x128xbf16>, vector<128x128xf32> -> vector<128x128xf32>
    %cst_17 = arith.constant dense<0xFF800000> : vector<128xf32>
    %52 = vector.multi_reduction <maximumf>, %51, %cst_17 [1] : vector<128x128xf32> to vector<128xf32>
    %53 = vector.shape_cast %52 : vector<128xf32> to vector<128x1xf32>
    %54 = vector.broadcast %53 : vector<128x1xf32> to vector<128x128xf32>
    %55 = arith.subf %51, %54 : vector<128x128xf32>
    %56 = math.exp %55 : vector<128x128xf32>
    %cst_18 = arith.constant dense<0.000000e+00> : vector<128xf32>
    %57 = vector.multi_reduction <add>, %56, %cst_18 [1] : vector<128x128xf32> to vector<128xf32>
    %58 = vector.shape_cast %57 : vector<128xf32> to vector<128x1xf32>
    %59 = tpu.reciprocal %58 {approx = true} : vector<128x1xf32> -> vector<128x1xf32>
    %60 = vector.broadcast %59 : vector<128x1xf32> to vector<128x128xf32>
    %61 = arith.mulf %56, %60 : vector<128x128xf32>
    %62 = arith.truncf %61 : vector<128x128xf32> to vector<128x128xbf16>
    %cst_19 = arith.constant dense<0.000000e+00> : vector<16x128xf32>
    %63 = tpu.matmul %50, %62, %cst_19 {dimension_numbers = #tpu.dot_dimension_numbers<[1], [1], [0], [0], [0, 0, 1, 0], [], []>} : vector<16x128xbf16>, vector<128x128xbf16>, vector<16x128xf32> -> vector<16x128xf32>
    %c32 = arith.constant 32 : index
    %c0_20 = arith.constant 0 : index
    %64 = vector.load %arg8[%c32, %c0_20] : memref<128x128xf32, #tpu.memory_space<vmem>>, vector<16x128xf32>
    tpu.vector_store %arg8[%c32, %c0_20], %63 {strides = array<i32>} : memref<128x128xf32, #tpu.memory_space<vmem>>, vector<16x128xf32>,
    %65 = vector.extract_strided_slice %9 {offsets = [48, 0], sizes = [16, 128], strides = [1, 1]} : vector<128x128xbf16> to vector<16x128xbf16>
    %66 = vector.extract_strided_slice %11 {offsets = [48, 0], sizes = [16, 128], strides = [1, 1]} : vector<128x128xbf16> to vector<16x128xbf16>
    %67 = vector.extract_strided_slice %13 {offsets = [48, 0], sizes = [16, 128], strides = [1, 1]} : vector<128x128xbf16> to vector<16x128xbf16>
    %cst_21 = arith.constant dense<0.000000e+00> : vector<128x128xf32>
    %68 = tpu.matmul %65, %66, %cst_21 {dimension_numbers = #tpu.dot_dimension_numbers<[0], [0], [1], [1], [0, 1, 1, 1], [], []>} : vector<16x128xbf16>, vector<16x128xbf16>, vector<128x128xf32> -> vector<128x128xf32>
    %cst_22 = arith.constant dense<0xFF800000> : vector<128xf32>
    %69 = vector.multi_reduction <maximumf>, %68, %cst_22 [1] : vector<128x128xf32> to vector<128xf32>
    %70 = vector.shape_cast %69 : vector<128xf32> to vector<128x1xf32>
    %71 = vector.broadcast %70 : vector<128x1xf32> to vector<128x128xf32>
    %72 = arith.subf %68, %71 : vector<128x128xf32>
    %73 = math.exp %72 : vector<128x128xf32>
    %cst_23 = arith.constant dense<0.000000e+00> : vector<128xf32>
    %74 = vector.multi_reduction <add>, %73, %cst_23 [1] : vector<128x128xf32> to vector<128xf32>
    %75 = vector.shape_cast %74 : vector<128xf32> to vector<128x1xf32>
    %76 = tpu.reciprocal %75 {approx = true} : vector<128x1xf32> -> vector<128x1xf32>
    %77 = vector.broadcast %76 : vector<128x1xf32> to vector<128x128xf32>
    %78 = arith.mulf %73, %77 : vector<128x128xf32>
    %79 = arith.truncf %78 : vector<128x128xf32> to vector<128x128xbf16>
    %cst_24 = arith.constant dense<0.000000e+00> : vector<16x128xf32>
    %80 = tpu.matmul %67, %79, %cst_24 {dimension_numbers = #tpu.dot_dimension_numbers<[1], [1], [0], [0], [0, 0, 1, 0], [], []>} : vector<16x128xbf16>, vector<128x128xbf16>, vector<16x128xf32> -> vector<16x128xf32>
    %c48 = arith.constant 48 : index
    %c0_25 = arith.constant 0 : index
    %81 = vector.load %arg8[%c48, %c0_25] : memref<128x128xf32, #tpu.memory_space<vmem>>, vector<16x128xf32>
    tpu.vector_store %arg8[%c48, %c0_25], %80 {strides = array<i32>} : memref<128x128xf32, #tpu.memory_space<vmem>>, vector<16x128xf32>,
    %82 = vector.extract_strided_slice %9 {offsets = [64, 0], sizes = [16, 128], strides = [1, 1]} : vector<128x128xbf16> to vector<16x128xbf16>
    %83 = vector.extract_strided_slice %11 {offsets = [64, 0], sizes = [16, 128], strides = [1, 1]} : vector<128x128xbf16> to vector<16x128xbf16>
    %84 = vector.extract_strided_slice %13 {offsets = [64, 0], sizes = [16, 128], strides = [1, 1]} : vector<128x128xbf16> to vector<16x128xbf16>
    %cst_26 = arith.constant dense<0.000000e+00> : vector<128x128xf32>
    %85 = tpu.matmul %82, %83, %cst_26 {dimension_numbers = #tpu.dot_dimension_numbers<[0], [0], [1], [1], [0, 1, 1, 1], [], []>} : vector<16x128xbf16>, vector<16x128xbf16>, vector<128x128xf32> -> vector<128x128xf32>
    %cst_27 = arith.constant dense<0xFF800000> : vector<128xf32>
    %86 = vector.multi_reduction <maximumf>, %85, %cst_27 [1] : vector<128x128xf32> to vector<128xf32>
    %87 = vector.shape_cast %86 : vector<128xf32> to vector<128x1xf32>
    %88 = vector.broadcast %87 : vector<128x1xf32> to vector<128x128xf32>
    %89 = arith.subf %85, %88 : vector<128x128xf32>
    %90 = math.exp %89 : vector<128x128xf32>
    %cst_28 = arith.constant dense<0.000000e+00> : vector<128xf32>
    %91 = vector.multi_reduction <add>, %90, %cst_28 [1] : vector<128x128xf32> to vector<128xf32>
    %92 = vector.shape_cast %91 : vector<128xf32> to vector<128x1xf32>
    %93 = tpu.reciprocal %92 {approx = true} : vector<128x1xf32> -> vector<128x1xf32>
    %94 = vector.broadcast %93 : vector<128x1xf32> to vector<128x128xf32>
    %95 = arith.mulf %90, %94 : vector<128x128xf32>
    %96 = arith.truncf %95 : vector<128x128xf32> to vector<128x128xbf16>
    %cst_29 = arith.constant dense<0.000000e+00> : vector<16x128xf32>
    %97 = tpu.matmul %84, %96, %cst_29 {dimension_numbers = #tpu.dot_dimension_numbers<[1], [1], [0], [0], [0, 0, 1, 0], [], []>} : vector<16x128xbf16>, vector<128x128xbf16>, vector<16x128xf32> -> vector<16x128xf32>
    %c64 = arith.constant 64 : index
    %c0_30 = arith.constant 0 : index
    %98 = vector.load %arg8[%c64, %c0_30] : memref<128x128xf32, #tpu.memory_space<vmem>>, vector<16x128xf32>
    tpu.vector_store %arg8[%c64, %c0_30], %97 {strides = array<i32>} : memref<128x128xf32, #tpu.memory_space<vmem>>, vector<16x128xf32>,
    %99 = vector.extract_strided_slice %9 {offsets = [80, 0], sizes = [16, 128], strides = [1, 1]} : vector<128x128xbf16> to vector<16x128xbf16>
    %100 = vector.extract_strided_slice %11 {offsets = [80, 0], sizes = [16, 128], strides = [1, 1]} : vector<128x128xbf16> to vector<16x128xbf16>
    %101 = vector.extract_strided_slice %13 {offsets = [80, 0], sizes = [16, 128], strides = [1, 1]} : vector<128x128xbf16> to vector<16x128xbf16>
    %cst_31 = arith.constant dense<0.000000e+00> : vector<128x128xf32>
    %102 = tpu.matmul %99, %100, %cst_31 {dimension_numbers = #tpu.dot_dimension_numbers<[0], [0], [1], [1], [0, 1, 1, 1], [], []>} : vector<16x128xbf16>, vector<16x128xbf16>, vector<128x128xf32> -> vector<128x128xf32>
    %cst_32 = arith.constant dense<0xFF800000> : vector<128xf32>
    %103 = vector.multi_reduction <maximumf>, %102, %cst_32 [1] : vector<128x128xf32> to vector<128xf32>
    %104 = vector.shape_cast %103 : vector<128xf32> to vector<128x1xf32>
    %105 = vector.broadcast %104 : vector<128x1xf32> to vector<128x128xf32>
    %106 = arith.subf %102, %105 : vector<128x128xf32>
    %107 = math.exp %106 : vector<128x128xf32>
    %cst_33 = arith.constant dense<0.000000e+00> : vector<128xf32>
    %108 = vector.multi_reduction <add>, %107, %cst_33 [1] : vector<128x128xf32> to vector<128xf32>
    %109 = vector.shape_cast %108 : vector<128xf32> to vector<128x1xf32>
    %110 = tpu.reciprocal %109 {approx = true} : vector<128x1xf32> -> vector<128x1xf32>
    %111 = vector.broadcast %110 : vector<128x1xf32> to vector<128x128xf32>
    %112 = arith.mulf %107, %111 : vector<128x128xf32>
    %113 = arith.truncf %112 : vector<128x128xf32> to vector<128x128xbf16>
    %cst_34 = arith.constant dense<0.000000e+00> : vector<16x128xf32>
    %114 = tpu.matmul %101, %113, %cst_34 {dimension_numbers = #tpu.dot_dimension_numbers<[1], [1], [0], [0], [0, 0, 1, 0], [], []>} : vector<16x128xbf16>, vector<128x128xbf16>, vector<16x128xf32> -> vector<16x128xf32>
    %c80 = arith.constant 80 : index
    %c0_35 = arith.constant 0 : index
    %115 = vector.load %arg8[%c80, %c0_35] : memref<128x128xf32, #tpu.memory_space<vmem>>, vector<16x128xf32>
    tpu.vector_store %arg8[%c80, %c0_35], %114 {strides = array<i32>} : memref<128x128xf32, #tpu.memory_space<vmem>>, vector<16x128xf32>,
    %116 = vector.extract_strided_slice %9 {offsets = [96, 0], sizes = [16, 128], strides = [1, 1]} : vector<128x128xbf16> to vector<16x128xbf16>
    %117 = vector.extract_strided_slice %11 {offsets = [96, 0], sizes = [16, 128], strides = [1, 1]} : vector<128x128xbf16> to vector<16x128xbf16>
    %118 = vector.extract_strided_slice %13 {offsets = [96, 0], sizes = [16, 128], strides = [1, 1]} : vector<128x128xbf16> to vector<16x128xbf16>
    %cst_36 = arith.constant dense<0.000000e+00> : vector<128x128xf32>
    %119 = tpu.matmul %116, %117, %cst_36 {dimension_numbers = #tpu.dot_dimension_numbers<[0], [0], [1], [1], [0, 1, 1, 1], [], []>} : vector<16x128xbf16>, vector<16x128xbf16>, vector<128x128xf32> -> vector<128x128xf32>
    %cst_37 = arith.constant dense<0xFF800000> : vector<128xf32>
    %120 = vector.multi_reduction <maximumf>, %119, %cst_37 [1] : vector<128x128xf32> to vector<128xf32>
    %121 = vector.shape_cast %120 : vector<128xf32> to vector<128x1xf32>
    %122 = vector.broadcast %121 : vector<128x1xf32> to vector<128x128xf32>
    %123 = arith.subf %119, %122 : vector<128x128xf32>
    %124 = math.exp %123 : vector<128x128xf32>
    %cst_38 = arith.constant dense<0.000000e+00> : vector<128xf32>
    %125 = vector.multi_reduction <add>, %124, %cst_38 [1] : vector<128x128xf32> to vector<128xf32>
    %126 = vector.shape_cast %125 : vector<128xf32> to vector<128x1xf32>
    %127 = tpu.reciprocal %126 {approx = true} : vector<128x1xf32> -> vector<128x1xf32>
    %128 = vector.broadcast %127 : vector<128x1xf32> to vector<128x128xf32>
    %129 = arith.mulf %124, %128 : vector<128x128xf32>
    %130 = arith.truncf %129 : vector<128x128xf32> to vector<128x128xbf16>
    %cst_39 = arith.constant dense<0.000000e+00> : vector<16x128xf32>
    %131 = tpu.matmul %118, %130, %cst_39 {dimension_numbers = #tpu.dot_dimension_numbers<[1], [1], [0], [0], [0, 0, 1, 0], [], []>} : vector<16x128xbf16>, vector<128x128xbf16>, vector<16x128xf32> -> vector<16x128xf32>
    %c96 = arith.constant 96 : index
    %c0_40 = arith.constant 0 : index
    %132 = vector.load %arg8[%c96, %c0_40] : memref<128x128xf32, #tpu.memory_space<vmem>>, vector<16x128xf32>
    tpu.vector_store %arg8[%c96, %c0_40], %131 {strides = array<i32>} : memref<128x128xf32, #tpu.memory_space<vmem>>, vector<16x128xf32>,
    %133 = vector.extract_strided_slice %9 {offsets = [112, 0], sizes = [16, 128], strides = [1, 1]} : vector<128x128xbf16> to vector<16x128xbf16>
    %134 = vector.extract_strided_slice %11 {offsets = [112, 0], sizes = [16, 128], strides = [1, 1]} : vector<128x128xbf16> to vector<16x128xbf16>
    %135 = vector.extract_strided_slice %13 {offsets = [112, 0], sizes = [16, 128], strides = [1, 1]} : vector<128x128xbf16> to vector<16x128xbf16>
    %cst_41 = arith.constant dense<0.000000e+00> : vector<128x128xf32>
    %136 = tpu.matmul %133, %134, %cst_41 {dimension_numbers = #tpu.dot_dimension_numbers<[0], [0], [1], [1], [0, 1, 1, 1], [], []>} : vector<16x128xbf16>, vector<16x128xbf16>, vector<128x128xf32> -> vector<128x128xf32>
    %cst_42 = arith.constant dense<0xFF800000> : vector<128xf32>
    %137 = vector.multi_reduction <maximumf>, %136, %cst_42 [1] : vector<128x128xf32> to vector<128xf32>
    %138 = vector.shape_cast %137 : vector<128xf32> to vector<128x1xf32>
    %139 = vector.broadcast %138 : vector<128x1xf32> to vector<128x128xf32>
    %140 = arith.subf %136, %139 : vector<128x128xf32>
    %141 = math.exp %140 : vector<128x128xf32>
    %cst_43 = arith.constant dense<0.000000e+00> : vector<128xf32>
    %142 = vector.multi_reduction <add>, %141, %cst_43 [1] : vector<128x128xf32> to vector<128xf32>
    %143 = vector.shape_cast %142 : vector<128xf32> to vector<128x1xf32>
    %144 = tpu.reciprocal %143 {approx = true} : vector<128x1xf32> -> vector<128x1xf32>
    %145 = vector.broadcast %144 : vector<128x1xf32> to vector<128x128xf32>
    %146 = arith.mulf %141, %145 : vector<128x128xf32>
    %147 = arith.truncf %146 : vector<128x128xf32> to vector<128x128xbf16>
    %cst_44 = arith.constant dense<0.000000e+00> : vector<16x128xf32>
    %148 = tpu.matmul %135, %147, %cst_44 {dimension_numbers = #tpu.dot_dimension_numbers<[1], [1], [0], [0], [0, 0, 1, 0], [], []>} : vector<16x128xbf16>, vector<128x128xbf16>, vector<16x128xf32> -> vector<16x128xf32>
    %c112 = arith.constant 112 : index
    %c0_45 = arith.constant 0 : index
    %149 = vector.load %arg8[%c112, %c0_45] : memref<128x128xf32, #tpu.memory_space<vmem>>, vector<16x128xf32>
    tpu.vector_store %arg8[%c112, %c0_45], %148 {strides = array<i32>} : memref<128x128xf32, #tpu.memory_space<vmem>>, vector<16x128xf32>,
    %c0_46 = arith.constant 0 : index
    %c0_47 = arith.constant 0 : index
    %150 = vector.load %arg8[%c0_46, %c0_47] : memref<128x128xf32, #tpu.memory_space<vmem>>, vector<128x128xf32>
    %cst_48 = arith.constant dense<0.000000e+00> : vector<128xf32>
    %151 = vector.multi_reduction <add>, %150, %cst_48 [1] : vector<128x128xf32> to vector<128xf32>
    %152 = vector.shape_cast %151 : vector<128xf32> to vector<128x1xf32>
    %cst_49 = arith.constant 1.280000e+02 : f32
    %153 = vector.broadcast %cst_49 : f32 to vector<128x1xf32>
    %154 = arith.divf %152, %153 : vector<128x1xf32>
    %155 = vector.broadcast %154 : vector<128x1xf32> to vector<128x128xf32>
    %156 = arith.subf %150, %155 : vector<128x128xf32>
    %157 = arith.mulf %156, %156 : vector<128x128xf32>
    %cst_50 = arith.constant dense<0.000000e+00> : vector<128xf32>
    %158 = vector.multi_reduction <add>, %157, %cst_50 [1] : vector<128x128xf32> to vector<128xf32>
    %159 = vector.shape_cast %158 : vector<128xf32> to vector<128x1xf32>
    %cst_51 = arith.constant 1.280000e+02 : f32
    %160 = vector.broadcast %cst_51 : f32 to vector<128x1xf32>
    %161 = arith.divf %159, %160 : vector<128x1xf32>
    %cst_52 = arith.constant 9.99999974E-6 : f32
    %162 = vector.broadcast %cst_52 : f32 to vector<128x1xf32>
    %163 = arith.addf %161, %162 : vector<128x1xf32>
    %164 = math.rsqrt %163 : vector<128x1xf32>
    %165 = vector.broadcast %164 : vector<128x1xf32> to vector<128x128xf32>
    %166 = arith.mulf %156, %165 : vector<128x128xf32>
    %c0_53 = arith.constant 0 : index
    %c0_54 = arith.constant 0 : index
    %167 = vector.load %arg3[%c0_53, %c0_54] : memref<1x128xf32, #tpu.memory_space<vmem>>, vector<1x128xf32>
    %168 = vector.broadcast %167 : vector<1x128xf32> to vector<128x128xf32>
    %169 = arith.mulf %166, %168 : vector<128x128xf32>
    %c0_55 = arith.constant 0 : index
    %c0_56 = arith.constant 0 : index
    %170 = vector.load %arg4[%c0_55, %c0_56] : memref<1x128xf32, #tpu.memory_space<vmem>>, vector<1x128xf32>
    %171 = vector.broadcast %170 : vector<1x128xf32> to vector<128x128xf32>
    %172 = arith.addf %169, %171 : vector<128x128xf32>
    %173 = arith.truncf %172 : vector<128x128xf32> to vector<128x128xbf16>
    %c0_57 = arith.constant 0 : index
    %c0_58 = arith.constant 0 : index
    %174 = vector.load %arg5[%c0_57, %c0_58] : memref<128x32xf32, #tpu.memory_space<vmem>>, vector<128x32xf32>
    %175 = arith.truncf %174 : vector<128x32xf32> to vector<128x32xbf16>
    %cst_59 = arith.constant dense<0.000000e+00> : vector<128x32xf32>
    %176 = tpu.matmul %173, %175, %cst_59 {dimension_numbers = #tpu.dot_dimension_numbers<[1], [0], [0], [1], [0, 0, 1, 1], [], []>} : vector<128x128xbf16>, vector<128x32xbf16>, vector<128x32xf32> -> vector<128x32xf32>
    %cst_60 = arith.constant 5.000000e-01 : f32
    %177 = vector.broadcast %cst_60 : f32 to vector<128x32xf32>
    %178 = arith.mulf %177, %176 : vector<128x32xf32>
    %cst_61 = arith.constant 0.707106769 : f32
    %179 = vector.broadcast %cst_61 : f32 to vector<128x32xf32>
    %180 = arith.mulf %176, %179 : vector<128x32xf32>
    %181 = math.erf %180 : vector<128x32xf32>
    %cst_62 = arith.constant 1.000000e+00 : f32
    %182 = vector.broadcast %cst_62 : f32 to vector<128x32xf32>
    %183 = arith.addf %182, %181 : vector<128x32xf32>
    %184 = arith.mulf %178, %183 : vector<128x32xf32>
    %185 = arith.truncf %184 : vector<128x32xf32> to vector<128x32xbf16>
    %c0_63 = arith.constant 0 : index
    %c0_64 = arith.constant 0 : index
    %186 = vector.load %arg6[%c0_63, %c0_64] : memref<32x128xf32, #tpu.memory_space<vmem>>, vector<32x128xf32>
    %187 = arith.truncf %186 : vector<32x128xf32> to vector<32x128xbf16>
    %cst_65 = arith.constant dense<0.000000e+00> : vector<128x128xf32>
    %188 = tpu.matmul %185, %187, %cst_65 {dimension_numbers = #tpu.dot_dimension_numbers<[1], [0], [0], [1], [0, 0, 1, 1], [], []>} : vector<128x32xbf16>, vector<32x128xbf16>, vector<128x128xf32> -> vector<128x128xf32>
    %189 = arith.addf %150, %188 : vector<128x128xf32>
    %190 = vector.shape_cast %189 : vector<128x128xf32> to vector<8x16x128xf32>
    %c0_66 = arith.constant 0 : index
    %c0_67 = arith.constant 0 : index
    %c0_68 = arith.constant 0 : index
    %191 = vector.load %arg7[%c0_66, %c0_67, %c0_68] : memref<8x16x128xf32, #tpu.memory_space<vmem>>, vector<8x16x128xf32>
    tpu.vector_store %arg7[%c0_66, %c0_67, %c0_68], %190 {strides = array<i32>} : memref<8x16x128xf32, #tpu.memory_space<vmem>>, vector<8x16x128xf32>,
    return
  }
  func.func @transform_0(%arg0: i32) -> (i32, i32, i32) {
    %c0_i32 = arith.constant 0 : i32
    %c0_i32_0 = arith.constant 0 : i32
    %c0_i32_1 = arith.constant 0 : i32
    return %arg0, %c0_i32, %c0_i32_0 : i32, i32, i32
  }
  func.func @transform_1(%arg0: i32) -> (i32, i32) {
    %c0_i32 = arith.constant 0 : i32
    %c0_i32_0 = arith.constant 0 : i32
    %c0_i32_1 = arith.constant 0 : i32
    return %c0_i32, %c0_i32_0 : i32, i32
  }
  func.func @transform_2(%arg0: i32) -> (i32, i32) {
    %c0_i32 = arith.constant 0 : i32
    %c0_i32_0 = arith.constant 0 : i32
    %c0_i32_1 = arith.constant 0 : i32
    return %c0_i32, %c0_i32_0 : i32, i32
  }
  func.func @transform_3(%arg0: i32) -> (i32, i32) {
    %c0_i32 = arith.constant 0 : i32
    %c0_i32_0 = arith.constant 0 : i32
    %c0_i32_1 = arith.constant 0 : i32
    return %c0_i32, %c0_i32_0 : i32, i32
  }
  func.func @transform_4(%arg0: i32) -> (i32, i32) {
    %c0_i32 = arith.constant 0 : i32
    %c0_i32_0 = arith.constant 0 : i32
    %c0_i32_1 = arith.constant 0 : i32
    return %c0_i32, %c0_i32_0 : i32, i32
  }
  func.func @transform_5(%arg0: i32) -> (i32, i32) {
    %c0_i32 = arith.constant 0 : i32
    %c0_i32_0 = arith.constant 0 : i32
    %c0_i32_1 = arith.constant 0 : i32
    return %c0_i32, %c0_i32_0 : i32, i32
  }
  func.func @transform_6(%arg0: i32) -> (i32, i32, i32) {
    %c0_i32 = arith.constant 0 : i32
    %c0_i32_0 = arith.constant 0 : i32
    %c0_i32_1 = arith.constant 0 : i32
    return %arg0, %c0_i32, %c0_i32_0 : i32, i32, i32
  }
}

</mosaic_0001>

<bundles_post_ra>
// kernel: tpu_custom_call.1
= control target key start
LH: loop header
LB: loop body
LE: loop exit
PB: predicated region body
PF: predicated region fallthrough
CT: control target
= control target key end

     0   :  { %11 = vsyncpa [#allocation4], 0  ;;  %s7267_s0 = inlined_call_operand.hbm [shape: f32[16,16,128], index: 0, kind: input, shape index: {}]   ;;  %s7268_s1 = inlined_call_operand.hbm [shape: f32[128,384], index: 1, kind: input, shape index: {}]   ;;  %s7269_s2 = inlined_call_operand.vmem [shape: f32[1,128], index: 2, kind: input, shape index: {}]   ;;  %s7270_s3 = inlined_call_operand.vmem [shape: f32[1,128], index: 3, kind: input, shape index: {}]   ;;  %s7271_s4 = inlined_call_operand.vmem [shape: f32[128,32], index: 4, kind: input, shape index: {}]   ;;  %s7272_s5 = inlined_call_operand.vmem [shape: f32[32,128], index: 5, kind: input, shape index: {}]   ;;  %s7273_s6 = inlined_call_operand.hbm [shape: f32[16,16,128], index: 6, kind: output, shape index: {}]  }
   0x1   :  { %13 = vsyncpa [#allocation4 + $0x1], 0 }
   0x2   :  { %14 = vsyncpa [#allocation7], 0 }
   0x3   :  { %15 = vsyncpa [#allocation5], 0 }
   0x4   :  { %17 = vsyncpa [#allocation5 + $0x1], 0  ;;  %s5489_s21 = smov 0   ;;  %s5491_s22 = smov 0  }
   0x5   :  { %s5493_s23 = smov 0   ;;  %s5495_s24 = smov 0  }
   0x6 LB: > { %s5510_s25 = sadd.s32 4294967295, %s5440_s24   ;;  %s4006_s26 = sadd.s32 4294967294, %s5440_s24   ;;  %s5440_s24 = sphi %s5495_s24, %s7359_s24   ;;  %s5436_s23 = sphi %s5493_s23, %s7358_s23   ;;  %s5432_s22 = sphi %s5491_s22, %s7357_s22   ;;  %s5428_s21 = sphi %s5489_s21, %s7356_s21  }
   0x7   : > { %p43_p0 = scmp.ne.s32.totalorder %s5432_s22, %s5428_s21  ;;  %p7274_p1 = scmp.eq.s32.totalorder %s5510_s25, 0 }
   0x8   : > { %p178_p3 = scmp.eq.s32.totalorder %s4006_s26, 1  ;;  %p4007_p5 = scmp.ge.s32.totalorder %s5440_s24, 1 }
   0x9   : > { %p5519_p4 = por %p7274_p1, %p43_p0  ;;  %p185_p7 = scmp.lt.s32.totalorder %s5440_s24, 3 }
   0xa   : > { %p5524_p6 = por %p178_p3, %p43_p0  ;;  %s5442_s30 = smov [#allocation6]  }
   0xb   : > { %s7294_s27 = scalar_select %p5519_p4, 1, 0 }
   0xc   : > { %s7295_s28 = scalar_select %p5524_p6, 1, 0 }
   0xd   : > { %p5529_p8 = pnand %p4007_p5, %p185_p7  ;;  %s197_s7 = sshll.u32 %s5442_s30, 4  ;;  %s198_s7 = int_to_ptr.vmem [resolvable:$true] %s197_s7 }
   0xe   : > { %s5543_s9 = sadd.s32 1, %s5440_s24   ;;  %s30_s10 = sadd.s32 1, %s5436_s23 }
   0xf   : > { %s7296_s29 = scalar_select %p5529_p8, 1, 0 }
  0x10   : > { %p4684_p9 = pneg %p5529_p8  ;;  %s27_s11 = ssub.s32 %s5440_s24, %s5543_s9 }
  0x11   : > { %s5329_s12 = scalar_lea.vmem %s198_s7, 6144  ;;  %p5337_p5 = scmp.lt.s32.totalorder %s198_s7, %s198_s7 }
  0x12   : > { %p5538_p11 = pnand %p4684_p9, %p7274_p1  ;;  %p5330_p13 = scmp.ne.s32.totalorder %s198_s7, %s5329_s12 }
  0x13   : > { %p5338_p7 = scmp.lt.s32.totalorder %s5329_s12, %s5329_s12 }
  0x14   : > { %p5320_p12 = pneg %p5538_p11 }
  0x15   : > { %p5339_p10 = por %p5338_p7, %p5337_p5 }
  0x16   : > { %p5332_p0 = pnand %p5330_p13, %p5320_p12 }
  0x18   : > { %p5333_p3 = pneg %p5332_p0 }
  0x1a   : > { %p5340_p2 = pnand %p5339_p10, %p5333_p3 }
  0x1c   : > { %5343 = shalt.err (!%p5340_p2)
}
  0x1d   : > { %s5443_s13 = smov 384   ;;  %s5444_s14 = smov 24  }
  0x1e   : > { %4687 = dma.hbm_to_vmem [thread:$0]  (!%p5538_p11), %s7268_s1, 6144, %s198_s7, [#allocation7], %s5443_s13, %s5443_s13, %s5444_s14  }
  0x1f   : > { %p28_p9 = scmp.eq.s32.totalorder %s27_s11, 0  ;;  %p37_p12 = scmp.ne.s32.totalorder %s5436_s23, %s5432_s22 }
  0x20   : > { %p38_p10 = scmp.eq.s32.totalorder %s5440_s24, 0  ;;  %p4697_p2 = scmp.lt.s32.totalorder %s5440_s24, 2 }
  0x21   : > { %s5560_s17 = scalar_select %p28_p9, %s5436_s23, %s30_s10  }
  0x22   : > { %p39_p13 = por %p38_p10, %p37_p12  ;;  %p7298_p0 = scmp.eq.s32.totalorder %s5510_s25, 1 }
  0x23   : > { %s223_s19 = sand.u32 1, %s5436_s23   ;;  %s4099_s20 = sshll.u32 %s5440_s24, 11 }
  0x24   : > { %p5564_p3 = por %p7298_p0, %p37_p12  ;;  %s4010_s26 = sshll.u32 %s223_s19, 7 }
  0x25   : > { %s5573_s12 = scalar_lea.hbm %s7267_s0, %s4099_s20  ;;  %s227_s7 = scalar_lea.vmem [#allocation3], %s4010_s26 }
  0x26   : > { %s7299_s18 = scalar_select %p5564_p3, 1, 0 }
  0x27   : > { %s235_s10 = sshll.u32 %s227_s7, 4  ;;  %p5575_p11 = pnand %p4697_p2, %p39_p13  ;;  %s5579_s10 = int_to_ptr.vmem [resolvable:$true] %s235_s10 }
  0x28   : > { %s5581_s13 = scalar_lea.sflag [#allocation4], %s223_s19  ;;  %s5344_s14 = scalar_lea.hbm %s5573_s12, 2048 }
  0x29   : > { %p5345_p5 = scmp.ne.s32.totalorder %s5573_s12, %s5344_s14  ;;  %p5346_p7 = pneg %p5575_p11 }
  0x2a   : > { %s5349_s20 = scalar_lea.hbm %s7267_s0, 4096  ;;  %p5350_p10 = scmp.lt.s32.totalorder %s5573_s12, %s7267_s0 }
  0x2b   : > { %p5347_p9 = pnand %p5346_p7, %p5345_p5  ;;  %p5351_p2 = scmp.lt.s32.totalorder %s5349_s20, %s5344_s14 }
  0x2d   : > { %p5348_p12 = pneg %p5347_p9  ;;  %p5352_p13 = por %p5351_p2, %p5350_p10 }
  0x2f   : > { %p5353_p0 = pnand %p5352_p13, %p5348_p12 }
  0x31   : > { %5356 = shalt.err (!%p5353_p0)
}
  0x32   : > { %s5357_s19 = scalar_lea.vmem %s5579_s10, 2048  ;;  %s5445_s8 = smov [#allocation3]  }
  0x33   : > { %p5358_p1 = scmp.ne.s32.totalorder %s5579_s10, %s5357_s19  ;;  %s5362_s7 = sshll.u32 %s5445_s8, 4  ;;  %s5363_s7 = int_to_ptr.vmem [resolvable:$false] %s5362_s7 }
  0x34   : > { %s5364_s15 = scalar_lea.vmem %s5363_s7, 4096  ;;  %p5365_p9 = scmp.lt.s32.totalorder %s5579_s10, %s5363_s7 }
  0x35   : > { %p5360_p6 = pnand %p5358_p1, %p5346_p7  ;;  %p5366_p3 = scmp.lt.s32.totalorder %s5364_s15, %s5357_s19 }
  0x37   : > { %p5361_p5 = pneg %p5360_p6  ;;  %p5367_p4 = por %p5366_p3, %p5365_p9 }
  0x39   : > { %p5368_p8 = pnand %p5367_p4, %p5361_p5 }
  0x3b   : > { %5371 = shalt.err (!%p5368_p8)
}
  0x3c   : > { %s5446_s14 = smov 128   ;;  %s5447_s16 = smov 8  }
  0x3d   : > { %4691 = dma.hbm_to_vmem [thread:$0]  (!%p5575_p11), %s5573_s12, 2048, %s5579_s10, %s5581_s13, %s5446_s14, %s5446_s14, %s5447_s16  }
  0x3e   : > { %p7301_p1 = scmp.ne.s32.totalorder %s7296_s29, 0 }
  0x40   : > { %247 = sbr.rel (%p7301_p1) target bundleno = 4048 (0xfd0), region = 44 }
  0x45   : > { %s5605_s20 = sand.u32 1, %s5432_s22   ;;  %p7302_p4 = scmp.ne.s32.totalorder %s7294_s27, 0 }
  0x46   : > { %s4015_s26 = sshll.u32 %s5605_s20, 7  ;;  %s250_s30 = scalar_lea.sflag [#allocation4], %s5605_s20 }
  0x47   : > { %s5611_s19 = scalar_lea.vmem [#allocation3], %s4015_s26 }
  0x48   : > { %5415 = dma.done.wait (%p7302_p4), %s250_s30, 2048  }
  0x49   : > { %5417 = vsyncadd (%p7302_p4), %s250_s30, 4294965248  ;;  %p7303_p6 = scmp.eq.s32.totalorder %s5510_s25, 0 }
  0x4b   : > { %5419 = dma.done.wait (%p7303_p6), [#allocation7], 6144   ;;  %p7304_p8 = pmov %p7303_p6 }
  0x4c   : > { %v5448_v0 = vmov 0   ;;  %v356_v1 = vld [vmem:[#allocation6 + $0x158] sm:$0xff]  ;;  %v359_v2 = vld [vmem:[#allocation6 + $0x170] sm:$0xff]  ;;  %v358_v5 = vld [vmem:[#allocation6 + $0x168] sm:$0xff]  ;;  %vm651_vm0 = vcmask 130048   ;;  %vm5450_vm1 = vmmov 0  }
  0x4d   : > { %5421 = vsyncadd (%p7304_p8), [#allocation7], 4294961152  ;;  %417 = vmatprep.mubr.bf16.mxu0 %v5448_v0  ;;  %v355_v3 = vld [vmem:[#allocation6 + $0x150] sm:$0xff]  ;;  %v383_v4 = vpack.c.bf16 %v359_v2, %v356_v1  ;;  %v350_v6 = vld [vmem:[#allocation6 + $0x128] sm:$0xff]  ;;  %vm3754_vm2 = vcmask 261120   ;;  %s7184_s13 = scalar_lea.vmem [#allocation8], %s4015_s26 }
  0x4e   : > { %v353_v7 = vld [vmem:[#allocation6 + $0x140] sm:$0xff]  ;;  %v382_v8 = vpack.c.bf16 %v358_v5, %v355_v3  ;;  %v352_v11 = vld [vmem:[#allocation6 + $0x138] sm:$0xff]  ;;  %v347_v13 = vld [vmem:[#allocation6 + $0x110] sm:$0xff]  ;;  %s4101_s26 = sshll.u32 %s5510_s25, 11  ;;  %s3923_s8 = sshll.u32 %s7184_s13, 4  ;;  %s7221_s8 = int_to_ptr.vmem [resolvable:$true] %s3923_s8 }
  0x4f   : > { %v380_v9 = vpack.c.bf16 %v353_v7, %v350_v6  ;;  %v349_v10 = vld [vmem:[#allocation6 + $0x120] sm:$0xff]  ;;  %v344_v12 = vld [vmem:[#allocation6 + $0xf8] sm:$0xff]  ;;  %385 = vmatprep.subr.bf16.mxu0 %v383_v4  ;;  %v343_v16 = vld [vmem:[#allocation6 + $0xf0] sm:$0xff]  ;;  %s7219_s14 = scalar_lea.hbm %s7273_s6, %s4101_s26  ;;  %s3909_s25 = scalar_lea.sflag [#allocation5], %s5605_s20 }
  0x50   : > { %386 = vmatpush1.bf16.msra.mxu0 %v382_v8  ;;  %v379_v14 = vpack.c.bf16 %v352_v11, %v349_v10  ;;  %v377_v15 = vpack.c.bf16 %v347_v13, %v344_v12  ;;  %v346_v17 = vld [vmem:[#allocation6 + $0x108] sm:$0xff]  ;;  %v341_v19 = vld [vmem:[#allocation6 + $0xe0] sm:$0xff]  ;;  %v340_v23 = vld [vmem:[#allocation6 + $0xd8] sm:$0xff]  ;;  %s5372_s16 = scalar_lea.vmem %s7221_s8, 2048  ;;  %p7353_p11 = scmp.ne.s32.totalorder %s7299_s18, 0 }
  0x51   : > { %387 = vmatprep.subr.bf16.mxu0 %v380_v9  ;;  %v338_v18 = vld [vmem:[#allocation6 + $0xc8] sm:$0xff]  ;;  %v376_v20 = vpack.c.bf16 %v346_v17, %v343_v16  ;;  %v337_v22 = vld [vmem:[#allocation6 + $0xc0] sm:$0xff]  ;;  %v332_v24 = vld [vmem:[#allocation6 + $0x98] sm:$0xff]  ;;  %p5373_p3 = scmp.ne.s32.totalorder %s7221_s8, %s5372_s16  ;;  %s5451_s30 = smov [#allocation8]  }
  0x52   : > { %v374_v21 = vpack.c.bf16 %v341_v19, %v338_v18  ;;  %v335_v25 = vld [vmem:[#allocation6 + $0xb0] sm:$0xff]  ;;  %v289_v26 = vld [vmem:[%s5611_s19] sm:$0xff]  ;;  %v290_v27 = vld [vmem:[%s5611_s19 + $0x8] sm:$0xff]  ;;  %v373_v28 = vpack.c.bf16 %v340_v23, %v337_v22 }
  0x53   : > { %v331_v29 = vld [vmem:[#allocation6 + $0x90] sm:$0xff]  ;;  %v334_v30 = vld [vmem:[#allocation6 + $0xa8] sm:$0xff]  ;;  %v305_v31 = vpack.c.bf16 %v290_v27, %v289_v26  ;;  %v357_v32 = vld [vmem:[#allocation6 + $0x160] sm:$0xff]  ;;  %v371_v33 = vpack.c.bf16 %v335_v25, %v332_v24  ;;  %p5374_p7 = pnand %p5373_p3, %p7353_p11 }
  0x54   : > { %388 = vmatpush1.bf16.msra.mxu0 %v379_v14  ;;  %v360_v34 = vld [vmem:[#allocation6 + $0x178] sm:$0xff]  ;;  %v351_v35 = vld [vmem:[#allocation6 + $0x130] sm:$0xff]  ;;  %v354_v36 = vld [vmem:[#allocation6 + $0x148] sm:$0xff]  ;;  %v370_v43 = vpack.c.bf16 %v334_v30, %v331_v29 }
  0x55   : > { %389 = vmatprep.subr.bf16.mxu0 %v377_v15  ;;  %v326_v37 = vld [vmem:[#allocation6 + $0x68] sm:$0xff]  ;;  %v329_v38 = vld [vmem:[#allocation6 + $0x80] sm:$0xff]  ;;  %v384_v39 = vpack.c.bf16 %v360_v34, %v357_v32  ;;  %v381_v40 = vpack.c.bf16 %v354_v36, %v351_v35  ;;  %4304 = vmatprep.mubr.bf16.mxu1 %v305_v31  ;;  %v348_v42 = vld [vmem:[#allocation6 + $0x118] sm:$0xff]  ;;  %p5375_p12 = pneg %p5374_p7 }
  0x56   : > { %v345_v41 = vld [vmem:[#allocation6 + $0x100] sm:$0xff]  ;;  %v368_v44 = vpack.c.bf16 %v329_v38, %v326_v37  ;;  %v328_v46 = vld [vmem:[#allocation6 + $0x78] sm:$0xff]  ;;  %v323_v48 = vld [vmem:[#allocation6 + $0x50] sm:$0xff] }
  0x57   : > { %4288 = vmatprep.subr.bf16.mxu1 %v384_v39  ;;  %v325_v45 = vld [vmem:[#allocation6 + $0x60] sm:$0xff]  ;;  %v320_v47 = vld [vmem:[#allocation6 + $0x38] sm:$0xff]  ;;  %v378_v49 = vpack.c.bf16 %v348_v42, %v345_v41  ;;  %v339_v50 = vld [vmem:[#allocation6 + $0xd0] sm:$0xff] }
  0x58   : > { %390 = vmatpush1.bf16.msra.mxu0 %v376_v20  ;;  %4289 = vmatpush3.bf16.msra.mxu1 %v384_v39  ;;  %v342_v51 = vld [vmem:[#allocation6 + $0xe8] sm:$0xff]  ;;  %v367_v52 = vpack.c.bf16 %v328_v46, %v325_v45  ;;  %v365_v53 = vpack.c.bf16 %v323_v48, %v320_v47  ;;  %v319_v54 = vld [vmem:[#allocation6 + $0x30] sm:$0xff]  ;;  %v317_v57 = vld [vmem:[#allocation6 + $0x20] sm:$0xff] }
  0x59   : > { %391 = vmatprep.subr.bf16.mxu0 %v374_v21  ;;  %4290 = vmatprep.subr.bf16.mxu1 %v381_v40  ;;  %v322_v55 = vld [vmem:[#allocation6 + $0x48] sm:$0xff]  ;;  %v375_v58 = vpack.c.bf16 %v342_v51, %v339_v50  ;;  %v333_v59 = vld [vmem:[#allocation6 + $0xa0] sm:$0xff]  ;;  %v336_v60 = vld [vmem:[#allocation6 + $0xb8] sm:$0xff] }
  0x5a   : > { %v314_v56 = vld [vmem:[#allocation6 + $0x8] sm:$0xff]  ;;  %v364_v61 = vpack.c.bf16 %v322_v55, %v319_v54  ;;  %v313_v63 = vld [vmem:[#allocation6] sm:$0xff]  ;;  %v316_v1 = vld [vmem:[#allocation6 + $0x18] sm:$0xff]  ;;  %v372_v2 = vpack.c.bf16 %v336_v60, %v333_v59 }
  0x5b   : > { %v362_v62 = vpack.c.bf16 %v317_v57, %v314_v56  ;;  %v327_v3 = vld [vmem:[#allocation6 + $0x70] sm:$0xff]  ;;  %v330_v4 = vld [vmem:[#allocation6 + $0x88] sm:$0xff]  ;;  %v361_v5 = vpack.c.bf16 %v316_v1, %v313_v63  ;;  %v292_v8 = vld [vmem:[%s5611_s19 + $0x18] sm:$0xff] }
  0x5c   : > { %392 = vmatpush1.bf16.msra.mxu0 %v373_v28  ;;  %4291 = vmatpush3.bf16.msra.mxu1 %v381_v40  ;;  %v369_v6 = vpack.c.bf16 %v330_v4, %v327_v3  ;;  %v291_v7 = vld [vmem:[%s5611_s19 + $0x10] sm:$0xff]  ;;  %v293_v10 = vld [vmem:[%s5611_s19 + $0x20] sm:$0xff]  ;;  %v294_v11 = vld [vmem:[%s5611_s19 + $0x28] sm:$0xff] }
  0x5d   : > { %393 = vmatprep.subr.bf16.mxu0 %v371_v33  ;;  %4292 = vmatprep.subr.bf16.mxu1 %v378_v49  ;;  %v306_v9 = vpack.c.bf16 %v292_v8, %v291_v7  ;;  %v307_v12 = vpack.c.bf16 %v294_v11, %v293_v10  ;;  %v321_v13 = vld [vmem:[#allocation6 + $0x40] sm:$0xff]  ;;  %v324_v14 = vld [vmem:[#allocation6 + $0x58] sm:$0xff]  ;;  %v315_v16 = vld [vmem:[#allocation6 + $0x10] sm:$0xff] }
  0x5e   : > { %v366_v15 = vpack.c.bf16 %v324_v14, %v321_v13  ;;  %v318_v17 = vld [vmem:[#allocation6 + $0x28] sm:$0xff]  ;;  %v295_v19 = vld [vmem:[%s5611_s19 + $0x30] sm:$0xff]  ;;  %v296_v20 = vld [vmem:[%s5611_s19 + $0x38] sm:$0xff] }
  0x5f   : > { %v363_v18 = vpack.c.bf16 %v318_v17, %v315_v16  ;;  %v297_v21 = vld [vmem:[%s5611_s19 + $0x40] sm:$0xff]  ;;  %v308_v22 = vpack.c.bf16 %v296_v20, %v295_v19  ;;  %v298_v23 = vld [vmem:[%s5611_s19 + $0x48] sm:$0xff]  ;;  %v299_v25 = vld [vmem:[%s5611_s19 + $0x50] sm:$0xff] }
  0x60   : > { %394 = vmatpush1.bf16.msra.mxu0 %v370_v43  ;;  %4293 = vmatpush3.bf16.msra.mxu1 %v378_v49  ;;  %v309_v24 = vpack.c.bf16 %v298_v23, %v297_v21  ;;  %v300_v26 = vld [vmem:[%s5611_s19 + $0x58] sm:$0xff]  ;;  %v301_v27 = vld [vmem:[%s5611_s19 + $0x60] sm:$0xff]  ;;  %v302_v28 = vld [vmem:[%s5611_s19 + $0x68] sm:$0xff] }
  0x61   : > { %395 = vmatprep.subr.bf16.mxu0 %v368_v44  ;;  %4294 = vmatprep.subr.bf16.mxu1 %v375_v58  ;;  %v310_v29 = vpack.c.bf16 %v300_v26, %v299_v25  ;;  %v311_v30 = vpack.c.bf16 %v302_v28, %v301_v27  ;;  %v304_v32 = vld [vmem:[%s5611_s19 + $0x78] sm:$0xff] }
  0x64   : > { %396 = vmatpush1.bf16.msra.mxu0 %v367_v52  ;;  %4295 = vmatpush3.bf16.msra.mxu1 %v375_v58 }
  0x65   : > { %397 = vmatprep.subr.bf16.mxu0 %v365_v53  ;;  %4296 = vmatprep.subr.bf16.mxu1 %v372_v2 }
  0x68   : > { %398 = vmatpush1.bf16.msra.mxu0 %v364_v61  ;;  %4297 = vmatpush3.bf16.msra.mxu1 %v372_v2 }
  0x69   : > { %399 = vmatprep.subr.bf16.mxu0 %v362_v62  ;;  %4298 = vmatprep.subr.bf16.mxu1 %v369_v6 }
  0x6c   : > { %400 = vmatpush1.bf16.msra.mxu0 %v361_v5  ;;  %4299 = vmatpush3.bf16.msra.mxu1 %v369_v6 }
  0x6d   : > { %4300 = vmatprep.subr.bf16.mxu1 %v366_v15 }
  0x6f   : > { %418 = vmatmul.mubr.bf16.vlgmr.msra.gmra.mxu0 %v305_v31  ;;  %v303_v31 = vld [vmem:[%s5611_s19 + $0x70] sm:$0xff]  ;;  %s5376_s19 = sshll.u32 %s5451_s30, 4  ;;  %s5377_s19 = int_to_ptr.vmem [resolvable:$false] %s5376_s19 }
  0x70   : > { %427 = vmatprep.mubr.bf16.mxu0 %v5448_v0  ;;  %4301 = vmatpush3.bf16.msra.mxu1 %v366_v15  ;;  %v312_v33 = vpack.c.bf16 %v304_v32, %v303_v31  ;;  %s5378_s27 = scalar_lea.vmem %s5377_s19, 4096  ;;  %p5379_p10 = scmp.lt.s32.totalorder %s7221_s8, %s5377_s19 }
  0x71   : > { %4302 = vmatprep.subr.bf16.mxu1 %v363_v18  ;;  %p5380_p2 = scmp.lt.s32.totalorder %s5378_s27, %s5372_s16 }
  0x73   : > { %p5381_p13 = por %p5380_p2, %p5379_p10 }
  0x74   : > { %4303 = vmatpush3.bf16.msra.mxu1 %v363_v18 }
  0x75   : > { %p5382_p0 = pnand %p5381_p13, %p5375_p12 }
  0x77   : > { %428 = vmatmul.mubr.bf16.gmra.mxu0 %v306_v9  ;;  %4305 = vmatmul.mubr.bf16.vlgmr.msra.gmra.mxu1 %v306_v9 }
  0x78   : > { %437 = vmatprep.mubr.bf16.mxu0 %v5448_v0  ;;  %4308 = vmatprep.mubr.bf16.mxu1 %v307_v12 }
  0x7f   : > { %438 = vmatmul.mubr.bf16.gmra.mxu0 %v307_v12  ;;  %4309 = vmatmul.mubr.bf16.gmra.mxu1 %v308_v22 }
  0x80   : > { %447 = vmatprep.mubr.bf16.mxu0 %v5448_v0  ;;  %4312 = vmatprep.mubr.bf16.mxu1 %v309_v24 }
  0x87   : > { %448 = vmatmul.mubr.bf16.gmra.mxu0 %v308_v22  ;;  %4313 = vmatmul.mubr.bf16.gmra.mxu1 %v310_v29 }
  0x88   : > { %457 = vmatprep.mubr.bf16.mxu0 %v5448_v0  ;;  %4316 = vmatprep.mubr.bf16.mxu1 %v311_v30 }
  0x8f   : > { %458 = vmatmul.mubr.bf16.gmra.mxu0 %v309_v24  ;;  %4317 = vmatmul.mubr.bf16.gmra.mxu1 %v312_v33 }
  0x90   : > { %467 = vmatprep.mubr.bf16.mxu0 %v5448_v0 }
  0x97   : > { %468 = vmatmul.mubr.bf16.gmra.mxu0 %v310_v29 }
  0x98   : > { %477 = vmatprep.mubr.bf16.mxu0 %v5448_v0 }
  0x9f   : > { %478 = vmatmul.mubr.bf16.gmra.mxu0 %v311_v30 }
  0xa0   : > { %487 = vmatprep.mubr.bf16.mxu0 %v5448_v0 }
  0xa7   : > { %488 = vmatmul.mubr.bf16.gmra.mxu0 %v312_v33 }
 0x12f   : > { %v419_v34 = vpop.f32.mrf.mxu0 }
 0x130   : > { %v595_v37 = vmul.f32 0.25, %v419_v34 }
 0x131   : > { %v421_v35 = vpop.f32.mrf.mxu0 }
 0x133   : > { %v423_v36 = vpop.f32.mrf.mxu0 }
 0x134   : > { %v596_v38 = vmul.f32 0.25, %v423_v36 }
 0x135   : > { %v425_v39 = vpop.f32.mrf.mxu0 }
 0x136   : > { %v619_v40 = vpack.c.bf16 %v425_v39, %v421_v35  ;;  %v611_v41 = vpack.c.bf16 %v596_v38, %v595_v37 }
 0x137   : > { %v429_v42 = vpop.f32.mrf.mxu0  ;;  %v5645_v55 = vpop.f32.mrf.mxu1 }
 0x138   : > { %635 = vxpose.xlu0.c.b16.start.end [1/1] (short) %v611_v41, 128  ;;  %4320 = vmatprep.subr.bf16.mxu1 %v619_v40  ;;  %v597_v52 = vmul.f32 0.25, %v429_v42  ;;  %7305 = vst [vmem:[#allocation12_spill] sm:$0xff] %v5645_v55 }
 0x139   : > { %4321 = vmatpush3.bf16.msra.mxu1 %v619_v40  ;;  %v431_v43 = vpop.f32.mrf.mxu0  ;;  %v5647_v56 = vpop.f32.mrf.mxu1 }
 0x13a   : > { %7306 = vst [vmem:[#allocation13_spill] sm:$0xff] %v5647_v56 }
 0x13b   : > { %v433_v44 = vpop.f32.mrf.mxu0  ;;  %v5649_v57 = vpop.f32.mrf.mxu1 }
 0x13c   : > { %v598_v53 = vmul.f32 0.25, %v433_v44  ;;  %7307 = vst [vmem:[#allocation14_spill] sm:$0xff] %v5649_v57 }
 0x13d   : > { %v435_v45 = vpop.f32.mrf.mxu0  ;;  %v5653_v59 = vpop.f32.mrf.mxu1 }
 0x13e   : > { %v620_v46 = vpack.c.bf16 %v435_v45, %v431_v43  ;;  %v612_v54 = vpack.c.bf16 %v598_v53, %v597_v52  ;;  %7308 = vst [vmem:[#allocation15_spill] sm:$0xff] %v5653_v59 }
 0x13f   : > { %v439_v47 = vpop.f32.mrf.mxu0  ;;  %v5655_v60 = vpop.f32.mrf.mxu1 }
 0x140   : > { %4358 = vmatprep.subr.bf16.mxu1 %v620_v46  ;;  %v599_v48 = vmul.f32 0.25, %v439_v47  ;;  %7309 = vst [vmem:[#allocation16_spill] sm:$0xff] %v5655_v60 }
 0x141   : > { %v441_v0 = vpop.f32.mrf.mxu0  ;;  %v5657_v62 = vpop.f32.mrf.mxu1 }
 0x143   : > { %v443_v49 = vpop.f32.mrf.mxu0  ;;  %v5660_v1 = vpop.f32.mrf.mxu1 }
 0x144   : > { %v600_v50 = vmul.f32 0.25, %v443_v49  ;;  %7310 = vst [vmem:[#allocation17_spill] sm:$0xff] %v5660_v1 }
 0x145   : > { %v445_v63 = vpop.f32.mrf.mxu0  ;;  %v5664_v4 = vpop.f32.mrf.mxu1 }
 0x146   : > { %v613_v51 = vpack.c.bf16 %v600_v50, %v599_v48  ;;  %v621_v5 = vpack.c.bf16 %v445_v63, %v441_v0 }
 0x147   : > { %v5667_v6 = vpop.f32.mrf.mxu1 }
 0x148   : > { %1300 = vxpose.xlu1.c.b16.start.end [1/1] (short) %v613_v51, 128  ;;  %7311 = vst [vmem:[#allocation18_spill] sm:$0xff] %v5667_v6 }
 0x149   : > { %v5669_v8 = vpop.f32.mrf.mxu1 }
 0x14a   : > { %7312 = vst [vmem:[#allocation19_spill] sm:$0xff] %v5669_v8 }
 0x14b   : > { %v5672_v9 = vpop.f32.mrf.mxu1 }
 0x14c   : > { %7313 = vst [vmem:[#allocation20_spill] sm:$0xff] %v5672_v9 }
 0x14d   : > { %v5676_v12 = vpop.f32.mrf.mxu1 }
 0x14e   : > { %7314 = vst [vmem:[#allocation21_spill] sm:$0xff] %v5676_v12 }
 0x14f   : > { %v5679_v13 = vpop.f32.mrf.mxu1 }
 0x150   : > { %7315 = vst [vmem:[#allocation22_spill] sm:$0xff] %v5679_v13  ;;  %v449_v13 = vpop.f32.mrf.mxu0 }
 0x151   : > { %v5682_v15 = vpop.f32.mrf.mxu1  ;;  %v5800_v6 = vmul.f32 0.25, %v449_v13 }
 0x152   : > { %7316 = vst [vmem:[#allocation23_spill] sm:$0xff] %v5682_v15 }
 0x153   : > { %v5684_v16 = vpop.f32.mrf.mxu1 }
 0x154   : > { %7317 = vst [vmem:[#allocation24_spill] sm:$0xff] %v5684_v16  ;;  %v451_v16 = vpop.f32.mrf.mxu0 }
 0x155   : > { %968 = vxpose.xlu0.c.b16.start.end [1/1] (short) %v612_v54, 128  ;;  %v5707_v37 = vpop.f32.mrf.mxu1 }
 0x156   : > { %7318 = vst [vmem:[#allocation25_spill] sm:$0xff] %v5707_v37  ;;  %v453_v9 = vpop.f32.mrf.mxu0 }
 0x157   : > { %v5802_v37 = vmul.f32 0.25, %v453_v9 }
 0x158   : > { %v455_v15 = vpop.f32.mrf.mxu0 }
 0x159   : > { %v5806_v1 = vpack.c.bf16 %v455_v15, %v451_v16 }
 0x19a   : > { %v643_v61 = vpop.trf.xlu0 }
 0x19b   : > { %4322 = vmatprep.mubr.msk.bf16.mxu1 %vm651_vm0, %v643_v61 }
 0x19e   : > { %v644_v3 = vpop.trf.xlu0 }
 0x19f   : > { %4323 = vmatmul.mubr.msk.bf16.vlgmr.msra.gmra.mxu1 %vm651_vm0, %v644_v3 }
 0x1a0   : > { %4359 = vmatpush3.bf16.msra.mxu1 %v620_v46 }
 0x1a1   : > { %4396 = vmatprep.subr.bf16.mxu1 %v621_v5 }
 0x1a2   : > { %v645_v7 = vpop.trf.xlu0 }
 0x1a3   : > { %4326 = vmatprep.mubr.msk.bf16.mxu1 %vm651_vm0, %v645_v7 }
 0x1a6   : > { %v646_v11 = vpop.trf.xlu0 }
 0x1a7   : > { %4327 = vmatmul.mubr.msk.bf16.gmra.mxu1 %vm651_vm0, %v646_v11 }
 0x1aa   : > { %v647_v14 = vpop.trf.xlu0  ;;  %v1308_v25 = vpop.trf.xlu1 }
 0x1ab   : > { %4330 = vmatprep.mubr.msk.bf16.mxu1 %vm651_vm0, %v647_v14 }
 0x1ae   : > { %v648_v17 = vpop.trf.xlu0  ;;  %v1309_v28 = vpop.trf.xlu1 }
 0x1af   : > { %4331 = vmatmul.mubr.msk.bf16.gmra.mxu1 %vm651_vm0, %v648_v17 }
 0x1b2   : > { %v649_v19 = vpop.trf.xlu0  ;;  %v1310_v30 = vpop.trf.xlu1 }
 0x1b3   : > { %4334 = vmatprep.mubr.msk.bf16.mxu1 %vm651_vm0, %v649_v19 }
 0x1b6   : > { %v650_v20 = vpop.trf.xlu0  ;;  %v1311_v32 = vpop.trf.xlu1 }
 0x1b7   : > { %4335 = vmatmul.mubr.msk.bf16.gmra.mxu1 %vm651_vm0, %v650_v20 }
 0x1ba   : > { %v976_v21 = vpop.trf.xlu0  ;;  %v1312_v33 = vpop.trf.xlu1 }
 0x1bb   : > { %4360 = vmatprep.mubr.msk.bf16.mxu1 %vm651_vm0, %v976_v21 }
 0x1be   : > { %v977_v22 = vpop.trf.xlu0  ;;  %v1313_v34 = vpop.trf.xlu1 }
 0x1bf   : > { %4361 = vmatmul.mubr.msk.bf16.vlgmr.msra.gmra.mxu1 %vm651_vm0, %v977_v22 }
 0x1c0   : > { %4397 = vmatpush3.bf16.msra.mxu1 %v621_v5 }
 0x1c2   : > { %v978_v23 = vpop.trf.xlu0  ;;  %v1314_v35 = vpop.trf.xlu1 }
 0x1c3   : > { %4364 = vmatprep.mubr.msk.bf16.mxu1 %vm651_vm0, %v978_v23 }
 0x1c6   : > { %v979_v24 = vpop.trf.xlu0  ;;  %v1315_v36 = vpop.trf.xlu1 }
 0x1c7   : > { %4365 = vmatmul.mubr.msk.bf16.gmra.mxu1 %vm651_vm0, %v979_v24 }
 0x1ca   : > { %v980_v26 = vpop.trf.xlu0 }
 0x1cb   : > { %4368 = vmatprep.mubr.msk.bf16.mxu1 %vm651_vm0, %v980_v26 }
 0x1ce   : > { %v981_v27 = vpop.trf.xlu0 }
 0x1cf   : > { %4369 = vmatmul.mubr.msk.bf16.gmra.mxu1 %vm651_vm0, %v981_v27 }
 0x1d2   : > { %v982_v29 = vpop.trf.xlu0 }
 0x1d3   : > { %4372 = vmatprep.mubr.msk.bf16.mxu1 %vm651_vm0, %v982_v29 }
 0x1d6   : > { %v983_v31 = vpop.trf.xlu0 }
 0x1d7   : > { %4373 = vmatmul.mubr.msk.bf16.gmra.mxu1 %vm651_vm0, %v983_v31 }
 0x1d8   : > { %4398 = vmatprep.mubr.msk.bf16.mxu1 %vm651_vm0, %v1308_v25 }
 0x1df   : > { %4399 = vmatmul.mubr.msk.bf16.vlgmr.msra.gmra.mxu1 %vm651_vm0, %v1309_v28 }
 0x1e0   : > { %4402 = vmatprep.mubr.msk.bf16.mxu1 %vm651_vm0, %v1310_v30 }
 0x1e7   : > { %4403 = vmatmul.mubr.msk.bf16.gmra.mxu1 %vm651_vm0, %v1311_v32 }
 0x1e8   : > { %4406 = vmatprep.mubr.msk.bf16.mxu1 %vm651_vm0, %v1312_v33 }
 0x1ef   : > { %4407 = vmatmul.mubr.msk.bf16.gmra.mxu1 %vm651_vm0, %v1313_v34 }
 0x1f0   : > { %4410 = vmatprep.mubr.msk.bf16.mxu1 %vm651_vm0, %v1314_v35 }
 0x1f7   : > { %4411 = vmatmul.mubr.msk.bf16.gmra.mxu1 %vm651_vm0, %v1315_v36 }
 0x25f   : > { %v5709_v38 = vpop.f32.mrf.mxu1 }
 0x261   : > { %v5711_v39 = vpop.f32.mrf.mxu1 }
 0x263   : > { %v5713_v40 = vpop.f32.mrf.mxu1 }
 0x265   : > { %v5715_v41 = vpop.f32.mrf.mxu1 }
 0x267   : > { %v5717_v42 = vpop.f32.mrf.mxu1 }
 0x269   : > { %v5719_v43 = vpop.f32.mrf.mxu1 }
 0x26b   : > { %v5721_v44 = vpop.f32.mrf.mxu1 }
 0x26d   : > { %v5723_v45 = vpop.f32.mrf.mxu1 }
 0x26f   : > { %v5725_v46 = vpop.f32.mrf.mxu1 }
 0x271   : > { %v5727_v47 = vpop.f32.mrf.mxu1 }
 0x273   : > { %v5729_v0 = vpop.f32.mrf.mxu1 }
 0x275   : > { %v5731_v48 = vpop.f32.mrf.mxu1 }
 0x277   : > { %v5733_v49 = vpop.f32.mrf.mxu1 }
 0x279   : > { %v5735_v50 = vpop.f32.mrf.mxu1 }
 0x27b   : > { %v5737_v51 = vpop.f32.mrf.mxu1 }
 0x27d   : > { %v5739_v52 = vpop.f32.mrf.mxu1 }
 0x27f   : > { %v5741_v53 = vpop.f32.mrf.mxu1 }
 0x280   : > { %7319 = vst [vmem:[#allocation26_spill] sm:$0xff] %v5741_v53 }
 0x281   : > { %v5743_v54 = vpop.f32.mrf.mxu1 }
 0x282   : > { %7320 = vst [vmem:[#allocation27_spill] sm:$0xff] %v5743_v54 }
 0x283   : > { %v5745_v61 = vpop.f32.mrf.mxu1 }
 0x284   : > { %7321 = vst [vmem:[#allocation28_spill] sm:$0xff] %v5745_v61 }
 0x285   : > { %v5747_v63 = vpop.f32.mrf.mxu1 }
 0x286   : > { %7322 = vst [vmem:[#allocation29_spill] sm:$0xff] %v5747_v63 }
 0x287   : > { %v5749_v3 = vpop.f32.mrf.mxu1 }
 0x289   : > { %v5751_v5 = vpop.f32.mrf.mxu1 }
 0x28a   : > { %7323 = vst [vmem:[#allocation30_spill] sm:$0xff] %v5751_v5 }
 0x28b   : > { %v5753_v7 = vpop.f32.mrf.mxu1 }
 0x28d   : > { %v5755_v11 = vpop.f32.mrf.mxu1 }
 0x28e   : > { %7324 = vst [vmem:[#allocation31_spill] sm:$0xff] %v5755_v11 }
 0x28f   : > { %v5757_v14 = vpop.f32.mrf.mxu1 }
 0x291   : > { %v5759_v17 = vpop.f32.mrf.mxu1 }
 0x293   : > { %v5761_v19 = vpop.f32.mrf.mxu1 }
 0x295   : > { %v5763_v20 = vpop.f32.mrf.mxu1 }
 0x297   : > { %v5765_v21 = vpop.f32.mrf.mxu1 }
 0x299   : > { %v5767_v22 = vpop.f32.mrf.mxu1 }
 0x29b   : > { %v5769_v23 = vpop.f32.mrf.mxu1 }
 0x29d   : > { %v5771_v24 = vpop.f32.mrf.mxu1 }
 0x29f   : > { %v5773_v25 = vpop.f32.mrf.mxu1 }
 0x2a1   : > { %v5775_v26 = vpop.f32.mrf.mxu1 }
 0x2a3   : > { %v5777_v27 = vpop.f32.mrf.mxu1 }
 0x2a5   : > { %v5779_v28 = vpop.f32.mrf.mxu1 }
 0x2a7   : > { %v5781_v29 = vpop.f32.mrf.mxu1 }
 0x2a9   : > { %v5783_v30 = vpop.f32.mrf.mxu1 }
 0x2ab   : > { %v5785_v31 = vpop.f32.mrf.mxu1 }
 0x2ad   : > { %v5787_v32 = vpop.f32.mrf.mxu1 }
 0x2af   : > { %v4408_v33 = vpop.f32.mrf.mxu1 }
 0x2b1   : > { %v1406_v34 = vpop.f32.mrf.mxu1 }
 0x2b3   : > { %v4409_v35 = vpop.f32.mrf.mxu1 }
 0x2b5   : > { %v5789_v36 = vpop.f32.mrf.mxu1 }
 0x2b7   : > { %v4412_v18 = vpop.f32.mrf.mxu1 }
 0x2b8   : > { %1465 = vmax.xlane.f32.xlu1 %v4412_v18 }
 0x2b9   : > { %v1422_v10 = vpop.f32.mrf.mxu1 }
 0x2bb   : > { %v4413_v2 = vpop.f32.mrf.mxu1 }
 0x2bc   : > { %1461 = vmax.xlane.f32.xlu1 %v1422_v10  ;;  %1467 = vmax.xlane.f32.xlu0 %v4413_v2 }
 0x2bd   : > { %v1425_v58 = vpop.f32.mrf.mxu1 }
 0x2c0   : > { %1445 = vmax.xlane.f32.xlu0 %v5783_v30  ;;  %1463 = vmax.xlane.f32.xlu1 %v1425_v58 }
 0x2c4   : > { %1441 = vmax.xlane.f32.xlu0 %v5773_v25  ;;  %1457 = vmax.xlane.f32.xlu1 %v4408_v33 }
 0x2c8   : > { %1437 = vmax.xlane.f32.xlu0 %v5775_v26  ;;  %1459 = vmax.xlane.f32.xlu1 %v4409_v35 }
 0x2cc   : > { %1453 = vmax.xlane.f32.xlu1 %v1406_v34 }
 0x2d0   : > { %1455 = vmax.xlane.f32.xlu1 %v5789_v36 }
 0x2d4   : > { %1449 = vmax.xlane.f32.xlu1 %v5781_v29 }
 0x2d8   : > { %1451 = vmax.xlane.f32.xlu1 %v5785_v31 }
 0x2dc   : > { %1447 = vmax.xlane.f32.xlu1 %v5787_v32 }
 0x2e0   : > { %1443 = vmax.xlane.f32.xlu1 %v5777_v27 }
 0x2e4   : > { %1439 = vmax.xlane.f32.xlu1 %v5779_v28 }
 0x341   : > { %v1466_v12 = vpop.xlane.xlu1 %1465 }
 0x342   : > { %v1483_v8 = vsub.f32 %v4412_v18, %v1466_v12 }
 0x344   : > { %v1513_v55 = vmul.f32 1.442695, %v1483_v8 }
 0x345   : > { %v1462_v57 = vpop.xlane.xlu1 %1461  ;;  %v1468_v59 = vpop.xlane.xlu0 %1467 }
 0x346   : > { %4742 = vpow2.f32 %v1513_v55  ;;  %v1481_v56 = vsub.f32 %v1422_v10, %v1462_v57  ;;  %v1484_v63 = vsub.f32 %v4413_v2, %v1468_v59 }
 0x348   : > { %v1509_v54 = vmul.f32 1.442695, %v1481_v56  ;;  %v1515_v13 = vmul.f32 1.442695, %v1484_v63 }
 0x349   : > { %v1464_v61 = vpop.xlane.xlu1 %1463  ;;  %v1446_v56 = vpop.xlane.xlu0 %1445 }
 0x34a   : > { %4744 = vpow2.f32 %v1509_v54  ;;  %v1482_v9 = vsub.f32 %v1425_v58, %v1464_v61  ;;  %v1473_v61 = vsub.f32 %v5783_v30, %v1446_v56 }
 0x34b   : > { %4746 = vpow2.f32 %v1515_v13 }
 0x34c   : > { %v1511_v53 = vmul.f32 1.442695, %v1482_v9 }
 0x34d   : > { %v1458_v11 = vpop.xlane.xlu1 %1457 }
 0x34e   : > { %v1479_v5 = vsub.f32 %v4408_v33, %v1458_v11  ;;  %4748 = vpow2.f32 %v1511_v53  ;;  %v1442_v53 = vpop.xlane.xlu0 %1441 }
 0x350   : > { %v1505_v15 = vmul.f32 1.442695, %v1479_v5 }
 0x351   : > { %v1460_v16 = vpop.xlane.xlu1 %1459 }
 0x352   : > { %v1480_v60 = vsub.f32 %v4409_v35, %v1460_v16  ;;  %4750 = vpow2.f32 %v1505_v15  ;;  %v1471_v35 = vsub.f32 %v5773_v25, %v1442_v53  ;;  %v1438_v13 = vpop.xlane.xlu0 %1437 }
 0x353   : > { %v5808_v12 = vpop.eup %4742 }
 0x354   : > { %v1507_v8 = vmul.f32 1.442695, %v1480_v60  ;;  %1545 = vadd.xlane.f32.xlu0 %v5808_v12  ;;  %v1489_v16 = vmul.f32 1.442695, %v1471_v35 }
 0x355   : > { %v1454_v55 = vpop.xlane.xlu1 %1453 }
 0x356   : > { %v1477_v57 = vsub.f32 %v1406_v34, %v1454_v55  ;;  %4752 = vpow2.f32 %v1507_v8  ;;  %v1493_v34 = vmul.f32 1.442695, %v1473_v61 }
 0x357   : > { %v5811_v59 = vpop.eup %4744 }
 0x358   : > { %v5813_v58 = vpop.eup %4746  ;;  %v1501_v2 = vmul.f32 1.442695, %v1477_v57  ;;  %1541 = vadd.xlane.f32.xlu0 %v5811_v59 }
 0x359   : > { %1547 = vadd.xlane.f32.xlu1 %v5813_v58  ;;  %v1456_v10 = vpop.xlane.xlu1 %1455 }
 0x35a   : > { %4754 = vpow2.f32 %v1501_v2  ;;  %v1478_v18 = vsub.f32 %v5789_v36, %v1456_v10 }
 0x35b   : > { %v5818_v60 = vpop.eup %4748 }
 0x35c   : > { %v1503_v54 = vmul.f32 1.442695, %v1478_v18 }
 0x35d   : > { %1543 = vadd.xlane.f32.xlu1 %v5818_v60  ;;  %v1450_v63 = vpop.xlane.xlu1 %1449 }
 0x35e   : > { %4756 = vpow2.f32 %v1503_v54  ;;  %v1475_v5 = vsub.f32 %v5781_v29, %v1450_v63  ;;  %v1469_v29 = vsub.f32 %v5775_v26, %v1438_v13 }
 0x35f   : > { %v5823_v11 = vpop.eup %4750 }
 0x360   : > { %v1497_v33 = vmul.f32 1.442695, %v1475_v5  ;;  %1537 = vadd.xlane.f32.xlu0 %v5823_v11 }
 0x361   : > { %v1452_v36 = vpop.xlane.xlu1 %1451 }
 0x362   : > { %4758 = vpow2.f32 %v1497_v33  ;;  %v1476_v9 = vsub.f32 %v5785_v31, %v1452_v36  ;;  %v1485_v31 = vmul.f32 1.442695, %v1469_v29  ;;  %v459_v36 = vpop.f32.mrf.mxu0 }
 0x363   : > { %v5828_v30 = vpop.eup %4752  ;;  %4760 = vpow2.f32 %v1493_v34 }
 0x364   : > { %v1499_v15 = vmul.f32 1.442695, %v1476_v9  ;;  %1539 = vadd.xlane.f32.xlu1 %v5828_v30  ;;  %v5873_v13 = vpop.f32.mrf.mxu0 }
 0x365   : > { %v1448_v8 = vpop.xlane.xlu1 %1447 }
 0x366   : > { %4762 = vpow2.f32 %v1499_v15  ;;  %v1474_v25 = vsub.f32 %v5787_v32, %v1448_v8  ;;  %v463_v9 = vpop.f32.mrf.mxu0  ;;  %v603_v15 = vmul.f32 0.25, %v459_v36 }
 0x367   : > { %v5833_v55 = vpop.eup %4754  ;;  %4764 = vpow2.f32 %v1489_v16  ;;  %v604_v16 = vmul.f32 0.25, %v463_v9 }
 0x368   : > { %v1495_v56 = vmul.f32 1.442695, %v1474_v25  ;;  %1533 = vadd.xlane.f32.xlu0 %v5833_v55 }
 0x369   : > { %v1444_v57 = vpop.xlane.xlu1 %1443  ;;  %v615_v29 = vpack.c.bf16 %v604_v16, %v603_v15 }
 0x36a   : > { %4766 = vpow2.f32 %v1495_v56  ;;  %v1472_v2 = vsub.f32 %v5777_v27, %v1444_v57  ;;  %v7292_v27 = vmov 0.0  }
 0x36b   : > { %v5837_v10 = vpop.eup %4756  ;;  %4768 = vpow2.f32 %v1485_v31  ;;  %4414 = vmatprep.subr.bf16.mxu1 %v7292_v27  ;;  %4338 = vmatprep.subr.bf16.mxu0 %v7292_v27 }
 0x36c   : > { %v1491_v26 = vmul.f32 1.442695, %v1472_v2  ;;  %1535 = vadd.xlane.f32.xlu1 %v5837_v10  ;;  %4430 = vmatprep.mubr.msk.bf16.mxu1 %vm5450_vm1, %v7292_v27 }
 0x36d   : > { %v1440_v18 = vpop.xlane.xlu1 %1439  ;;  %4354 = vmatprep.mubr.msk.bf16.mxu0 %vm5450_vm1, %v7292_v27 }
 0x36e   : > { %4770 = vpow2.f32 %v1491_v26  ;;  %v1470_v32 = vsub.f32 %v5779_v28, %v1440_v18 }
 0x36f   : > { %v5841_v53 = vpop.eup %4758 }
 0x370   : > { %v1487_v54 = vmul.f32 1.442695, %v1470_v32  ;;  %1529 = vadd.xlane.f32.xlu0 %v5841_v53  ;;  %v5844_v61 = vpop.eup %4760 }
 0x372   : > { %4772 = vpow2.f32 %v1487_v54 }
 0x373   : > { %v5846_v63 = vpop.eup %4762 }
 0x374   : > { %1525 = vadd.xlane.f32.xlu0 %v5844_v61  ;;  %1531 = vadd.xlane.f32.xlu1 %v5846_v63  ;;  %v5852_v28 = vpop.eup %4764 }
 0x377   : > { %v5854_v5 = vpop.eup %4766 }
 0x378   : > { %1521 = vadd.xlane.f32.xlu0 %v5852_v28  ;;  %1527 = vadd.xlane.f32.xlu1 %v5854_v5  ;;  %v5858_v33 = vpop.eup %4768 }
 0x37b   : > { %v5860_v34 = vpop.eup %4770 }
 0x37c   : > { %1517 = vadd.xlane.f32.xlu0 %v5858_v33  ;;  %1523 = vadd.xlane.f32.xlu1 %v5860_v34 }
 0x37f   : > { %v5864_v35 = vpop.eup %4772 }
 0x380   : > { %1519 = vadd.xlane.f32.xlu1 %v5864_v35 }
 0x384   : > { %801 = vmax.xlane.f32.xlu1 %v5733_v49 }
 0x388   : > { %803 = vmax.xlane.f32.xlu1 %v5737_v51 }
 0x38c   : > { %797 = vmax.xlane.f32.xlu1 %v5735_v50 }
 0x390   : > { %799 = vmax.xlane.f32.xlu1 %v5739_v52 }
 0x394   : > { %793 = vmax.xlane.f32.xlu1 %v5725_v46 }
 0x398   : > { %795 = vmax.xlane.f32.xlu1 %v5729_v0 }
 0x39c   : > { %789 = vmax.xlane.f32.xlu1 %v5727_v47 }
 0x3a0   : > { %791 = vmax.xlane.f32.xlu1 %v5731_v48 }
 0x3a4   : > { %785 = vmax.xlane.f32.xlu1 %v5717_v42 }
 0x3a8   : > { %787 = vmax.xlane.f32.xlu1 %v5721_v44 }
 0x3a9   : > { %1964 = vxpose.xlu0.c.b16.start.end [1/1] (short) %v615_v29, 128 }
 0x3ac   : > { %781 = vmax.xlane.f32.xlu1 %v5719_v43 }
 0x3b0   : > { %777 = vmax.xlane.f32.xlu1 %v5709_v38 }
 0x3b4   : > { %779 = vmax.xlane.f32.xlu1 %v5713_v40 }
 0x3b8   : > { %773 = vmax.xlane.f32.xlu1 %v5711_v39 }
 0x3bc   : > { %775 = vmax.xlane.f32.xlu1 %v5715_v41 }
 0x3c0   : > { %1133 = vmax.xlane.f32.xlu1 %v5765_v21 }
 0x3c4   : > { %1135 = vmax.xlane.f32.xlu1 %v5769_v23 }
 0x3c8   : > { %1129 = vmax.xlane.f32.xlu1 %v5767_v22 }
 0x3cc   : > { %1131 = vmax.xlane.f32.xlu1 %v5771_v24 }
 0x3d0   : > { %1125 = vmax.xlane.f32.xlu1 %v5757_v14 }
 0x3d2   : > { %783 = vmax.xlane.f32.xlu0 %v5723_v45 }
 0x3d4   : > { %1127 = vmax.xlane.f32.xlu1 %v5761_v19 }
 0x3dd   : > { %v1546_v8 = vpop.xlane.xlu0 %1545 }
 0x3de   : > { %4774 = vrcp.f32 %v1546_v8 }
 0x3e1   : > { %v1542_v56 = vpop.xlane.xlu0 %1541 }
 0x3e2   : > { %v1548_v25 = vpop.xlane.xlu1 %1547 }
 0x3e3   : > { %4776 = vrcp.f32 %v1548_v25 }
 0x3e6   : > { %v1544_v31 = vpop.xlane.xlu1 %1543 }
 0x3e7   : > { %4778 = vrcp.f32 %v1544_v31 }
 0x3e8   : > { %4780 = vrcp.f32 %v1542_v56 }
 0x3e9   : > { %v1538_v2 = vpop.xlane.xlu0 %1537 }
 0x3eb   : > { %v4775_v57 = vpop.eup %4774 }
 0x3ec   : > { %v1579_v32 = vmul.f32 %v4775_v57, %v5808_v12 }
 0x3ed   : > { %v1540_v26 = vpop.xlane.xlu1 %1539 }
 0x3ee   : > { %4782 = vrcp.f32 %v1540_v26 }
 0x3ef   : > { %4784 = vrcp.f32 %v1538_v2 }
 0x3f0   : > { %v4777_v18 = vpop.eup %4776 }
 0x3f1   : > { %v1580_v54 = vmul.f32 %v4777_v18, %v5813_v58  ;;  %v1534_v29 = vpop.xlane.xlu0 %1533 }
 0x3f3   : > { %v1588_v36 = vpack.c.bf16 %v1580_v54, %v1579_v32 }
 0x3f4   : > { %v4779_v9 = vpop.eup %4778 }
 0x3f5   : > { %4415 = vmatpush3.bf16.xpose.msra.mxu1 %v1588_v36  ;;  %v1536_v15 = vpop.xlane.xlu1 %1535  ;;  %v4781_v16 = vpop.eup %4780  ;;  %v1578_v8 = vmul.f32 %v4779_v9, %v5818_v60 }
 0x3f6   : > { %4416 = vmatprep.subr.bf16.mxu1 %v7292_v27  ;;  %4786 = vrcp.f32 %v1536_v15  ;;  %v1577_v25 = vmul.f32 %v4781_v16, %v5811_v59 }
 0x3f7   : > { %4788 = vrcp.f32 %v1534_v29 }
 0x3f8   : > { %v1587_v56 = vpack.c.bf16 %v1578_v8, %v1577_v25 }
 0x3f9   : > { %v1530_v58 = vpop.xlane.xlu0 %1529 }
 0x3fb   : > { %v4783_v31 = vpop.eup %4782 }
 0x3fc   : > { %v4785_v57 = vpop.eup %4784  ;;  %v1576_v2 = vmul.f32 %v4783_v31, %v5828_v30 }
 0x3fd   : > { %4417 = vmatpush3.bf16.xpose.msra.mxu1 %v1587_v56  ;;  %v1532_v12 = vpop.xlane.xlu1 %1531  ;;  %v1575_v18 = vmul.f32 %v4785_v57, %v5823_v11  ;;  %v1526_v36 = vpop.xlane.xlu0 %1525 }
 0x3fe   : > { %4418 = vmatprep.subr.bf16.mxu1 %v7292_v27  ;;  %4790 = vrcp.f32 %v1532_v12 }
 0x3ff   : > { %4792 = vrcp.f32 %v1530_v58  ;;  %v1586_v32 = vpack.c.bf16 %v1576_v2, %v1575_v18 }
 0x401   : > { %v1528_v26 = vpop.xlane.xlu1 %1527  ;;  %v1522_v25 = vpop.xlane.xlu0 %1521 }
 0x402   : > { %4794 = vrcp.f32 %v1528_v26 }
 0x403   : > { %v4787_v60 = vpop.eup %4786  ;;  %4796 = vrcp.f32 %v1526_v36 }
 0x404   : > { %v4789_v59 = vpop.eup %4788  ;;  %v1574_v9 = vmul.f32 %v4787_v60, %v5837_v10 }
 0x405   : > { %4419 = vmatpush3.bf16.xpose.msra.mxu1 %v1586_v32  ;;  %v1524_v54 = vpop.xlane.xlu1 %1523  ;;  %v1573_v16 = vmul.f32 %v4789_v59, %v5833_v55 }
 0x406   : > { %4420 = vmatprep.subr.bf16.mxu1 %v7292_v27  ;;  %4798 = vrcp.f32 %v1524_v54 }
 0x407   : > { %v1585_v30 = vpack.c.bf16 %v1574_v9, %v1573_v16  ;;  %4800 = vrcp.f32 %v1522_v25 }
 0x409   : > { %v1520_v15 = vpop.xlane.xlu1 %1519 }
 0x40b   : > { %v4791_v29 = vpop.eup %4790 }
 0x40c   : > { %v4793_v11 = vpop.eup %4792  ;;  %v1572_v31 = vmul.f32 %v4791_v29, %v5846_v63 }
 0x40d   : > { %4421 = vmatpush3.bf16.xpose.msra.mxu1 %v1585_v30  ;;  %v802_v8 = vpop.xlane.xlu1 %801  ;;  %v1571_v57 = vmul.f32 %v4793_v11, %v5841_v53 }
 0x40e   : > { %v819_v56 = vsub.f32 %v5733_v49, %v802_v8  ;;  %4422 = vmatprep.subr.bf16.mxu1 %v7292_v27  ;;  %v1518_v49 = vpop.xlane.xlu0 %1517 }
 0x40f   : > { %v1584_v58 = vpack.c.bf16 %v1572_v31, %v1571_v57  ;;  %v4795_v2 = vpop.eup %4794 }
 0x410   : > { %v849_v12 = vmul.f32 1.442695, %v819_v56  ;;  %v4797_v32 = vpop.eup %4796  ;;  %v1570_v63 = vmul.f32 %v4795_v2, %v5854_v5 }
 0x411   : > { %v804_v10 = vpop.xlane.xlu1 %803 }
 0x412   : > { %4802 = vpow2.f32 %v849_v12  ;;  %v820_v55 = vsub.f32 %v5737_v51, %v804_v10  ;;  %v1569_v51 = vmul.f32 %v4797_v32, %v5844_v61 }
 0x413   : > { %v4799_v9 = vpop.eup %4798 }
 0x414   : > { %v851_v26 = vmul.f32 1.442695, %v820_v55  ;;  %v1583_v36 = vpack.c.bf16 %v1570_v63, %v1569_v51  ;;  %v4801_v29 = vpop.eup %4800 }
 0x415   : > { %4423 = vmatpush3.bf16.xpose.msra.mxu1 %v1584_v58  ;;  %v798_v18 = vpop.xlane.xlu1 %797  ;;  %v465_v58 = vpop.f32.mrf.mxu0 }
 0x416   : > { %4804 = vpow2.f32 %v851_v26  ;;  %v817_v60 = vsub.f32 %v5735_v50, %v798_v18  ;;  %4424 = vmatprep.subr.bf16.mxu1 %v7292_v27 }
 0x417   : > { %4806 = vrcp.f32 %v1520_v15  ;;  %v1568_v15 = vmul.f32 %v4799_v9, %v5860_v34 }
 0x418   : > { %v845_v54 = vmul.f32 1.442695, %v817_v60  ;;  %4808 = vrcp.f32 %v1518_v49  ;;  %v623_v49 = vpack.c.bf16 %v465_v58, %v5873_v13 }
 0x419   : > { %v800_v53 = vpop.xlane.xlu1 %799 }
 0x41a   : > { %4810 = vpow2.f32 %v845_v54  ;;  %v818_v59 = vsub.f32 %v5739_v52, %v800_v53  ;;  %v1567_v52 = vmul.f32 %v4801_v29, %v5852_v28  ;;  %v1972_v28 = vpop.trf.xlu0  ;;  %v629_v53 = vpack.c.bf16 %v5664_v4, %v5657_v62 }
 0x41c   : > { %v847_v16 = vmul.f32 1.442695, %v818_v59  ;;  %v1582_v56 = vpack.c.bf16 %v1568_v15, %v1567_v52 }
 0x41d   : > { %4425 = vmatpush3.bf16.xpose.msra.mxu1 %v1583_v36  ;;  %v794_v30 = vpop.xlane.xlu1 %793 }
 0x41e   : > { %4812 = vpow2.f32 %v847_v16  ;;  %v815_v50 = vsub.f32 %v5725_v46, %v794_v30  ;;  %4426 = vmatprep.subr.bf16.mxu1 %v7292_v27 }
 0x41f   : > { %v5918_v5 = vpop.eup %4802 }
 0x420   : > { %v841_v8 = vmul.f32 1.442695, %v815_v50  ;;  %881 = vadd.xlane.f32.xlu0 %v5918_v5 }
 0x421   : > { %v796_v61 = vpop.xlane.xlu1 %795 }
 0x422   : > { %4814 = vpow2.f32 %v841_v8  ;;  %v816_v11 = vsub.f32 %v5729_v0, %v796_v61  ;;  %v7328_v61 = vld [vmem:[#allocation28_spill] sm:$0xff] }
 0x423   : > { %v5924_v25 = vpop.eup %4804 }
 0x424   : > { %v4807_v31 = vpop.eup %4806  ;;  %v843_v46 = vmul.f32 1.442695, %v816_v11  ;;  %883 = vadd.xlane.f32.xlu1 %v5924_v25  ;;  %1121 = vmax.xlane.f32.xlu0 %v5759_v17 }
 0x425   : > { %4427 = vmatpush3.bf16.xpose.msra.mxu1 %v1582_v56  ;;  %v790_v34 = vpop.xlane.xlu1 %789  ;;  %v4809_v12 = vpop.eup %4808  ;;  %v1566_v0 = vmul.f32 %v4807_v31, %v5864_v35  ;;  %v7329_v56 = vld [vmem:[#allocation27_spill] sm:$0xff] }
 0x426   : > { %4816 = vpow2.f32 %v843_v46  ;;  %v813_v10 = vsub.f32 %v5727_v47, %v790_v34  ;;  %4428 = vmatprep.subr.bf16.mxu1 %v7292_v27  ;;  %v1565_v26 = vmul.f32 %v4809_v12, %v5858_v33  ;;  %v1973_v35 = vpop.trf.xlu0  ;;  %v7330_v46 = vld [vmem:[#allocation29_spill] sm:$0xff] }
 0x427   : > { %v5930_v57 = vpop.eup %4810 }
 0x428   : > { %v837_v55 = vmul.f32 1.442695, %v813_v10  ;;  %1123 = vmax.xlane.f32.xlu1 %v5763_v20  ;;  %877 = vadd.xlane.f32.xlu0 %v5930_v57  ;;  %v1581_v32 = vpack.c.bf16 %v1566_v0, %v1565_v26 }
 0x429   : > { %v792_v2 = vpop.xlane.xlu1 %791 }
 0x42a   : > { %4818 = vpow2.f32 %v837_v55  ;;  %v814_v18 = vsub.f32 %v5731_v48, %v792_v2  ;;  %v1974_v59 = vpop.trf.xlu0 }
 0x42b   : > { %v5937_v47 = vpop.eup %4812 }
 0x42c   : > { %v839_v60 = vmul.f32 1.442695, %v814_v18  ;;  %879 = vadd.xlane.f32.xlu1 %v5937_v47  ;;  %1117 = vmax.xlane.f32.xlu0 %v5749_v3 }
 0x42d   : > { %4429 = vmatpush3.bf16.xpose.msra.mxu1 %v1581_v32  ;;  %v786_v63 = vpop.xlane.xlu1 %785 }
 0x42e   : > { %4820 = vpow2.f32 %v839_v60  ;;  %v811_v54 = vsub.f32 %v5717_v42, %v786_v63  ;;  %4472 = vmatprep.subr.bf16.mxu1 %v623_v49  ;;  %v7325_v42 = vld [vmem:[#allocation30_spill] sm:$0xff]  ;;  %v1975_v29 = vpop.trf.xlu0 }
 0x42f   : > { %v5943_v33 = vpop.eup %4814 }
 0x430   : > { %v833_v48 = vmul.f32 1.442695, %v811_v54  ;;  %1119 = vmax.xlane.f32.xlu1 %v5753_v7  ;;  %873 = vadd.xlane.f32.xlu0 %v5943_v33 }
 0x431   : > { %v788_v13 = vpop.xlane.xlu1 %787 }
 0x432   : > { %4822 = vpow2.f32 %v833_v48  ;;  %v812_v51 = vsub.f32 %v5721_v44, %v788_v13  ;;  %v7326_v44 = vld [vmem:[#allocation31_spill] sm:$0xff]  ;;  %v1976_v15 = vpop.trf.xlu0 }
 0x433   : > { %v5950_v36 = vpop.eup %4816 }
 0x434   : > { %v835_v9 = vmul.f32 1.442695, %v812_v51  ;;  %4431 = vmatmul.mubr.bf16.vlgmr.msra.gmra.mxu1 %v629_v53  ;;  %875 = vadd.xlane.f32.xlu1 %v5950_v36 }
 0x435   : > { %1113 = vmax.xlane.f32.xlu0 %v7325_v42  ;;  %4473 = vmatpush3.bf16.msra.mxu1 %v623_v49  ;;  %v782_v16 = vpop.xlane.xlu1 %781 }
 0x436   : > { %4824 = vpow2.f32 %v835_v9  ;;  %v809_v30 = vsub.f32 %v5719_v43, %v782_v16  ;;  %4474 = vmatprep.mubr.msk.bf16.mxu1 %vm651_vm0, %v1972_v28  ;;  %4490 = vmatprep.subr.bf16.mxu1 %v7292_v27  ;;  %v7327_v43 = vld [vmem:[#allocation26_spill] sm:$0xff]  ;;  %v1977_v11 = vpop.trf.xlu0 }
 0x437   : > { %v5957_v62 = vpop.eup %4818 }
 0x438   : > { %v829_v4 = vmul.f32 1.442695, %v809_v30  ;;  %1115 = vmax.xlane.f32.xlu1 %v7326_v44 }
 0x439   : > { %869 = vadd.xlane.f32.xlu0 %v5957_v62  ;;  %v5990_v58 = vpop.xlane.xlu1 %777 }
 0x43a   : > { %4826 = vpow2.f32 %v829_v4  ;;  %v1978_v34 = vpop.trf.xlu0 }
 0x43b   : > { %v5961_v50 = vpop.eup %4820 }
 0x43c   : > { %4475 = vmatmul.mubr.msk.bf16.vlgmr.msra.gmra.mxu1 %vm651_vm0, %v1973_v35  ;;  %871 = vadd.xlane.f32.xlu1 %v5961_v50 }
 0x43d   : > { %1109 = vmax.xlane.f32.xlu0 %v7327_v43  ;;  %4478 = vmatprep.mubr.msk.bf16.mxu1 %vm651_vm0, %v1974_v59  ;;  %v5992_v2 = vpop.xlane.xlu1 %779 }
 0x43e   : > { %v1979_v12 = vpop.trf.xlu0 }
 0x43f   : > { %v5967_v8 = vpop.eup %4822 }
 0x440   : > { %1111 = vmax.xlane.f32.xlu1 %v7328_v61 }
 0x441   : > { %865 = vadd.xlane.f32.xlu0 %v5967_v8  ;;  %v5994_v26 = vpop.xlane.xlu1 %773 }
 0x443   : > { %v5971_v52 = vpop.eup %4824 }
 0x444   : > { %4479 = vmatmul.mubr.msk.bf16.gmra.mxu1 %vm651_vm0, %v1975_v29  ;;  %867 = vadd.xlane.f32.xlu1 %v5971_v52 }
 0x445   : > { %1105 = vmax.xlane.f32.xlu0 %v7329_v56  ;;  %4482 = vmatprep.mubr.msk.bf16.mxu1 %vm651_vm0, %v1976_v15  ;;  %v5996_v18 = vpop.xlane.xlu1 %775 }
 0x447   : > { %v5977_v31 = vpop.eup %4826 }
 0x448   : > { %1107 = vmax.xlane.f32.xlu1 %v7330_v46 }
 0x449   : > { %861 = vadd.xlane.f32.xlu0 %v5977_v31  ;;  %v5998_v32 = vpop.xlane.xlu1 %1133 }
 0x44c   : > { %4483 = vmatmul.mubr.msk.bf16.gmra.mxu1 %vm651_vm0, %v1977_v11 }
 0x44d   : > { %4486 = vmatprep.mubr.msk.bf16.mxu1 %vm651_vm0, %v1978_v34  ;;  %v6000_v49 = vpop.xlane.xlu1 %1135 }
 0x451   : > { %v6002_v60 = vpop.xlane.xlu1 %1129 }
 0x454   : > { %4487 = vmatmul.mubr.msk.bf16.gmra.mxu1 %vm651_vm0, %v1979_v12 }
 0x455   : > { %4506 = vmatprep.mubr.msk.bf16.mxu1 %vm5450_vm1, %v7292_v27 }
 0x45b   : > { %v784_v10 = vpop.xlane.xlu0 %783 }
 0x45c   : > { %v810_v28 = vsub.f32 %v5723_v45, %v784_v10  ;;  %v6004_v45 = vpop.xlane.xlu1 %1131 }
 0x45e   : > { %v831_v0 = vmul.f32 1.442695, %v810_v28 }
 0x460   : > { %4828 = vpow2.f32 %v831_v0  ;;  %v6006_v35 = vpop.xlane.xlu1 %1125 }
 0x464   : > { %v6008_v63 = vpop.xlane.xlu1 %1127 }
 0x46d   : > { %v5987_v55 = vpop.eup %4828 }
 0x46e   : > { %863 = vadd.xlane.f32.xlu1 %v5987_v55 }
 0x4a9   : > { %v882_v54 = vpop.xlane.xlu0 %881 }
 0x4aa   : > { %4830 = vrcp.f32 %v882_v54 }
 0x4ad   : > { %v884_v48 = vpop.xlane.xlu1 %883  ;;  %v6010_v13 = vpop.xlane.xlu0 %1121 }
 0x4ae   : > { %4832 = vrcp.f32 %v884_v48 }
 0x4b1   : > { %v6012_v53 = vpop.xlane.xlu1 %1123  ;;  %v878_v51 = vpop.xlane.xlu0 %877 }
 0x4b2   : > { %4834 = vrcp.f32 %v878_v51 }
 0x4b5   : > { %v880_v59 = vpop.xlane.xlu1 %879  ;;  %v6014_v9 = vpop.xlane.xlu0 %1117 }
 0x4b6   : > { %4836 = vrcp.f32 %v880_v59 }
 0x4b7   : > { %v4831_v16 = vpop.eup %4830 }
 0x4b8   : > { %v915_v15 = vmul.f32 %v4831_v16, %v5918_v5 }
 0x4b9   : > { %v6016_v30 = vpop.xlane.xlu1 %1119  ;;  %v874_v4 = vpop.xlane.xlu0 %873 }
 0x4ba   : > { %4838 = vrcp.f32 %v874_v4 }
 0x4bb   : > { %v4833_v29 = vpop.eup %4832 }
 0x4bc   : > { %v916_v11 = vmul.f32 %v4833_v29, %v5924_v25 }
 0x4bd   : > { %v876_v34 = vpop.xlane.xlu1 %875 }
 0x4be   : > { %v6020_v12 = vpop.xlane.xlu0 %1113  ;;  %v924_v10 = vpack.c.bf16 %v916_v11, %v915_v15  ;;  %4840 = vrcp.f32 %v876_v34 }
 0x4bf   : > { %v4835_v0 = vpop.eup %4834 }
 0x4c0   : > { %4339 = vmatpush3.bf16.xpose.msra.mxu0 %v924_v10  ;;  %v913_v5 = vmul.f32 %v4835_v0, %v5930_v57 }
 0x4c1   : > { %v6022_v28 = vpop.xlane.xlu1 %1115  ;;  %4340 = vmatprep.subr.bf16.mxu0 %v7292_v27 }
 0x4c2   : > { %v870_v54 = vpop.xlane.xlu0 %869 }
 0x4c3   : > { %v4837_v48 = vpop.eup %4836  ;;  %4842 = vrcp.f32 %v870_v54 }
 0x4c4   : > { %v914_v25 = vmul.f32 %v4837_v48, %v5937_v47 }
 0x4c5   : > { %v872_v51 = vpop.xlane.xlu1 %871 }
 0x4c6   : > { %v6027_v59 = vpop.xlane.xlu0 %1109  ;;  %4844 = vrcp.f32 %v872_v51  ;;  %v923_v16 = vpack.c.bf16 %v914_v25, %v913_v5 }
 0x4c7   : > { %v4839_v29 = vpop.eup %4838 }
 0x4c8   : > { %4341 = vmatpush3.bf16.xpose.msra.mxu0 %v923_v16  ;;  %v911_v10 = vmul.f32 %v4839_v29, %v5943_v33 }
 0x4c9   : > { %v6029_v4 = vpop.xlane.xlu1 %1111  ;;  %4342 = vmatprep.subr.bf16.mxu0 %v7292_v27 }
 0x4ca   : > { %v866_v15 = vpop.xlane.xlu0 %865 }
 0x4cb   : > { %v4841_v11 = vpop.eup %4840  ;;  %4846 = vrcp.f32 %v866_v15 }
 0x4cc   : > { %v912_v57 = vmul.f32 %v4841_v11, %v5950_v36 }
 0x4cd   : > { %v868_v34 = vpop.xlane.xlu1 %867 }
 0x4ce   : > { %4848 = vrcp.f32 %v868_v34  ;;  %v922_v47 = vpack.c.bf16 %v912_v57, %v911_v10  ;;  %v6041_v15 = vpop.xlane.xlu0 %1105 }
 0x4d0   : > { %4343 = vmatpush3.bf16.xpose.msra.mxu0 %v922_v47  ;;  %v4843_v0 = vpop.eup %4842 }
 0x4d1   : > { %4344 = vmatprep.subr.bf16.mxu0 %v7292_v27  ;;  %v909_v48 = vmul.f32 %v4843_v0, %v5957_v62  ;;  %v6043_v11 = vpop.xlane.xlu1 %1107 }
 0x4d2   : > { %v862_v62 = vpop.xlane.xlu0 %861 }
 0x4d3   : > { %v4845_v54 = vpop.eup %4844  ;;  %4850 = vrcp.f32 %v862_v62  ;;  %v808_v62 = vsub.f32 %v5713_v40, %v5992_v2  ;;  %v806_v40 = vsub.f32 %v5715_v41, %v5996_v18  ;;  %v1152_v41 = vsub.f32 %v5769_v23, %v6000_v49 }
 0x4d4   : > { %v910_v51 = vmul.f32 %v4845_v54, %v5961_v50  ;;  %v1150_v49 = vsub.f32 %v5771_v24, %v6004_v45  ;;  %v1148_v45 = vsub.f32 %v5761_v19, %v6008_v63  ;;  %v1146_v19 = vsub.f32 %v5763_v20, %v6012_v53 }
 0x4d5   : > { %v1144_v20 = vsub.f32 %v5753_v7, %v6016_v30  ;;  %v1142_v7 = vsub.f32 %v7326_v44, %v6022_v28  ;;  %v1137_v44 = vsub.f32 %v7329_v56, %v6041_v15 }
 0x4d6   : > { %v921_v5 = vpack.c.bf16 %v910_v51, %v909_v48  ;;  %v807_v51 = vsub.f32 %v5709_v38, %v5990_v58  ;;  %v827_v38 = vmul.f32 1.442695, %v808_v62  ;;  %v805_v58 = vsub.f32 %v5711_v39, %v5994_v26 }
 0x4d7   : > { %v1151_v39 = vsub.f32 %v5765_v21, %v5998_v32  ;;  %v1183_v21 = vmul.f32 1.442695, %v1152_v41  ;;  %v1149_v32 = vsub.f32 %v5767_v22, %v6002_v60  ;;  %v1179_v22 = vmul.f32 1.442695, %v1150_v49 }
 0x4d8   : > { %4345 = vmatpush3.bf16.xpose.msra.mxu0 %v921_v5  ;;  %v4847_v25 = vpop.eup %4846  ;;  %v1147_v60 = vsub.f32 %v5757_v14, %v6006_v35  ;;  %v1145_v14 = vsub.f32 %v5759_v17, %v6010_v13  ;;  %v1143_v17 = vsub.f32 %v5749_v3, %v6014_v9  ;;  %v1167_v41 = vmul.f32 1.442695, %v1144_v20 }
 0x4d9   : > { %4346 = vmatprep.subr.bf16.mxu0 %v7292_v27  ;;  %v907_v33 = vmul.f32 %v4847_v25, %v5967_v8  ;;  %v1177_v23 = vmul.f32 1.442695, %v1149_v32  ;;  %v1141_v3 = vsub.f32 %v7325_v42, %v6020_v12  ;;  %v1163_v42 = vmul.f32 1.442695, %v1142_v7 }
 0x4da   : > { %v1173_v24 = vmul.f32 1.442695, %v1147_v60  ;;  %v1140_v12 = vsub.f32 %v7328_v61, %v6029_v4  ;;  %v1138_v49 = vsub.f32 %v7330_v46, %v6043_v11 }
 0x4db   : > { %v4849_v16 = vpop.eup %4848  ;;  %v1161_v30 = vmul.f32 1.442695, %v1141_v3 }
 0x4dc   : > { %v908_v36 = vmul.f32 %v4849_v16, %v5971_v52  ;;  %v1155_v61 = vmul.f32 1.442695, %v1138_v49 }
 0x4de   : > { %v920_v29 = vpack.c.bf16 %v908_v36, %v907_v33 }
 0x4e0   : > { %4347 = vmatpush3.bf16.xpose.msra.mxu0 %v920_v29  ;;  %v4851_v48 = vpop.eup %4850  ;;  %v825_v29 = vmul.f32 1.442695, %v807_v51 }
 0x4e1   : > { %4348 = vmatprep.subr.bf16.mxu0 %v7292_v27  ;;  %v905_v33 = vmul.f32 %v4851_v48, %v5977_v31  ;;  %v821_v48 = vmul.f32 1.442695, %v805_v58 }
 0x4f4   : > { %v6045_v50 = vpop.f32.mrf.mxu1 }
 0x4f6   : > { %v4432_v34 = vpop.f32.mrf.mxu1 }
 0x4f7   : > { %v864_v10 = vpop.xlane.xlu1 %863 }
 0x4f8   : > { %v6047_v57 = vpop.f32.mrf.mxu1  ;;  %4852 = vrcp.f32 %v864_v10 }
 0x4f9   : > { %4854 = vpow2.f32 %v825_v29 }
 0x4fa   : > { %v4433_v8 = vpop.f32.mrf.mxu1  ;;  %4856 = vpow2.f32 %v827_v38 }
 0x4fb   : > { %4858 = vpow2.f32 %v821_v48 }
 0x4fc   : > { %v6049_v47 = vpop.f32.mrf.mxu1 }
 0x4fe   : > { %v6051_v52 = vpop.f32.mrf.mxu1 }
 0x500   : > { %v6053_v0 = vpop.f32.mrf.mxu1 }
 0x502   : > { %v6055_v54 = vpop.f32.mrf.mxu1 }
 0x504   : > { %v6059_v5 = vpop.f32.mrf.mxu1 }
 0x505   : > { %v4853_v25 = vpop.eup %4852 }
 0x506   : > { %v6061_v16 = vpop.f32.mrf.mxu1  ;;  %v906_v36 = vmul.f32 %v4853_v25, %v5987_v55  ;;  %v823_v25 = vmul.f32 1.442695, %v806_v40  ;;  %v6093_v18 = vpop.eup %4854  ;;  %v1175_v40 = vmul.f32 1.442695, %v1148_v45 }
 0x507   : > { %v6101_v62 = vpop.eup %4856  ;;  %v469_v45 = vpop.f32.mrf.mxu0 }
 0x508   : > { %v6067_v34 = vpop.f32.mrf.mxu1  ;;  %v919_v10 = vpack.c.bf16 %v906_v36, %v905_v33  ;;  %4860 = vpow2.f32 %v823_v25  ;;  %v1181_v36 = vmul.f32 1.442695, %v1151_v39  ;;  %v1169_v25 = vmul.f32 1.442695, %v1145_v14 }
 0x509   : > { %v1171_v39 = vmul.f32 1.442695, %v1146_v19  ;;  %v6200_v14 = vmul.f32 0.25, %v469_v45 }
 0x50a   : > { %v6069_v8 = vpop.f32.mrf.mxu1  ;;  %4349 = vmatpush3.bf16.xpose.msra.mxu0 %v919_v10  ;;  %4862 = vpow2.f32 %v1181_v36  ;;  %v6107_v10 = vpop.eup %4858  ;;  %v1165_v36 = vmul.f32 1.442695, %v1143_v17 }
 0x50b   : > { %4350 = vmatprep.subr.bf16.mxu0 %v7292_v27  ;;  %4864 = vpow2.f32 %v1183_v21  ;;  %v1139_v21 = vsub.f32 %v7327_v43, %v6027_v59  ;;  %v1159_v43 = vmul.f32 1.442695, %v1140_v12  ;;  %v1153_v59 = vmul.f32 1.442695, %v1137_v44 }
 0x50c   : > { %v6074_v31 = vpop.f32.mrf.mxu1  ;;  %4866 = vpow2.f32 %v1177_v23 }
 0x50d   : > { %4868 = vpow2.f32 %v1179_v22  ;;  %v1157_v23 = vmul.f32 1.442695, %v1139_v21 }
 0x50e   : > { %v6076_v55 = vpop.f32.mrf.mxu1  ;;  %4870 = vpow2.f32 %v1173_v24 }
 0x50f   : > { %4872 = vpow2.f32 %v1175_v40  ;;  %v471_v40 = vpop.f32.mrf.mxu0 }
 0x510   : > { %v6080_v2 = vpop.f32.mrf.mxu1  ;;  %4874 = vpow2.f32 %v1169_v25 }
 0x511   : > { %4876 = vpow2.f32 %v1171_v39  ;;  %v473_v25 = vpop.f32.mrf.mxu0 }
 0x512   : > { %v6082_v51 = vpop.f32.mrf.mxu1  ;;  %4878 = vpow2.f32 %v1165_v36  ;;  %v6202_v19 = vmul.f32 0.25, %v473_v25 }
 0x513   : > { %4880 = vpow2.f32 %v1167_v41  ;;  %v475_v39 = vpop.f32.mrf.mxu0 }
 0x514   : > { %v6086_v26 = vpop.f32.mrf.mxu1  ;;  %4882 = vpow2.f32 %v1161_v30  ;;  %v6206_v36 = vpack.c.bf16 %v475_v39, %v471_v40 }
 0x515   : > { %2129 = vmax.xlane.f32.xlu0 %v6086_v26  ;;  %v6115_v58 = vpop.eup %4860  ;;  %4884 = vpow2.f32 %v1163_v42 }
 0x516   : > { %v6089_v33 = vpop.f32.mrf.mxu1  ;;  %4886 = vpow2.f32 %v1157_v23 }
 0x517   : > { %v6121_v48 = vpop.eup %4862  ;;  %4888 = vpow2.f32 %v1159_v43 }
 0x518   : > { %v6095_v29 = vpop.f32.mrf.mxu1  ;;  %v6127_v35 = vpop.eup %4864  ;;  %4890 = vpow2.f32 %v1153_v59 }
 0x519   : > { %857 = vadd.xlane.f32.xlu0 %v6093_v18  ;;  %2131 = vmax.xlane.f32.xlu1 %v6095_v29  ;;  %v6133_v63 = vpop.eup %4866  ;;  %4892 = vpow2.f32 %v1155_v61 }
 0x51a   : > { %v6109_v38 = vpop.f32.mrf.mxu1  ;;  %v6139_v13 = vpop.eup %4868 }
 0x51b   : > { %v6145_v53 = vpop.eup %4870 }
 0x51c   : > { %v6151_v9 = vpop.eup %4872 }
 0x51d   : > { %2125 = vmax.xlane.f32.xlu0 %v6089_v33  ;;  %859 = vadd.xlane.f32.xlu1 %v6101_v62  ;;  %v6159_v32 = vpop.eup %4874 }
 0x51e   : > { %v6167_v28 = vpop.eup %4876 }
 0x51f   : > { %v6173_v22 = vpop.eup %4878 }
 0x520   : > { %v6177_v56 = vpop.eup %4880 }
 0x521   : > { %853 = vadd.xlane.f32.xlu0 %v6107_v10  ;;  %2127 = vmax.xlane.f32.xlu1 %v6109_v38  ;;  %v6181_v4 = vpop.eup %4882 }
 0x522   : > { %v6185_v46 = vpop.eup %4884 }
 0x523   : > { %v6187_v15 = vpop.eup %4886 }
 0x524   : > { %v6191_v11 = vpop.eup %4888 }
 0x525   : > { %2121 = vmax.xlane.f32.xlu0 %v6074_v31  ;;  %855 = vadd.xlane.f32.xlu1 %v6115_v58  ;;  %v6193_v60 = vpop.eup %4890 }
 0x526   : > { %v6197_v24 = vpop.eup %4892 }
 0x529   : > { %1213 = vadd.xlane.f32.xlu0 %v6121_v48  ;;  %2123 = vmax.xlane.f32.xlu1 %v6080_v2 }
 0x52d   : > { %2117 = vmax.xlane.f32.xlu0 %v6076_v55  ;;  %1215 = vadd.xlane.f32.xlu1 %v6127_v35 }
 0x531   : > { %1209 = vadd.xlane.f32.xlu0 %v6133_v63  ;;  %2119 = vmax.xlane.f32.xlu1 %v6082_v51 }
 0x535   : > { %2113 = vmax.xlane.f32.xlu0 %v6059_v5  ;;  %1211 = vadd.xlane.f32.xlu1 %v6139_v13 }
 0x539   : > { %1205 = vadd.xlane.f32.xlu0 %v6145_v53  ;;  %2115 = vmax.xlane.f32.xlu1 %v6067_v34 }
 0x53d   : > { %2109 = vmax.xlane.f32.xlu0 %v6061_v16  ;;  %1207 = vadd.xlane.f32.xlu1 %v6151_v9 }
 0x541   : > { %1201 = vadd.xlane.f32.xlu0 %v6159_v32  ;;  %2111 = vmax.xlane.f32.xlu1 %v6069_v8 }
 0x545   : > { %2105 = vmax.xlane.f32.xlu0 %v6049_v47  ;;  %1203 = vadd.xlane.f32.xlu1 %v6167_v28 }
 0x549   : > { %1197 = vadd.xlane.f32.xlu0 %v6173_v22  ;;  %2107 = vmax.xlane.f32.xlu1 %v6053_v0 }
 0x54d   : > { %2101 = vmax.xlane.f32.xlu0 %v6051_v52  ;;  %1199 = vadd.xlane.f32.xlu1 %v6177_v56 }
 0x551   : > { %1193 = vadd.xlane.f32.xlu0 %v6181_v4  ;;  %2103 = vmax.xlane.f32.xlu1 %v6055_v54 }
 0x555   : > { %1189 = vadd.xlane.f32.xlu0 %v6187_v15  ;;  %1195 = vadd.xlane.f32.xlu1 %v6185_v46 }
 0x559   : > { %1185 = vadd.xlane.f32.xlu0 %v6193_v60  ;;  %1191 = vadd.xlane.f32.xlu1 %v6191_v11 }
 0x55d   : > { %1187 = vadd.xlane.f32.xlu1 %v6197_v24 }
 0x59e   : > { %v2130_v20 = vpop.xlane.xlu0 %2129 }
 0x59f   : > { %v2147_v41 = vsub.f32 %v6086_v26, %v2130_v20 }
 0x5a1   : > { %v2177_v3 = vmul.f32 1.442695, %v2147_v41 }
 0x5a2   : > { %v858_v7 = vpop.xlane.xlu0 %857  ;;  %v2132_v30 = vpop.xlane.xlu1 %2131 }
 0x5a3   : > { %4894 = vpow2.f32 %v2177_v3  ;;  %v2148_v21 = vsub.f32 %v6095_v29, %v2132_v30 }
 0x5a4   : > { %4896 = vrcp.f32 %v858_v7 }
 0x5a5   : > { %v2179_v42 = vmul.f32 1.442695, %v2148_v21 }
 0x5a6   : > { %v2126_v12 = vpop.xlane.xlu0 %2125  ;;  %v860_v23 = vpop.xlane.xlu1 %859 }
 0x5a7   : > { %4898 = vpow2.f32 %v2179_v42  ;;  %v2145_v44 = vsub.f32 %v6089_v33, %v2126_v12 }
 0x5a8   : > { %4900 = vrcp.f32 %v860_v23 }
 0x5a9   : > { %v2173_v43 = vmul.f32 1.442695, %v2145_v44 }
 0x5aa   : > { %v854_v59 = vpop.xlane.xlu0 %853  ;;  %v2128_v49 = vpop.xlane.xlu1 %2127 }
 0x5ab   : > { %4902 = vpow2.f32 %v2173_v43  ;;  %v2146_v26 = vsub.f32 %v6109_v38, %v2128_v49 }
 0x5ac   : > { %4904 = vrcp.f32 %v854_v59 }
 0x5ad   : > { %v2175_v61 = vmul.f32 1.442695, %v2146_v26 }
 0x5ae   : > { %v2122_v45 = vpop.xlane.xlu0 %2121  ;;  %v856_v40 = vpop.xlane.xlu1 %855 }
 0x5af   : > { %4906 = vpow2.f32 %v2175_v61  ;;  %v2143_v29 = vsub.f32 %v6074_v31, %v2122_v45 }
 0x5b0   : > { %v6213_v25 = vpop.eup %4894  ;;  %4908 = vrcp.f32 %v856_v40 }
 0x5b1   : > { %v2169_v39 = vmul.f32 1.442695, %v2143_v29  ;;  %2209 = vadd.xlane.f32.xlu0 %v6213_v25  ;;  %v4897_v41 = vpop.eup %4896 }
 0x5b2   : > { %v1214_v33 = vpop.xlane.xlu0 %1213  ;;  %v2124_v20 = vpop.xlane.xlu1 %2123  ;;  %v903_v42 = vmul.f32 %v4897_v41, %v6093_v18 }
 0x5b3   : > { %4910 = vpow2.f32 %v2169_v39  ;;  %v2144_v3 = vsub.f32 %v6080_v2, %v2124_v20 }
 0x5b4   : > { %v6217_v38 = vpop.eup %4898  ;;  %4912 = vrcp.f32 %v1214_v33 }
 0x5b5   : > { %v4901_v7 = vpop.eup %4900  ;;  %v2171_v30 = vmul.f32 1.442695, %v2144_v3  ;;  %2211 = vadd.xlane.f32.xlu1 %v6217_v38 }
 0x5b6   : > { %v2118_v31 = vpop.xlane.xlu0 %2117  ;;  %v1216_v21 = vpop.xlane.xlu1 %1215  ;;  %v904_v12 = vmul.f32 %v4901_v7, %v6101_v62 }
 0x5b7   : > { %4914 = vpow2.f32 %v2171_v30  ;;  %v2141_v23 = vsub.f32 %v6076_v55, %v2118_v31 }
 0x5b8   : > { %v6223_v44 = vpop.eup %4902  ;;  %4916 = vrcp.f32 %v1216_v21  ;;  %v918_v2 = vpack.c.bf16 %v904_v12, %v903_v42 }
 0x5b9   : > { %v2165_v43 = vmul.f32 1.442695, %v2141_v23  ;;  %2205 = vadd.xlane.f32.xlu0 %v6223_v44  ;;  %v4905_v26 = vpop.eup %4904 }
 0x5ba   : > { %4351 = vmatpush3.bf16.xpose.msra.mxu0 %v918_v2  ;;  %v1210_v59 = vpop.xlane.xlu0 %1209  ;;  %v2120_v49 = vpop.xlane.xlu1 %2119  ;;  %v901_v29 = vmul.f32 %v4905_v26, %v6107_v10  ;;  %v7331_v2 = vld [vmem:[#allocation13_spill] sm:$0xff] }
 0x5bb   : > { %4918 = vpow2.f32 %v2165_v43  ;;  %v2142_v61 = vsub.f32 %v6082_v51, %v2120_v49  ;;  %4352 = vmatprep.subr.bf16.mxu0 %v7292_v27  ;;  %v7332_v43 = vld [vmem:[#allocation15_spill] sm:$0xff] }
 0x5bc   : > { %v6228_v18 = vpop.eup %4906  ;;  %4920 = vrcp.f32 %v1210_v59  ;;  %v627_v59 = vpack.c.bf16 %v7332_v43, %v7331_v2 }
 0x5bd   : > { %v4909_v62 = vpop.eup %4908  ;;  %v2167_v55 = vmul.f32 1.442695, %v2142_v61  ;;  %2207 = vadd.xlane.f32.xlu1 %v6228_v18 }
 0x5be   : > { %v2114_v45 = vpop.xlane.xlu0 %2113  ;;  %v1212_v40 = vpop.xlane.xlu1 %1211  ;;  %v902_v39 = vmul.f32 %v4909_v62, %v6115_v58 }
 0x5bf   : > { %4922 = vpow2.f32 %v2167_v55  ;;  %v2139_v33 = vsub.f32 %v6059_v5, %v2114_v45 }
 0x5c0   : > { %v6234_v20 = vpop.eup %4910  ;;  %4924 = vrcp.f32 %v1212_v40  ;;  %v917_v51 = vpack.c.bf16 %v902_v39, %v901_v29 }
 0x5c1   : > { %v2161_v41 = vmul.f32 1.442695, %v2139_v33  ;;  %2201 = vadd.xlane.f32.xlu0 %v6234_v20  ;;  %v4913_v30 = vpop.eup %4912 }
 0x5c2   : > { %4353 = vmatpush3.bf16.xpose.msra.mxu0 %v917_v51  ;;  %v1206_v3 = vpop.xlane.xlu0 %1205  ;;  %v2116_v7 = vpop.xlane.xlu1 %2115  ;;  %v1247_v12 = vmul.f32 %v4913_v30, %v6121_v48 }
 0x5c3   : > { %4926 = vpow2.f32 %v2161_v41  ;;  %v2140_v31 = vsub.f32 %v6067_v34, %v2116_v7  ;;  %4376 = vmatprep.subr.bf16.mxu0 %v7292_v27 }
 0x5c4   : > { %v6239_v10 = vpop.eup %4914  ;;  %4928 = vrcp.f32 %v1206_v3 }
 0x5c5   : > { %v4917_v58 = vpop.eup %4916  ;;  %v2163_v5 = vmul.f32 1.442695, %v2140_v31  ;;  %2203 = vadd.xlane.f32.xlu1 %v6239_v10 }
 0x5c6   : > { %v2110_v21 = vpop.xlane.xlu0 %2109  ;;  %v1208_v42 = vpop.xlane.xlu1 %1207  ;;  %v1248_v23 = vmul.f32 %v4917_v58, %v6127_v35 }
 0x5c7   : > { %4930 = vpow2.f32 %v2163_v5  ;;  %v2137_v34 = vsub.f32 %v6061_v16, %v2110_v21 }
 0x5c8   : > { %v6247_v49 = vpop.eup %4918  ;;  %4932 = vrcp.f32 %v1208_v42  ;;  %v1256_v26 = vpack.c.bf16 %v1248_v23, %v1247_v12 }
 0x5c9   : > { %v2157_v61 = vmul.f32 1.442695, %v2137_v34  ;;  %4355 = vmatmul.mubr.bf16.vlgmr.msra.gmra.mxu0 %v627_v59  ;;  %2197 = vadd.xlane.f32.xlu0 %v6247_v49  ;;  %v4921_v48 = vpop.eup %4920 }
 0x5ca   : > { %4377 = vmatpush3.bf16.xpose.msra.mxu0 %v1256_v26  ;;  %v1202_v62 = vpop.xlane.xlu0 %1201  ;;  %v2112_v55 = vpop.xlane.xlu1 %2111  ;;  %4392 = vmatprep.mubr.msk.bf16.mxu0 %vm5450_vm1, %v7292_v27  ;;  %v1245_v33 = vmul.f32 %v4921_v48, %v6133_v63 }
 0x5cb   : > { %4934 = vpow2.f32 %v2157_v61  ;;  %v2138_v35 = vsub.f32 %v6069_v8, %v2112_v55  ;;  %4378 = vmatprep.subr.bf16.mxu0 %v7292_v27 }
 0x5cc   : > { %v6254_v16 = vpop.eup %4922  ;;  %4936 = vrcp.f32 %v1202_v62 }
 0x5cd   : > { %v4925_v45 = vpop.eup %4924  ;;  %v2159_v40 = vmul.f32 1.442695, %v2138_v35  ;;  %2199 = vadd.xlane.f32.xlu1 %v6254_v16 }
 0x5ce   : > { %v2106_v29 = vpop.xlane.xlu0 %2105  ;;  %v1204_v39 = vpop.xlane.xlu1 %1203  ;;  %v1246_v51 = vmul.f32 %v4925_v45, %v6139_v13 }
 0x5cf   : > { %4938 = vpow2.f32 %v2159_v40  ;;  %v2135_v41 = vsub.f32 %v6049_v47, %v2106_v29 }
 0x5d0   : > { %v6260_v3 = vpop.eup %4926  ;;  %4940 = vrcp.f32 %v1204_v39  ;;  %v1255_v8 = vpack.c.bf16 %v1246_v51, %v1245_v33 }
 0x5d1   : > { %v2153_v7 = vmul.f32 1.442695, %v2135_v41  ;;  %2193 = vadd.xlane.f32.xlu0 %v6260_v3  ;;  %v4929_v58 = vpop.eup %4928 }
 0x5d2   : > { %4379 = vmatpush3.bf16.xpose.msra.mxu0 %v1255_v8  ;;  %v1198_v30 = vpop.xlane.xlu0 %1197  ;;  %v2108_v31 = vpop.xlane.xlu1 %2107  ;;  %v1243_v12 = vmul.f32 %v4929_v58, %v6145_v53 }
 0x5d3   : > { %4942 = vpow2.f32 %v2153_v7  ;;  %v2136_v5 = vsub.f32 %v6053_v0, %v2108_v31  ;;  %4380 = vmatprep.subr.bf16.mxu0 %v7292_v27 }
 0x5d4   : > { %v6265_v63 = vpop.eup %4930  ;;  %4944 = vrcp.f32 %v1198_v30 }
 0x5d5   : > { %v4933_v13 = vpop.eup %4932  ;;  %v2155_v47 = vmul.f32 1.442695, %v2136_v5  ;;  %2195 = vadd.xlane.f32.xlu1 %v6265_v63 }
 0x5d6   : > { %v2102_v21 = vpop.xlane.xlu0 %2101  ;;  %v1200_v42 = vpop.xlane.xlu1 %1199  ;;  %v1244_v23 = vmul.f32 %v4933_v13, %v6151_v9 }
 0x5d7   : > { %4946 = vpow2.f32 %v2155_v47  ;;  %v2133_v2 = vsub.f32 %v6051_v52, %v2102_v21  ;;  %v479_v21 = vpop.f32.mrf.mxu0 }
 0x5d8   : > { %v6271_v43 = vpop.eup %4934  ;;  %4948 = vrcp.f32 %v1200_v42  ;;  %v1254_v0 = vpack.c.bf16 %v1244_v23, %v1243_v12 }
 0x5d9   : > { %v2149_v59 = vmul.f32 1.442695, %v2133_v2  ;;  %2189 = vadd.xlane.f32.xlu0 %v6271_v43  ;;  %v4937_v26 = vpop.eup %4936  ;;  %v6302_v2 = vpop.f32.mrf.mxu0 }
 0x5da   : > { %4381 = vmatpush3.bf16.xpose.msra.mxu0 %v1254_v0  ;;  %v2104_v34 = vpop.xlane.xlu1 %2103  ;;  %v1194_v61 = vpop.xlane.xlu0 %1193  ;;  %v1241_v48 = vmul.f32 %v4937_v26, %v6159_v32 }
 0x5db   : > { %4950 = vpow2.f32 %v2149_v59  ;;  %v2134_v62 = vsub.f32 %v6055_v54, %v2104_v34  ;;  %4382 = vmatprep.subr.bf16.mxu0 %v7292_v27  ;;  %v483_v34 = vpop.f32.mrf.mxu0 }
 0x5dc   : > { %v6276_v53 = vpop.eup %4938  ;;  %4952 = vrcp.f32 %v1194_v61 }
 0x5dd   : > { %v4941_v9 = vpop.eup %4940  ;;  %v2151_v52 = vmul.f32 1.442695, %v2134_v62  ;;  %2191 = vadd.xlane.f32.xlu1 %v6276_v53  ;;  %v6306_v26 = vpop.f32.mrf.mxu0 }
 0x5de   : > { %v1196_v55 = vpop.xlane.xlu1 %1195  ;;  %v1242_v35 = vmul.f32 %v4941_v9, %v6167_v28  ;;  %v1190_v33 = vpop.xlane.xlu0 %1189 }
 0x5df   : > { %4954 = vpow2.f32 %v2151_v52  ;;  %v489_v62 = vpop.f32.mrf.mxu0 }
 0x5e0   : > { %v6281_v45 = vpop.eup %4942  ;;  %v1253_v40 = vpack.c.bf16 %v1242_v35, %v1241_v48  ;;  %4956 = vrcp.f32 %v1196_v55  ;;  %v7334_v35 = vld [vmem:[#allocation12_spill] sm:$0xff] }
 0x5e1   : > { %2185 = vadd.xlane.f32.xlu0 %v6281_v45  ;;  %v4945_v29 = vpop.eup %4944 }
 0x5e2   : > { %4383 = vmatpush3.bf16.xpose.msra.mxu0 %v1253_v40  ;;  %v1192_v54 = vpop.xlane.xlu1 %1191  ;;  %v1239_v32 = vmul.f32 %v4945_v29, %v6173_v22  ;;  %v1186_v58 = vpop.xlane.xlu0 %1185  ;;  %v7336_v29 = vpack.c.bf16 %v5802_v37, %v5800_v6 }
 0x5e3   : > { %4384 = vmatprep.subr.bf16.mxu0 %v7292_v27  ;;  %4958 = vrcp.f32 %v1192_v54  ;;  %v608_v54 = vmul.f32 0.25, %v483_v34 }
 0x5e4   : > { %v6285_v39 = vpop.eup %4946  ;;  %4960 = vrcp.f32 %v1190_v33 }
 0x5e5   : > { %v4949_v51 = vpop.eup %4948  ;;  %2187 = vadd.xlane.f32.xlu1 %v6285_v39 }
 0x5e6   : > { %v1240_v28 = vmul.f32 %v4949_v51, %v6177_v56  ;;  %v1188_v7 = vpop.xlane.xlu1 %1187 }
 0x5e7   : > { %4962 = vrcp.f32 %v1188_v7 }
 0x5e8   : > { %v6290_v41 = vpop.eup %4950  ;;  %v1252_v8 = vpack.c.bf16 %v1240_v28, %v1239_v32  ;;  %4964 = vrcp.f32 %v1186_v58 }
 0x5e9   : > { %2181 = vadd.xlane.f32.xlu0 %v6290_v41  ;;  %v4953_v30 = vpop.eup %4952 }
 0x5ea   : > { %4385 = vmatpush3.bf16.xpose.msra.mxu0 %v1252_v8  ;;  %v1237_v56 = vmul.f32 %v4953_v30, %v6181_v4 }
 0x5eb   : > { %4386 = vmatprep.subr.bf16.mxu0 %v7292_v27 }
 0x5ec   : > { %v6294_v31 = vpop.eup %4954 }
 0x5ed   : > { %2183 = vadd.xlane.f32.xlu1 %v6294_v31  ;;  %v4957_v22 = vpop.eup %4956 }
 0x5ee   : > { %v1238_v5 = vmul.f32 %v4957_v22, %v6185_v46 }
 0x5f0   : > { %v1251_v13 = vpack.c.bf16 %v1238_v5, %v1237_v56  ;;  %v4959_v47 = vpop.eup %4958 }
 0x5f1   : > { %v4961_v42 = vpop.eup %4960  ;;  %v1236_v12 = vmul.f32 %v4959_v47, %v6191_v11  ;;  %v6309_v11 = vpop.f32.mrf.mxu0 }
 0x5f2   : > { %4387 = vmatpush3.bf16.xpose.msra.mxu0 %v1251_v13  ;;  %v1235_v23 = vmul.f32 %v4961_v42, %v6187_v15  ;;  %v6311_v15 = vmul.f32 0.25, %v489_v62 }
 0x5f3   : > { %4388 = vmatprep.subr.bf16.mxu0 %v7292_v27  ;;  %v493_v52 = vpop.f32.mrf.mxu0 }
 0x5f4   : > { %v1250_v0 = vpack.c.bf16 %v1236_v12, %v1235_v23  ;;  %v4963_v59 = vpop.eup %4962  ;;  %v6314_v55 = vmul.f32 0.25, %v493_v52 }
 0x5f5   : > { %v4965_v4 = vpop.eup %4964  ;;  %v1234_v46 = vmul.f32 %v4963_v59, %v6197_v24  ;;  %v7333_v24 = vld [vmem:[#allocation14_spill] sm:$0xff] }
 0x5f6   : > { %v1233_v61 = vmul.f32 %v4965_v4, %v6193_v60  ;;  %v7335_v40 = vpack.c.bf16 %v7333_v24, %v7334_v35  ;;  %v607_v60 = vmul.f32 0.25, %v479_v21 }
 0x5f8   : > { %v1249_v9 = vpack.c.bf16 %v1234_v46, %v1233_v61  ;;  %v617_v33 = vpack.c.bf16 %v608_v54, %v607_v60 }
 0x5fa   : > { %4389 = vmatpush3.bf16.xpose.msra.mxu0 %v1250_v0 }
 0x5fb   : > { %4390 = vmatprep.subr.bf16.mxu0 %v7292_v27 }
 0x602   : > { %4391 = vmatpush3.bf16.xpose.msra.mxu0 %v1249_v9 }
 0x603   : > { %4434 = vmatprep.subr.bf16.mxu0 %v5806_v1 }
 0x609   : > { %4393 = vmatmul.mubr.bf16.vlgmr.msra.gmra.mxu0 %v7335_v40 }
 0x60a   : > { %4435 = vmatpush3.bf16.msra.mxu0 %v5806_v1 }
 0x60b   : > { %4452 = vmatprep.subr.bf16.mxu0 %v7292_v27 }
 0x616   : > { %1632 = vxpose.xlu0.c.b16.start.end [1/1] (short) %v7336_v29, 128 }
 0x61a   : > { %2628 = vxpose.xlu1.c.b16.start.end [1/1] (short) %v617_v33, 128 }
 0x63a   : > { %v2210_v51 = vpop.xlane.xlu0 %2209 }
 0x63b   : > { %4966 = vrcp.f32 %v2210_v51 }
 0x63e   : > { %v2212_v32 = vpop.xlane.xlu1 %2211 }
 0x63f   : > { %4968 = vrcp.f32 %v2212_v32 }
 0x642   : > { %v2206_v28 = vpop.xlane.xlu0 %2205 }
 0x643   : > { %4970 = vrcp.f32 %v2206_v28 }
 0x646   : > { %v2208_v8 = vpop.xlane.xlu1 %2207 }
 0x647   : > { %4972 = vrcp.f32 %v2208_v8 }
 0x648   : > { %v4967_v7 = vpop.eup %4966 }
 0x649   : > { %v2243_v58 = vmul.f32 %v4967_v7, %v6213_v25 }
 0x64a   : > { %v2202_v1 = vpop.xlane.xlu0 %2201 }
 0x64b   : > { %4974 = vrcp.f32 %v2202_v1 }
 0x64c   : > { %v4969_v30 = vpop.eup %4968 }
 0x64d   : > { %v2244_v22 = vmul.f32 %v4969_v30, %v6217_v38 }
 0x64e   : > { %v2204_v6 = vpop.xlane.xlu1 %2203 }
 0x64f   : > { %4976 = vrcp.f32 %v2204_v6  ;;  %v2252_v37 = vpack.c.bf16 %v2244_v22, %v2243_v58 }
 0x650   : > { %v4971_v56 = vpop.eup %4970 }
 0x651   : > { %4491 = vmatpush3.bf16.xpose.msra.mxu1 %v2252_v37  ;;  %v2241_v47 = vmul.f32 %v4971_v56, %v6223_v44  ;;  %v6351_v56 = vpop.f32.mrf.mxu0 }
 0x652   : > { %v2198_v5 = vpop.xlane.xlu0 %2197  ;;  %4492 = vmatprep.subr.bf16.mxu1 %v7292_v27 }
 0x653   : > { %4978 = vrcp.f32 %v2198_v5 }
 0x654   : > { %v4973_v13 = vpop.eup %4972 }
 0x655   : > { %v2242_v21 = vmul.f32 %v4973_v13, %v6228_v18 }
 0x656   : > { %v2200_v42 = vpop.xlane.xlu1 %2199 }
 0x657   : > { %4980 = vrcp.f32 %v2200_v42  ;;  %v2251_v12 = vpack.c.bf16 %v2242_v21, %v2241_v47 }
 0x658   : > { %v4975_v25 = vpop.eup %4974 }
 0x659   : > { %4493 = vmatpush3.bf16.xpose.msra.mxu1 %v2251_v12  ;;  %v2239_v0 = vmul.f32 %v4975_v25, %v6234_v20 }
 0x65a   : > { %v2194_v38 = vpop.xlane.xlu0 %2193  ;;  %4494 = vmatprep.subr.bf16.mxu1 %v7292_v27 }
 0x65b   : > { %4982 = vrcp.f32 %v2194_v38 }
 0x65c   : > { %v4977_v23 = vpop.eup %4976 }
 0x65d   : > { %v2240_v59 = vmul.f32 %v4977_v23, %v6239_v10 }
 0x65e   : > { %v2196_v34 = vpop.xlane.xlu1 %2195 }
 0x65f   : > { %4984 = vrcp.f32 %v2196_v34  ;;  %v2250_v4 = vpack.c.bf16 %v2240_v59, %v2239_v0 }
 0x660   : > { %v4979_v44 = vpop.eup %4978 }
 0x661   : > { %4495 = vmatpush3.bf16.xpose.msra.mxu1 %v2250_v4  ;;  %v2237_v61 = vmul.f32 %v4979_v44, %v6247_v49 }
 0x662   : > { %v2190_v18 = vpop.xlane.xlu0 %2189  ;;  %4496 = vmatprep.subr.bf16.mxu1 %v7292_v27 }
 0x663   : > { %4986 = vrcp.f32 %v2190_v18 }
 0x664   : > { %v4981_v46 = vpop.eup %4980 }
 0x665   : > { %v2238_v62 = vmul.f32 %v4981_v46, %v6254_v16 }
 0x666   : > { %v2192_v9 = vpop.xlane.xlu1 %2191 }
 0x667   : > { %4988 = vrcp.f32 %v2192_v9  ;;  %v2249_v52 = vpack.c.bf16 %v2238_v62, %v2237_v61 }
 0x668   : > { %v4983_v20 = vpop.eup %4982 }
 0x669   : > { %4497 = vmatpush3.bf16.xpose.msra.mxu1 %v2249_v52  ;;  %v2235_v35 = vmul.f32 %v4983_v20, %v6260_v3 }
 0x66a   : > { %v2186_v10 = vpop.xlane.xlu0 %2185  ;;  %4498 = vmatprep.subr.bf16.mxu1 %v7292_v27 }
 0x66b   : > { %4990 = vrcp.f32 %v2186_v10 }
 0x66c   : > { %v4985_v24 = vpop.eup %4984 }
 0x66d   : > { %v2236_v40 = vmul.f32 %v4985_v24, %v6265_v63 }
 0x66e   : > { %v2188_v60 = vpop.xlane.xlu1 %2187 }
 0x66f   : > { %4992 = vrcp.f32 %v2188_v60  ;;  %v2248_v54 = vpack.c.bf16 %v2236_v40, %v2235_v35 }
 0x670   : > { %v4987_v49 = vpop.eup %4986 }
 0x671   : > { %4499 = vmatpush3.bf16.xpose.msra.mxu1 %v2248_v54  ;;  %v2233_v33 = vmul.f32 %v4987_v49, %v6271_v43 }
 0x672   : > { %v2182_v16 = vpop.xlane.xlu0 %2181  ;;  %4500 = vmatprep.subr.bf16.mxu1 %v7292_v27 }
 0x673   : > { %4994 = vrcp.f32 %v2182_v16 }
 0x674   : > { %v4989_v29 = vpop.eup %4988 }
 0x675   : > { %v2234_v51 = vmul.f32 %v4989_v29, %v6276_v53 }
 0x676   : > { %v2184_v32 = vpop.xlane.xlu1 %2183 }
 0x677   : > { %4996 = vrcp.f32 %v2184_v32  ;;  %v2247_v28 = vpack.c.bf16 %v2234_v51, %v2233_v33 }
 0x678   : > { %v1640_v3 = vpop.trf.xlu0  ;;  %v4991_v63 = vpop.eup %4990 }
 0x679   : > { %4501 = vmatpush3.bf16.xpose.msra.mxu1 %v2247_v28  ;;  %4436 = vmatprep.mubr.msk.bf16.mxu0 %vm651_vm0, %v1640_v3  ;;  %v2231_v1 = vmul.f32 %v4991_v63, %v6281_v45 }
 0x67a   : > { %4502 = vmatprep.subr.bf16.mxu1 %v7292_v27 }
 0x67c   : > { %v4993_v8 = vpop.eup %4992  ;;  %v1641_v7 = vpop.trf.xlu0 }
 0x67d   : > { %4437 = vmatmul.mubr.msk.bf16.vlgmr.msra.gmra.mxu0 %vm651_vm0, %v1641_v7  ;;  %v2232_v43 = vmul.f32 %v4993_v8, %v6285_v39  ;;  %v2636_v22 = vpop.trf.xlu1  ;;  %v625_v39 = vpack.c.bf16 %v6306_v26, %v6302_v2 }
 0x67f   : > { %v2246_v30 = vpack.c.bf16 %v2232_v43, %v2231_v1 }
 0x680   : > { %v1642_v53 = vpop.trf.xlu0  ;;  %v4995_v58 = vpop.eup %4994 }
 0x681   : > { %4503 = vmatpush3.bf16.xpose.msra.mxu1 %v2246_v30  ;;  %4440 = vmatprep.mubr.msk.bf16.mxu0 %vm651_vm0, %v1642_v53  ;;  %v2229_v5 = vmul.f32 %v4995_v58, %v6290_v41  ;;  %v2637_v42 = vpop.trf.xlu1  ;;  %v7337_v41 = vld [vmem:[#allocation19_spill] sm:$0xff] }
 0x682   : > { %4504 = vmatprep.subr.bf16.mxu1 %v7292_v27 }
 0x684   : > { %v4997_v6 = vpop.eup %4996  ;;  %v1643_v37 = vpop.trf.xlu0 }
 0x685   : > { %4441 = vmatmul.mubr.msk.bf16.gmra.mxu0 %vm651_vm0, %v1643_v37  ;;  %v2230_v45 = vmul.f32 %v4997_v6, %v6294_v31  ;;  %v7338_v31 = vld [vmem:[#allocation21_spill] sm:$0xff]  ;;  %v2638_v2 = vpop.trf.xlu1 }
 0x686   : > { %v631_v23 = vpack.c.bf16 %v7338_v31, %v7337_v41 }
 0x687   : > { %v2245_v13 = vpack.c.bf16 %v2230_v45, %v2229_v5 }
 0x688   : > { %v1644_v47 = vpop.trf.xlu0 }
 0x689   : > { %v6357_v21 = vpop.f32.mrf.mxu0  ;;  %4505 = vmatpush3.bf16.xpose.msra.mxu1 %v2245_v13  ;;  %4444 = vmatprep.mubr.msk.bf16.mxu0 %vm651_vm0, %v1644_v47  ;;  %v2639_v34 = vpop.trf.xlu1 }
 0x68a   : > { %4548 = vmatprep.subr.bf16.mxu1 %v625_v39 }
 0x68b   : > { %v4356_v12 = vpop.f32.mrf.mxu0 }
 0x68c   : > { %v1645_v25 = vpop.trf.xlu0 }
 0x68d   : > { %v6360_v38 = vpop.f32.mrf.mxu0  ;;  %4445 = vmatmul.mubr.msk.bf16.gmra.mxu0 %vm651_vm0, %v1645_v25  ;;  %v2640_v4 = vpop.trf.xlu1 }
 0x68f   : > { %v4357_v0 = vpop.f32.mrf.mxu0 }
 0x690   : > { %v1646_v26 = vpop.trf.xlu0  ;;  %4507 = vmatmul.mubr.bf16.vlgmr.msra.gmra.mxu1 %v631_v23 }
 0x691   : > { %4448 = vmatprep.mubr.msk.bf16.mxu0 %vm651_vm0, %v1646_v26  ;;  %4549 = vmatpush3.bf16.msra.mxu1 %v625_v39  ;;  %v2641_v44 = vpop.trf.xlu1 }
 0x692   : > { %4550 = vmatprep.mubr.msk.bf16.mxu1 %vm651_vm0, %v2636_v22  ;;  %4566 = vmatprep.subr.bf16.mxu1 %v7292_v27 }
 0x694   : > { %v1647_v59 = vpop.trf.xlu0 }
 0x695   : > { %4449 = vmatmul.mubr.msk.bf16.gmra.mxu0 %vm651_vm0, %v1647_v59  ;;  %v2642_v18 = vpop.trf.xlu1 }
 0x696   : > { %4468 = vmatprep.mubr.msk.bf16.mxu0 %vm5450_vm1, %v7292_v27 }
 0x698   : > { %4551 = vmatmul.mubr.msk.bf16.vlgmr.msra.gmra.mxu1 %vm651_vm0, %v2637_v42 }
 0x699   : > { %4554 = vmatprep.mubr.msk.bf16.mxu1 %vm651_vm0, %v2638_v2  ;;  %v2643_v46 = vpop.trf.xlu1 }
 0x6a0   : > { %4555 = vmatmul.mubr.msk.bf16.gmra.mxu1 %vm651_vm0, %v2639_v34 }
 0x6a1   : > { %4558 = vmatprep.mubr.msk.bf16.mxu1 %vm651_vm0, %v2640_v4 }
 0x6a8   : > { %4559 = vmatmul.mubr.msk.bf16.gmra.mxu1 %vm651_vm0, %v2641_v44 }
 0x6a9   : > { %4562 = vmatprep.mubr.msk.bf16.mxu1 %vm651_vm0, %v2642_v18 }
 0x6b0   : > { %4563 = vmatmul.mubr.msk.bf16.gmra.mxu1 %vm651_vm0, %v2643_v46 }
 0x6b1   : > { %4582 = vmatprep.mubr.msk.bf16.mxu1 %vm5450_vm1, %v7292_v27 }
 0x6c9   : > { %v6380_v61 = vpop.f32.mrf.mxu0 }
 0x6cb   : > { %v4394_v62 = vpop.f32.mrf.mxu0 }
 0x6cd   : > { %v6382_v9 = vpop.f32.mrf.mxu0 }
 0x6cf   : > { %v4395_v52 = vpop.f32.mrf.mxu0 }
 0x73d   : > { %v6384_v20 = vpop.f32.mrf.mxu0 }
 0x73f   : > { %v6386_v10 = vpop.f32.mrf.mxu0 }
 0x741   : > { %v6388_v24 = vpop.f32.mrf.mxu0 }
 0x743   : > { %v6390_v35 = vpop.f32.mrf.mxu0 }
 0x745   : > { %v6392_v40 = vpop.f32.mrf.mxu0 }
 0x747   : > { %v6394_v60 = vpop.f32.mrf.mxu0 }
 0x749   : > { %v6396_v54 = vpop.f32.mrf.mxu0 }
 0x74b   : > { %v6398_v49 = vpop.f32.mrf.mxu0 }
 0x74d   : > { %v6400_v16 = vpop.f32.mrf.mxu0 }
 0x74f   : > { %v6402_v29 = vpop.f32.mrf.mxu0 }
 0x750   : > { %v6404_v33 = vpop.f32.mrf.mxu1 }
 0x751   : > { %v6406_v51 = vpop.f32.mrf.mxu0 }
 0x752   : > { %v4508_v32 = vpop.f32.mrf.mxu1 }
 0x753   : > { %v6408_v28 = vpop.f32.mrf.mxu0 }
 0x754   : > { %v6410_v3 = vpop.f32.mrf.mxu1 }
 0x755   : > { %v4450_v63 = vpop.f32.mrf.mxu0 }
 0x756   : > { %v4509_v8 = vpop.f32.mrf.mxu1  ;;  %1797 = vmax.xlane.f32.xlu0 %v4450_v63 }
 0x757   : > { %v1754_v7 = vpop.f32.mrf.mxu0 }
 0x758   : > { %v6412_v1 = vpop.f32.mrf.mxu1 }
 0x759   : > { %v4451_v43 = vpop.f32.mrf.mxu0 }
 0x75a   : > { %1793 = vmax.xlane.f32.xlu0 %v1754_v7  ;;  %1799 = vmax.xlane.f32.xlu1 %v4451_v43  ;;  %v6414_v30 = vpop.f32.mrf.mxu1 }
 0x75b   : > { %v1757_v58 = vpop.f32.mrf.mxu0 }
 0x75c   : > { %v6416_v53 = vpop.f32.mrf.mxu1 }
 0x75e   : > { %1789 = vmax.xlane.f32.xlu0 %v6400_v16  ;;  %1795 = vmax.xlane.f32.xlu1 %v1757_v58  ;;  %v6419_v22 = vpop.f32.mrf.mxu1 }
 0x760   : > { %v6421_v6 = vpop.f32.mrf.mxu1 }
 0x762   : > { %1785 = vmax.xlane.f32.xlu0 %v6402_v29  ;;  %1791 = vmax.xlane.f32.xlu1 %v6406_v51  ;;  %v6425_v37 = vpop.f32.mrf.mxu1 }
 0x764   : > { %v6427_v5 = vpop.f32.mrf.mxu1 }
 0x766   : > { %1781 = vmax.xlane.f32.xlu0 %v6392_v40  ;;  %1787 = vmax.xlane.f32.xlu1 %v6408_v28  ;;  %v6431_v45 = vpop.f32.mrf.mxu1 }
 0x768   : > { %v6433_v39 = vpop.f32.mrf.mxu1 }
 0x76a   : > { %1777 = vmax.xlane.f32.xlu0 %v6394_v60  ;;  %1783 = vmax.xlane.f32.xlu1 %v6396_v54  ;;  %v6437_v13 = vpop.f32.mrf.mxu1 }
 0x76c   : > { %v6439_v47 = vpop.f32.mrf.mxu1 }
 0x76e   : > { %1773 = vmax.xlane.f32.xlu0 %v6384_v20  ;;  %1779 = vmax.xlane.f32.xlu1 %v6398_v49  ;;  %v6443_v42 = vpop.f32.mrf.mxu1 }
 0x770   : > { %v6445_v12 = vpop.f32.mrf.mxu1 }
 0x772   : > { %1769 = vmax.xlane.f32.xlu0 %v6386_v10  ;;  %1775 = vmax.xlane.f32.xlu1 %v6388_v24  ;;  %v6449_v25 = vpop.f32.mrf.mxu1 }
 0x774   : > { %v6453_v41 = vpop.f32.mrf.mxu1 }
 0x776   : > { %2793 = vmax.xlane.f32.xlu0 %v6445_v12  ;;  %1771 = vmax.xlane.f32.xlu1 %v6390_v35  ;;  %v6457_v31 = vpop.f32.mrf.mxu1 }
 0x77a   : > { %2789 = vmax.xlane.f32.xlu0 %v6449_v25  ;;  %2795 = vmax.xlane.f32.xlu1 %v6453_v41 }
 0x77e   : > { %2785 = vmax.xlane.f32.xlu0 %v6433_v39  ;;  %2791 = vmax.xlane.f32.xlu1 %v6457_v31 }
 0x782   : > { %2787 = vmax.xlane.f32.xlu1 %v6439_v47 }
 0x7df   : > { %v1798_v23 = vpop.xlane.xlu0 %1797 }
 0x7e0   : > { %v1815_v0 = vsub.f32 %v4450_v63, %v1798_v23 }
 0x7e2   : > { %v1845_v2 = vmul.f32 1.442695, %v1815_v0 }
 0x7e3   : > { %v1794_v26 = vpop.xlane.xlu0 %1793  ;;  %v1800_v59 = vpop.xlane.xlu1 %1799 }
 0x7e4   : > { %4998 = vpow2.f32 %v1845_v2  ;;  %v1813_v34 = vsub.f32 %v1754_v7, %v1794_v26  ;;  %v1816_v4 = vsub.f32 %v4451_v43, %v1800_v59 }
 0x7e6   : > { %v1847_v44 = vmul.f32 1.442695, %v1816_v4  ;;  %v1841_v62 = vmul.f32 1.442695, %v1813_v34 }
 0x7e7   : > { %v1790_v18 = vpop.xlane.xlu0 %1789  ;;  %v1796_v46 = vpop.xlane.xlu1 %1795 }
 0x7e8   : > { %5000 = vpow2.f32 %v1847_v44  ;;  %v1814_v52 = vsub.f32 %v1757_v58, %v1796_v46  ;;  %v1811_v48 = vsub.f32 %v6400_v16, %v1790_v18 }
 0x7e9   : > { %5002 = vpow2.f32 %v1841_v62 }
 0x7ea   : > { %v1843_v17 = vmul.f32 1.442695, %v1814_v52  ;;  %v1837_v27 = vmul.f32 1.442695, %v1811_v48 }
 0x7eb   : > { %v1786_v32 = vpop.xlane.xlu0 %1785  ;;  %v1792_v8 = vpop.xlane.xlu1 %1791 }
 0x7ec   : > { %5004 = vpow2.f32 %v1843_v17  ;;  %v1812_v7 = vsub.f32 %v6406_v51, %v1792_v8  ;;  %v1809_v0 = vsub.f32 %v6402_v29, %v1786_v32 }
 0x7ed   : > { %5006 = vpow2.f32 %v1837_v27 }
 0x7ee   : > { %v1839_v58 = vmul.f32 1.442695, %v1812_v7  ;;  %v1833_v48 = vmul.f32 1.442695, %v1809_v0 }
 0x7ef   : > { %v1788_v63 = vpop.xlane.xlu1 %1787  ;;  %v1782_v43 = vpop.xlane.xlu0 %1781 }
 0x7f0   : > { %5008 = vpow2.f32 %v1839_v58  ;;  %v1810_v17 = vsub.f32 %v6408_v28, %v1788_v63  ;;  %v1807_v27 = vsub.f32 %v6392_v40, %v1782_v43 }
 0x7f1   : > { %v6463_v23 = vpop.eup %4998  ;;  %5010 = vpow2.f32 %v1833_v48 }
 0x7f2   : > { %1877 = vadd.xlane.f32.xlu0 %v6463_v23  ;;  %v1835_v51 = vmul.f32 1.442695, %v1810_v17  ;;  %v1829_v44 = vmul.f32 1.442695, %v1807_v27 }
 0x7f3   : > { %v1784_v26 = vpop.xlane.xlu1 %1783  ;;  %v1778_v16 = vpop.xlane.xlu0 %1777 }
 0x7f4   : > { %5012 = vpow2.f32 %v1835_v51  ;;  %v1808_v28 = vsub.f32 %v6396_v54, %v1784_v26  ;;  %v1805_v40 = vsub.f32 %v6394_v60, %v1778_v16 }
 0x7f5   : > { %v6468_v2 = vpop.eup %5000  ;;  %5014 = vpow2.f32 %v1829_v44 }
 0x7f6   : > { %2781 = vmax.xlane.f32.xlu0 %v6437_v13  ;;  %1879 = vadd.xlane.f32.xlu1 %v6468_v2  ;;  %v6472_v59 = vpop.eup %5002  ;;  %v1831_v52 = vmul.f32 1.442695, %v1808_v28  ;;  %v1825_v8 = vmul.f32 1.442695, %v1805_v40 }
 0x7f7   : > { %v1780_v29 = vpop.xlane.xlu1 %1779  ;;  %v1774_v34 = vpop.xlane.xlu0 %1773 }
 0x7f8   : > { %v1803_v63 = vsub.f32 %v6384_v20, %v1774_v34  ;;  %5016 = vpow2.f32 %v1831_v52  ;;  %v1806_v43 = vsub.f32 %v6398_v49, %v1780_v29 }
 0x7f9   : > { %v6478_v4 = vpop.eup %5004  ;;  %5018 = vpow2.f32 %v1825_v8 }
 0x7fa   : > { %1873 = vadd.xlane.f32.xlu0 %v6472_v59  ;;  %2783 = vmax.xlane.f32.xlu1 %v6443_v42  ;;  %v6482_v18 = vpop.eup %5006  ;;  %v1821_v60 = vmul.f32 1.442695, %v1803_v63  ;;  %v1827_v26 = vmul.f32 1.442695, %v1806_v43 }
 0x7fb   : > { %v1776_v46 = vpop.xlane.xlu1 %1775  ;;  %v1770_v62 = vpop.xlane.xlu0 %1769 }
 0x7fc   : > { %v1801_v58 = vsub.f32 %v6386_v10, %v1770_v62  ;;  %v1804_v16 = vsub.f32 %v6388_v24, %v1776_v46  ;;  %5020 = vpow2.f32 %v1821_v60 }
 0x7fd   : > { %v6488_v32 = vpop.eup %5008  ;;  %5022 = vpow2.f32 %v1827_v26 }
 0x7fe   : > { %2777 = vmax.xlane.f32.xlu0 %v6421_v6  ;;  %1875 = vadd.xlane.f32.xlu1 %v6478_v4  ;;  %v6493_v7 = vpop.eup %5010  ;;  %v1817_v49 = vmul.f32 1.442695, %v1801_v58  ;;  %v1823_v51 = vmul.f32 1.442695, %v1804_v16 }
 0x7ff   : > { %v1772_v54 = vpop.xlane.xlu1 %1771  ;;  %v2794_v0 = vpop.xlane.xlu0 %2793 }
 0x800   : > { %v2811_v27 = vsub.f32 %v6445_v12, %v2794_v0  ;;  %v1802_v10 = vsub.f32 %v6390_v35, %v1772_v54  ;;  %5024 = vpow2.f32 %v1817_v49 }
 0x801   : > { %v6500_v48 = vpop.eup %5012  ;;  %5026 = vpow2.f32 %v1823_v51 }
 0x802   : > { %1869 = vadd.xlane.f32.xlu0 %v6482_v18  ;;  %2779 = vmax.xlane.f32.xlu1 %v6427_v5  ;;  %v6505_v29 = vpop.eup %5014  ;;  %v2841_v24 = vmul.f32 1.442695, %v2811_v27  ;;  %v1819_v28 = vmul.f32 1.442695, %v1802_v10 }
 0x803   : > { %v2796_v20 = vpop.xlane.xlu1 %2795  ;;  %v2790_v17 = vpop.xlane.xlu0 %2789 }
 0x804   : > { %v2809_v34 = vsub.f32 %v6449_v25, %v2790_v17  ;;  %v2812_v46 = vsub.f32 %v6453_v41, %v2796_v20  ;;  %5028 = vpow2.f32 %v2841_v24 }
 0x805   : > { %v6512_v62 = vpop.eup %5016  ;;  %5030 = vpow2.f32 %v1819_v28 }
 0x806   : > { %2773 = vmax.xlane.f32.xlu0 %v6425_v37  ;;  %1871 = vadd.xlane.f32.xlu1 %v6488_v32  ;;  %v2837_v35 = vmul.f32 1.442695, %v2809_v34  ;;  %v6517_v52 = vpop.eup %5018  ;;  %v2843_v25 = vmul.f32 1.442695, %v2812_v46 }
 0x807   : > { %v2792_v44 = vpop.xlane.xlu1 %2791  ;;  %v2786_v12 = vpop.xlane.xlu0 %2785 }
 0x808   : > { %v2807_v40 = vsub.f32 %v6433_v39, %v2786_v12  ;;  %v2810_v8 = vsub.f32 %v6457_v31, %v2792_v44  ;;  %5032 = vpow2.f32 %v2837_v35 }
 0x809   : > { %v6522_v54 = vpop.eup %5020  ;;  %5034 = vpow2.f32 %v2843_v25 }
 0x80a   : > { %1865 = vadd.xlane.f32.xlu0 %v6493_v7  ;;  %2775 = vmax.xlane.f32.xlu1 %v6431_v45  ;;  %v2833_v41 = vmul.f32 1.442695, %v2807_v40  ;;  %v2839_v43 = vmul.f32 1.442695, %v2810_v8  ;;  %v6525_v39 = vpop.eup %5022 }
 0x80b   : > { %v2788_v63 = vpop.xlane.xlu1 %2787 }
 0x80c   : > { %v2808_v0 = vsub.f32 %v6439_v47, %v2788_v63  ;;  %5036 = vpow2.f32 %v2833_v41 }
 0x80d   : > { %v6529_v31 = vpop.eup %5024  ;;  %5038 = vpow2.f32 %v2839_v43 }
 0x80e   : > { %2769 = vmax.xlane.f32.xlu0 %v6412_v1  ;;  %1867 = vadd.xlane.f32.xlu1 %v6500_v48  ;;  %v2835_v60 = vmul.f32 1.442695, %v2808_v0  ;;  %v6531_v58 = vpop.eup %5026 }
 0x810   : > { %5040 = vpow2.f32 %v2835_v60 }
 0x811   : > { %v6535_v26 = vpop.eup %5028 }
 0x812   : > { %1861 = vadd.xlane.f32.xlu0 %v6505_v29  ;;  %2771 = vmax.xlane.f32.xlu1 %v6416_v53  ;;  %v6537_v47 = vpop.eup %5030 }
 0x815   : > { %v6541_v16 = vpop.eup %5032 }
 0x816   : > { %2765 = vmax.xlane.f32.xlu0 %v6414_v30  ;;  %1863 = vadd.xlane.f32.xlu1 %v6512_v62  ;;  %v6543_v20 = vpop.eup %5034 }
 0x819   : > { %v6547_v17 = vpop.eup %5036 }
 0x81a   : > { %1857 = vadd.xlane.f32.xlu0 %v6517_v52  ;;  %2767 = vmax.xlane.f32.xlu1 %v6419_v22  ;;  %v6549_v49 = vpop.eup %5038 }
 0x81d   : > { %v6553_v27 = vpop.eup %5040 }
 0x81e   : > { %1853 = vadd.xlane.f32.xlu0 %v6522_v54  ;;  %1859 = vadd.xlane.f32.xlu1 %v6525_v39 }
 0x822   : > { %1849 = vadd.xlane.f32.xlu0 %v6529_v31  ;;  %1855 = vadd.xlane.f32.xlu1 %v6531_v58 }
 0x826   : > { %2873 = vadd.xlane.f32.xlu0 %v6535_v26  ;;  %1851 = vadd.xlane.f32.xlu1 %v6537_v47 }
 0x82a   : > { %2869 = vadd.xlane.f32.xlu0 %v6541_v16  ;;  %2875 = vadd.xlane.f32.xlu1 %v6543_v20 }
 0x82e   : > { %2865 = vadd.xlane.f32.xlu0 %v6547_v17  ;;  %2871 = vadd.xlane.f32.xlu1 %v6549_v49 }
 0x832   : > { %2867 = vadd.xlane.f32.xlu1 %v6553_v27 }
 0x87b   : > { %v1878_v51 = vpop.xlane.xlu0 %1877 }
 0x87c   : > { %5042 = vrcp.f32 %v1878_v51 }
 0x87f   : > { %v2782_v10 = vpop.xlane.xlu0 %2781  ;;  %v1880_v34 = vpop.xlane.xlu1 %1879 }
 0x880   : > { %v2805_v24 = vsub.f32 %v6437_v13, %v2782_v10  ;;  %5044 = vrcp.f32 %v1880_v34 }
 0x882   : > { %v2829_v44 = vmul.f32 1.442695, %v2805_v24 }
 0x883   : > { %v1874_v28 = vpop.xlane.xlu0 %1873  ;;  %v2784_v46 = vpop.xlane.xlu1 %2783 }
 0x884   : > { %5046 = vpow2.f32 %v2829_v44  ;;  %v2806_v12 = vsub.f32 %v6443_v42, %v2784_v46 }
 0x885   : > { %5048 = vrcp.f32 %v1874_v28 }
 0x886   : > { %v2831_v35 = vmul.f32 1.442695, %v2806_v12 }
 0x887   : > { %v2778_v40 = vpop.xlane.xlu0 %2777  ;;  %v1876_v8 = vpop.xlane.xlu1 %1875 }
 0x888   : > { %v2803_v25 = vsub.f32 %v6421_v6, %v2778_v40  ;;  %5050 = vpow2.f32 %v2831_v35  ;;  %v7339_v35 = vmov 0.0  }
 0x889   : > { %5052 = vrcp.f32 %v1876_v8  ;;  %v5043_v43 = vpop.eup %5042 }
 0x88a   : > { %v2825_v63 = vmul.f32 1.442695, %v2803_v25  ;;  %v1911_v42 = vmul.f32 %v5043_v43, %v6463_v23 }
 0x88b   : > { %v1870_v41 = vpop.xlane.xlu0 %1869  ;;  %v2780_v13 = vpop.xlane.xlu1 %2779 }
 0x88c   : > { %5054 = vpow2.f32 %v2825_v63  ;;  %v2804_v0 = vsub.f32 %v6427_v5, %v2780_v13 }
 0x88d   : > { %v5045_v60 = vpop.eup %5044  ;;  %5056 = vrcp.f32 %v1870_v41 }
 0x88e   : > { %v2827_v51 = vmul.f32 1.442695, %v2804_v0  ;;  %v1912_v24 = vmul.f32 %v5045_v60, %v6468_v2 }
 0x88f   : > { %v2774_v10 = vpop.xlane.xlu0 %2773  ;;  %v1872_v34 = vpop.xlane.xlu1 %1871 }
 0x890   : > { %v2801_v6 = vsub.f32 %v6425_v37, %v2774_v10  ;;  %5058 = vpow2.f32 %v2827_v51  ;;  %v1920_v28 = vpack.c.bf16 %v1912_v24, %v1911_v42 }
 0x891   : > { %v6563_v44 = vpop.eup %5046  ;;  %5060 = vrcp.f32 %v1872_v34 }
 0x892   : > { %v2821_v46 = vmul.f32 1.442695, %v2801_v6  ;;  %2861 = vadd.xlane.f32.xlu0 %v6563_v44  ;;  %4453 = vmatpush3.bf16.xpose.msra.mxu0 %v1920_v28  ;;  %v5049_v23 = vpop.eup %5048 }
 0x893   : > { %v1866_v5 = vpop.xlane.xlu0 %1865  ;;  %v2776_v12 = vpop.xlane.xlu1 %2775  ;;  %4454 = vmatprep.subr.bf16.mxu0 %v7339_v35  ;;  %v1909_v43 = vmul.f32 %v5049_v23, %v6472_v59 }
 0x894   : > { %5062 = vpow2.f32 %v2821_v46  ;;  %v2802_v2 = vsub.f32 %v6431_v45, %v2776_v12 }
 0x895   : > { %v6568_v40 = vpop.eup %5050  ;;  %5064 = vrcp.f32 %v1866_v5 }
 0x896   : > { %v5053_v37 = vpop.eup %5052  ;;  %v2823_v25 = vmul.f32 1.442695, %v2802_v2  ;;  %2863 = vadd.xlane.f32.xlu1 %v6568_v40 }
 0x897   : > { %v2770_v8 = vpop.xlane.xlu0 %2769  ;;  %v1868_v41 = vpop.xlane.xlu1 %1867  ;;  %v1910_v13 = vmul.f32 %v5053_v37, %v6478_v4 }
 0x898   : > { %v2799_v63 = vsub.f32 %v6412_v1, %v2770_v8  ;;  %5066 = vpow2.f32 %v2823_v25 }
 0x899   : > { %v6574_v0 = vpop.eup %5054  ;;  %5068 = vrcp.f32 %v1868_v41  ;;  %v1919_v45 = vpack.c.bf16 %v1910_v13, %v1909_v43 }
 0x89a   : > { %v2817_v60 = vmul.f32 1.442695, %v2799_v63  ;;  %2857 = vadd.xlane.f32.xlu0 %v6574_v0  ;;  %v5057_v42 = vpop.eup %5056 }
 0x89b   : > { %v1862_v51 = vpop.xlane.xlu0 %1861  ;;  %4455 = vmatpush3.bf16.xpose.msra.mxu0 %v1919_v45  ;;  %v2772_v10 = vpop.xlane.xlu1 %2771  ;;  %v1907_v46 = vmul.f32 %v5057_v42, %v6482_v18 }
 0x89c   : > { %5070 = vpow2.f32 %v2817_v60  ;;  %v2800_v1 = vsub.f32 %v6416_v53, %v2772_v10  ;;  %4456 = vmatprep.subr.bf16.mxu0 %v7339_v35 }
 0x89d   : > { %v6579_v59 = vpop.eup %5058  ;;  %5072 = vrcp.f32 %v1862_v51 }
 0x89e   : > { %v5061_v4 = vpop.eup %5060  ;;  %v2819_v24 = vmul.f32 1.442695, %v2800_v1  ;;  %2859 = vadd.xlane.f32.xlu1 %v6579_v59 }
 0x89f   : > { %v2766_v6 = vpop.xlane.xlu0 %2765  ;;  %v1864_v28 = vpop.xlane.xlu1 %1863  ;;  %v1908_v5 = vmul.f32 %v5061_v4, %v6488_v32 }
 0x8a0   : > { %v2797_v34 = vsub.f32 %v6414_v30, %v2766_v6  ;;  %5074 = vpow2.f32 %v2819_v24 }
 0x8a1   : > { %v6585_v12 = vpop.eup %5062  ;;  %5076 = vrcp.f32 %v1864_v28  ;;  %v1918_v23 = vpack.c.bf16 %v1908_v5, %v1907_v46 }
 0x8a2   : > { %v2813_v53 = vmul.f32 1.442695, %v2797_v34  ;;  %2853 = vadd.xlane.f32.xlu0 %v6585_v12  ;;  %v5065_v25 = vpop.eup %5064 }
 0x8a3   : > { %v1858_v2 = vpop.xlane.xlu0 %1857  ;;  %4457 = vmatpush3.bf16.xpose.msra.mxu0 %v1918_v23  ;;  %v2768_v37 = vpop.xlane.xlu1 %2767  ;;  %v1905_v43 = vmul.f32 %v5065_v25, %v6493_v7 }
 0x8a4   : > { %5078 = vpow2.f32 %v2813_v53  ;;  %v2798_v30 = vsub.f32 %v6419_v22, %v2768_v37  ;;  %4458 = vmatprep.subr.bf16.mxu0 %v7339_v35 }
 0x8a5   : > { %v6590_v18 = vpop.eup %5066  ;;  %5080 = vrcp.f32 %v1858_v2 }
 0x8a6   : > { %v5069_v32 = vpop.eup %5068  ;;  %v2815_v8 = vmul.f32 1.442695, %v2798_v30  ;;  %2855 = vadd.xlane.f32.xlu1 %v6590_v18 }
 0x8a7   : > { %v1854_v63 = vpop.xlane.xlu0 %1853  ;;  %v1860_v41 = vpop.xlane.xlu1 %1859  ;;  %v1906_v13 = vmul.f32 %v5069_v32, %v6500_v48 }
 0x8a8   : > { %5082 = vpow2.f32 %v2815_v8 }
 0x8a9   : > { %v6595_v60 = vpop.eup %5070  ;;  %5084 = vrcp.f32 %v1860_v41  ;;  %v1917_v22 = vpack.c.bf16 %v1906_v13, %v1905_v43 }
 0x8aa   : > { %2849 = vadd.xlane.f32.xlu0 %v6595_v60  ;;  %v5073_v10 = vpop.eup %5072 }
 0x8ab   : > { %v1850_v45 = vpop.xlane.xlu0 %1849  ;;  %4459 = vmatpush3.bf16.xpose.msra.mxu0 %v1917_v22  ;;  %v1856_v51 = vpop.xlane.xlu1 %1855  ;;  %v1903_v4 = vmul.f32 %v5073_v10, %v6505_v29 }
 0x8ac   : > { %4460 = vmatprep.subr.bf16.mxu0 %v7339_v35  ;;  %5086 = vrcp.f32 %v1856_v51 }
 0x8ad   : > { %v6599_v42 = vpop.eup %5074  ;;  %5088 = vrcp.f32 %v1854_v63 }
 0x8ae   : > { %v5077_v1 = vpop.eup %5076  ;;  %2851 = vadd.xlane.f32.xlu1 %v6599_v42 }
 0x8af   : > { %v2874_v7 = vpop.xlane.xlu0 %2873  ;;  %v1852_v48 = vpop.xlane.xlu1 %1851  ;;  %v1904_v24 = vmul.f32 %v5077_v1, %v6512_v62 }
 0x8b0   : > { %5090 = vrcp.f32 %v2874_v7 }
 0x8b1   : > { %v6604_v6 = vpop.eup %5078  ;;  %v1916_v34 = vpack.c.bf16 %v1904_v24, %v1903_v4 }
 0x8b2   : > { %2845 = vadd.xlane.f32.xlu0 %v6604_v6  ;;  %v5081_v46 = vpop.eup %5080 }
 0x8b3   : > { %4461 = vmatpush3.bf16.xpose.msra.mxu0 %v1916_v34  ;;  %v2876_v28 = vpop.xlane.xlu1 %2875  ;;  %v2870_v29 = vpop.xlane.xlu0 %2869  ;;  %v1901_v23 = vmul.f32 %v5081_v46, %v6517_v52 }
 0x8b4   : > { %5092 = vrcp.f32 %v2876_v28  ;;  %4462 = vmatprep.subr.bf16.mxu0 %v7339_v35  ;;  %v7340_v28 = vld [vmem:[#allocation17_spill] sm:$0xff] }
 0x8b5   : > { %v6608_v5 = vpop.eup %5082  ;;  %5094 = vrcp.f32 %v1852_v48 }
 0x8b6   : > { %v5085_v53 = vpop.eup %5084  ;;  %2847 = vadd.xlane.f32.xlu1 %v6608_v5  ;;  %5096 = vrcp.f32 %v1850_v45 }
 0x8b7   : > { %v2872_v62 = vpop.xlane.xlu1 %2871  ;;  %v1902_v2 = vmul.f32 %v5085_v53, %v6525_v39  ;;  %v2866_v41 = vpop.xlane.xlu0 %2865  ;;  %v7343_v53 = vpack.c.bf16 %v6202_v19, %v6200_v14 }
 0x8b8   : > { %5098 = vrcp.f32 %v2872_v62 }
 0x8b9   : > { %v1915_v37 = vpack.c.bf16 %v1902_v2, %v1901_v23  ;;  %v5087_v25 = vpop.eup %5086  ;;  %5100 = vrcp.f32 %v2870_v29 }
 0x8ba   : > { %v5089_v30 = vpop.eup %5088  ;;  %v1900_v8 = vmul.f32 %v5087_v25, %v6531_v58 }
 0x8bb   : > { %4463 = vmatpush3.bf16.xpose.msra.mxu0 %v1915_v37  ;;  %v2868_v32 = vpop.xlane.xlu1 %2867  ;;  %v1899_v43 = vmul.f32 %v5089_v30, %v6522_v54 }
 0x8bc   : > { %4464 = vmatprep.subr.bf16.mxu0 %v7339_v35  ;;  %5102 = vrcp.f32 %v2868_v32 }
 0x8bd   : > { %v5091_v63 = vpop.eup %5090  ;;  %v1914_v52 = vpack.c.bf16 %v1900_v8, %v1899_v43  ;;  %5104 = vrcp.f32 %v2866_v41 }
 0x8be   : > { %v2907_v39 = vmul.f32 %v5091_v63, %v6535_v26 }
 0x8c1   : > { %v5093_v13 = vpop.eup %5092 }
 0x8c2   : > { %v5095_v22 = vpop.eup %5094  ;;  %v2908_v45 = vmul.f32 %v5093_v13, %v6543_v20 }
 0x8c3   : > { %4465 = vmatpush3.bf16.xpose.msra.mxu0 %v1914_v52  ;;  %v5097_v51 = vpop.eup %5096  ;;  %v1898_v58 = vmul.f32 %v5095_v22, %v6537_v47 }
 0x8c4   : > { %v2916_v10 = vpack.c.bf16 %v2908_v45, %v2907_v39  ;;  %4466 = vmatprep.subr.bf16.mxu0 %v7339_v35  ;;  %v1897_v54 = vmul.f32 %v5097_v51, %v6529_v31  ;;  %v7341_v31 = vld [vmem:[#allocation16_spill] sm:$0xff] }
 0x8c5   : > { %v5099_v1 = vpop.eup %5098  ;;  %v7342_v46 = vpack.c.bf16 %v7340_v28, %v7341_v31  ;;  %v7345_v28 = vld [vmem:[#allocation23_spill] sm:$0xff]  ;;  %v7346_v31 = vld [vmem:[#allocation25_spill] sm:$0xff] }
 0x8c6   : > { %4567 = vmatpush3.bf16.xpose.msra.mxu1 %v2916_v10  ;;  %v5101_v7 = vpop.eup %5100  ;;  %v2906_v48 = vmul.f32 %v5099_v1, %v6549_v49  ;;  %v1913_v4 = vpack.c.bf16 %v1898_v58, %v1897_v54 }
 0x8c7   : > { %4568 = vmatprep.subr.bf16.mxu1 %v7339_v35  ;;  %v2905_v26 = vmul.f32 %v5101_v7, %v6541_v16 }
 0x8c9   : > { %v2915_v20 = vpack.c.bf16 %v2906_v48, %v2905_v26  ;;  %v5103_v24 = vpop.eup %5102 }
 0x8ca   : > { %v5105_v34 = vpop.eup %5104  ;;  %v2904_v47 = vmul.f32 %v5103_v24, %v6553_v27  ;;  %v7344_v27 = vpack.c.bf16 %v6314_v55, %v6311_v15 }
 0x8cb   : > { %4467 = vmatpush3.bf16.xpose.msra.mxu0 %v1913_v4  ;;  %v2903_v49 = vmul.f32 %v5105_v34, %v6547_v17 }
 0x8cc   : > { %4510 = vmatprep.subr.bf16.mxu0 %v6206_v36 }
 0x8cd   : > { %v2914_v16 = vpack.c.bf16 %v2904_v47, %v2903_v49 }
 0x8ce   : > { %4569 = vmatpush3.bf16.xpose.msra.mxu1 %v2915_v20 }
 0x8cf   : > { %4570 = vmatprep.subr.bf16.mxu1 %v7339_v35 }
 0x8d2   : > { %4469 = vmatmul.mubr.bf16.vlgmr.msra.gmra.mxu0 %v7342_v46  ;;  %v633_v46 = vpack.c.bf16 %v7346_v31, %v7345_v28 }
 0x8d3   : > { %4511 = vmatpush3.bf16.msra.mxu0 %v6206_v36 }
 0x8d4   : > { %4528 = vmatprep.subr.bf16.mxu0 %v7339_v35 }
 0x8d6   : > { %4571 = vmatpush3.bf16.xpose.msra.mxu1 %v2914_v16 }
 0x8d7   : > { %4572 = vmatprep.subr.bf16.mxu1 %v7339_v35 }
 0x8df   : > { %2296 = vxpose.xlu0.c.b16.start.end [1/1] (short) %v7343_v53, 128 }
 0x8e3   : > { %2960 = vxpose.xlu1.c.b16.start.end [1/1] (short) %v7344_v27, 128 }
 0x91b   : > { %v2862_v29 = vpop.xlane.xlu0 %2861 }
 0x91c   : > { %5106 = vrcp.f32 %v2862_v29 }
 0x91f   : > { %v2864_v62 = vpop.xlane.xlu1 %2863 }
 0x920   : > { %5108 = vrcp.f32 %v2864_v62 }
 0x923   : > { %v2858_v17 = vpop.xlane.xlu0 %2857 }
 0x924   : > { %5110 = vrcp.f32 %v2858_v17 }
 0x927   : > { %v2860_v36 = vpop.xlane.xlu1 %2859 }
 0x928   : > { %5112 = vrcp.f32 %v2860_v36 }
 0x929   : > { %v5107_v23 = vpop.eup %5106 }
 0x92a   : > { %v2901_v25 = vmul.f32 %v5107_v23, %v6563_v44 }
 0x92b   : > { %v2854_v2 = vpop.xlane.xlu0 %2853 }
 0x92c   : > { %5114 = vrcp.f32 %v2854_v2 }
 0x92d   : > { %v5109_v37 = vpop.eup %5108 }
 0x92e   : > { %v2902_v14 = vmul.f32 %v5109_v37, %v6568_v40 }
 0x92f   : > { %v2856_v19 = vpop.xlane.xlu1 %2855 }
 0x930   : > { %5116 = vrcp.f32 %v2856_v19  ;;  %v2913_v15 = vpack.c.bf16 %v2902_v14, %v2901_v25 }
 0x931   : > { %v5111_v55 = vpop.eup %5110 }
 0x932   : > { %4573 = vmatpush3.bf16.xpose.msra.mxu1 %v2913_v15  ;;  %v2899_v8 = vmul.f32 %v5111_v55, %v6574_v0 }
 0x933   : > { %v2850_v30 = vpop.xlane.xlu0 %2849  ;;  %4574 = vmatprep.subr.bf16.mxu1 %v7339_v35 }
 0x934   : > { %5118 = vrcp.f32 %v2850_v30 }
 0x935   : > { %v5113_v32 = vpop.eup %5112 }
 0x936   : > { %v2900_v63 = vmul.f32 %v5113_v32, %v6579_v59 }
 0x937   : > { %v2852_v41 = vpop.xlane.xlu1 %2851 }
 0x938   : > { %5120 = vrcp.f32 %v2852_v41  ;;  %v2912_v43 = vpack.c.bf16 %v2900_v63, %v2899_v8 }
 0x939   : > { %v5115_v44 = vpop.eup %5114 }
 0x93a   : > { %4575 = vmatpush3.bf16.xpose.msra.mxu1 %v2912_v43  ;;  %v2897_v52 = vmul.f32 %v5115_v44, %v6585_v12 }
 0x93b   : > { %v2846_v40 = vpop.xlane.xlu0 %2845  ;;  %4576 = vmatprep.subr.bf16.mxu1 %v7339_v35 }
 0x93c   : > { %5122 = vrcp.f32 %v2846_v40 }
 0x93d   : > { %v5117_v13 = vpop.eup %5116 }
 0x93e   : > { %v2898_v22 = vmul.f32 %v5117_v13, %v6590_v18 }
 0x93f   : > { %v2848_v39 = vpop.xlane.xlu1 %2847 }
 0x940   : > { %5124 = vrcp.f32 %v2848_v39  ;;  %v2911_v0 = vpack.c.bf16 %v2898_v22, %v2897_v52 }
 0x941   : > { %v2304_v45 = vpop.trf.xlu0  ;;  %v5119_v59 = vpop.eup %5118 }
 0x942   : > { %4512 = vmatprep.mubr.msk.bf16.mxu0 %vm651_vm0, %v2304_v45  ;;  %4577 = vmatpush3.bf16.xpose.msra.mxu1 %v2911_v0  ;;  %v2895_v1 = vmul.f32 %v5119_v59, %v6595_v60 }
 0x943   : > { %4578 = vmatprep.subr.bf16.mxu1 %v7339_v35 }
 0x945   : > { %v2305_v51 = vpop.trf.xlu0  ;;  %v5121_v10 = vpop.eup %5120 }
 0x946   : > { %4513 = vmatmul.mubr.msk.bf16.vlgmr.msra.gmra.mxu0 %vm651_vm0, %v2305_v51  ;;  %v2896_v12 = vmul.f32 %v5121_v10, %v6599_v42  ;;  %v2968_v48 = vpop.trf.xlu1  ;;  %v626_v42 = vpack.c.bf16 %v6351_v56, %v6309_v11 }
 0x948   : > { %v2910_v18 = vpack.c.bf16 %v2896_v12, %v2895_v1 }
 0x949   : > { %v2306_v58 = vpop.trf.xlu0  ;;  %v5123_v7 = vpop.eup %5122 }
 0x94a   : > { %4516 = vmatprep.mubr.msk.bf16.mxu0 %vm651_vm0, %v2306_v58  ;;  %4579 = vmatpush3.bf16.xpose.msra.mxu1 %v2910_v18  ;;  %v2893_v26 = vmul.f32 %v5123_v7, %v6604_v6  ;;  %v2969_v34 = vpop.trf.xlu1 }
 0x94b   : > { %4580 = vmatprep.subr.bf16.mxu1 %v7339_v35 }
 0x94d   : > { %v2307_v54 = vpop.trf.xlu0  ;;  %v5125_v4 = vpop.eup %5124 }
 0x94e   : > { %4517 = vmatmul.mubr.msk.bf16.gmra.mxu0 %vm651_vm0, %v2307_v54  ;;  %v2894_v20 = vmul.f32 %v5125_v4, %v6608_v5  ;;  %v2970_v6 = vpop.trf.xlu1 }
 0x950   : > { %v2909_v24 = vpack.c.bf16 %v2894_v20, %v2893_v26 }
 0x951   : > { %v2308_v60 = vpop.trf.xlu0 }
 0x952   : > { %4520 = vmatprep.mubr.msk.bf16.mxu0 %vm651_vm0, %v2308_v60  ;;  %4581 = vmatpush3.bf16.xpose.msra.mxu1 %v2909_v24  ;;  %v2971_v56 = vpop.trf.xlu1 }
 0x953   : > { %4586 = vmatprep.subr.bf16.mxu1 %v626_v42 }
 0x955   : > { %v2309_v47 = vpop.trf.xlu0 }
 0x956   : > { %4521 = vmatmul.mubr.msk.bf16.gmra.mxu0 %vm651_vm0, %v2309_v47  ;;  %v2972_v5 = vpop.trf.xlu1 }
 0x959   : > { %v2310_v49 = vpop.trf.xlu0  ;;  %4583 = vmatmul.mubr.bf16.vlgmr.msra.gmra.mxu1 %v633_v46 }
 0x95a   : > { %4524 = vmatprep.mubr.msk.bf16.mxu0 %vm651_vm0, %v2310_v49  ;;  %4587 = vmatpush3.bf16.msra.mxu1 %v626_v42  ;;  %v2973_v16 = vpop.trf.xlu1 }
 0x95b   : > { %4588 = vmatprep.mubr.msk.bf16.mxu1 %vm651_vm0, %v2968_v48 }
 0x95d   : > { %v2311_v11 = vpop.trf.xlu0 }
 0x95e   : > { %4525 = vmatmul.mubr.msk.bf16.gmra.mxu0 %vm651_vm0, %v2311_v11  ;;  %v2974_v53 = vpop.trf.xlu1 }
 0x95f   : > { %4544 = vmatprep.mubr.msk.bf16.mxu0 %vm5450_vm1, %v7339_v35 }
 0x961   : > { %4589 = vmatmul.mubr.msk.bf16.vlgmr.msra.gmra.mxu1 %vm651_vm0, %v2969_v34 }
 0x962   : > { %4592 = vmatprep.mubr.msk.bf16.mxu1 %vm651_vm0, %v2970_v6  ;;  %v2975_v27 = vpop.trf.xlu1 }
 0x969   : > { %4593 = vmatmul.mubr.msk.bf16.gmra.mxu1 %vm651_vm0, %v2971_v56 }
 0x96a   : > { %4596 = vmatprep.mubr.msk.bf16.mxu1 %vm651_vm0, %v2972_v5 }
 0x971   : > { %4597 = vmatmul.mubr.msk.bf16.gmra.mxu1 %vm651_vm0, %v2973_v16 }
 0x972   : > { %4600 = vmatprep.mubr.msk.bf16.mxu1 %vm651_vm0, %v2974_v53 }
 0x979   : > { %4601 = vmatmul.mubr.msk.bf16.gmra.mxu1 %vm651_vm0, %v2975_v27 }
 0x992   : > { %v6676_v29 = vpop.f32.mrf.mxu0 }
 0x994   : > { %v4470_v62 = vpop.f32.mrf.mxu0 }
 0x996   : > { %v6678_v17 = vpop.f32.mrf.mxu0 }
 0x998   : > { %v4471_v36 = vpop.f32.mrf.mxu0 }
 0xa06   : > { %v6680_v23 = vpop.f32.mrf.mxu0 }
 0xa08   : > { %v6682_v2 = vpop.f32.mrf.mxu0 }
 0xa0a   : > { %v6684_v37 = vpop.f32.mrf.mxu0 }
 0xa0c   : > { %v6686_v25 = vpop.f32.mrf.mxu0 }
 0xa0e   : > { %v6688_v14 = vpop.f32.mrf.mxu0 }
 0xa10   : > { %v6690_v19 = vpop.f32.mrf.mxu0 }
 0xa12   : > { %v6692_v15 = vpop.f32.mrf.mxu0 }
 0xa14   : > { %v6694_v55 = vpop.f32.mrf.mxu0 }
 0xa16   : > { %v6696_v30 = vpop.f32.mrf.mxu0 }
 0xa18   : > { %v6698_v32 = vpop.f32.mrf.mxu0 }
 0xa19   : > { %v6700_v8 = vpop.f32.mrf.mxu1 }
 0xa1a   : > { %v6702_v63 = vpop.f32.mrf.mxu0 }
 0xa1b   : > { %v4584_v41 = vpop.f32.mrf.mxu1 }
 0xa1c   : > { %v6704_v43 = vpop.f32.mrf.mxu0 }
 0xa1d   : > { %v6706_v44 = vpop.f32.mrf.mxu1 }
 0xa1e   : > { %v4526_v40 = vpop.f32.mrf.mxu0 }
 0xa1f   : > { %2461 = vmax.xlane.f32.xlu0 %v4526_v40  ;;  %v4585_v13 = vpop.f32.mrf.mxu1 }
 0xa20   : > { %v2418_v52 = vpop.f32.mrf.mxu0 }
 0xa21   : > { %v6708_v39 = vpop.f32.mrf.mxu1 }
 0xa22   : > { %v4527_v22 = vpop.f32.mrf.mxu0 }
 0xa23   : > { %2457 = vmax.xlane.f32.xlu0 %v2418_v52  ;;  %2463 = vmax.xlane.f32.xlu1 %v4527_v22  ;;  %v6710_v45 = vpop.f32.mrf.mxu1 }
 0xa24   : > { %v2421_v0 = vpop.f32.mrf.mxu0 }
 0xa25   : > { %v6712_v59 = vpop.f32.mrf.mxu1 }
 0xa27   : > { %2453 = vmax.xlane.f32.xlu0 %v6696_v30  ;;  %2459 = vmax.xlane.f32.xlu1 %v2421_v0  ;;  %v6715_v51 = vpop.f32.mrf.mxu1 }
 0xa29   : > { %v6717_v10 = vpop.f32.mrf.mxu1 }
 0xa2b   : > { %2449 = vmax.xlane.f32.xlu0 %v6698_v32  ;;  %2455 = vmax.xlane.f32.xlu1 %v6702_v63  ;;  %v6721_v1 = vpop.f32.mrf.mxu1 }
 0xa2d   : > { %v6723_v12 = vpop.f32.mrf.mxu1 }
 0xa2f   : > { %2445 = vmax.xlane.f32.xlu0 %v6688_v14  ;;  %2451 = vmax.xlane.f32.xlu1 %v6704_v43  ;;  %v6727_v58 = vpop.f32.mrf.mxu1 }
 0xa31   : > { %v6729_v18 = vpop.f32.mrf.mxu1 }
 0xa33   : > { %2441 = vmax.xlane.f32.xlu0 %v6690_v19  ;;  %2447 = vmax.xlane.f32.xlu1 %v6692_v15  ;;  %v6733_v7 = vpop.f32.mrf.mxu1 }
 0xa35   : > { %v6735_v54 = vpop.f32.mrf.mxu1 }
 0xa37   : > { %2437 = vmax.xlane.f32.xlu0 %v6680_v23  ;;  %2443 = vmax.xlane.f32.xlu1 %v6694_v55  ;;  %v6739_v48 = vpop.f32.mrf.mxu1 }
 0xa39   : > { %v6741_v4 = vpop.f32.mrf.mxu1 }
 0xa3b   : > { %2433 = vmax.xlane.f32.xlu0 %v6682_v2  ;;  %2439 = vmax.xlane.f32.xlu1 %v6684_v37  ;;  %v6745_v26 = vpop.f32.mrf.mxu1 }
 0xa3d   : > { %v6749_v20 = vpop.f32.mrf.mxu1 }
 0xa3f   : > { %2435 = vmax.xlane.f32.xlu1 %v6686_v25  ;;  %3125 = vmax.xlane.f32.xlu0 %v6741_v4  ;;  %v6753_v60 = vpop.f32.mrf.mxu1 }
 0xa43   : > { %3121 = vmax.xlane.f32.xlu0 %v6745_v26  ;;  %3127 = vmax.xlane.f32.xlu1 %v6749_v20 }
 0xa47   : > { %3117 = vmax.xlane.f32.xlu0 %v6729_v18  ;;  %3123 = vmax.xlane.f32.xlu1 %v6753_v60 }
 0xa4b   : > { %3119 = vmax.xlane.f32.xlu1 %v6735_v54 }
 0xaa8   : > { %v2462_v24 = vpop.xlane.xlu0 %2461 }
 0xaa9   : > { %v2479_v42 = vsub.f32 %v4526_v40, %v2462_v24 }
 0xaab   : > { %v2509_v34 = vmul.f32 1.442695, %v2479_v42 }
 0xaac   : > { %v2458_v47 = vpop.xlane.xlu0 %2457  ;;  %v2464_v28 = vpop.xlane.xlu1 %2463 }
 0xaad   : > { %5126 = vpow2.f32 %v2509_v34  ;;  %v2477_v31 = vsub.f32 %v2418_v52, %v2458_v47  ;;  %v2480_v46 = vsub.f32 %v4527_v22, %v2464_v28 }
 0xaaf   : > { %v2511_v49 = vmul.f32 1.442695, %v2480_v46  ;;  %v2505_v56 = vmul.f32 1.442695, %v2477_v31 }
 0xab0   : > { %v2454_v6 = vpop.xlane.xlu0 %2453  ;;  %v2460_v11 = vpop.xlane.xlu1 %2459 }
 0xab1   : > { %5128 = vpow2.f32 %v2511_v49  ;;  %v2478_v5 = vsub.f32 %v2421_v0, %v2460_v11  ;;  %v2475_v27 = vsub.f32 %v6696_v30, %v2454_v6 }
 0xab2   : > { %5130 = vpow2.f32 %v2505_v56 }
 0xab3   : > { %v2507_v62 = vmul.f32 1.442695, %v2478_v5  ;;  %v2501_v36 = vmul.f32 1.442695, %v2475_v27 }
 0xab4   : > { %v2450_v16 = vpop.xlane.xlu0 %2449  ;;  %v2456_v53 = vpop.xlane.xlu1 %2455 }
 0xab5   : > { %5132 = vpow2.f32 %v2507_v62  ;;  %v2476_v13 = vsub.f32 %v6702_v63, %v2456_v53  ;;  %v2473_v22 = vsub.f32 %v6698_v32, %v2450_v16 }
 0xab6   : > { %5134 = vpow2.f32 %v2501_v36 }
 0xab7   : > { %v2503_v0 = vmul.f32 1.442695, %v2476_v13  ;;  %v2497_v34 = vmul.f32 1.442695, %v2473_v22 }
 0xab8   : > { %v2452_v41 = vpop.xlane.xlu1 %2451  ;;  %v2446_v52 = vpop.xlane.xlu0 %2445 }
 0xab9   : > { %5136 = vpow2.f32 %v2503_v0  ;;  %v2474_v63 = vsub.f32 %v6704_v43, %v2452_v41  ;;  %v2471_v32 = vsub.f32 %v6688_v14, %v2446_v52 }
 0xaba   : > { %v6759_v40 = vpop.eup %5126  ;;  %5138 = vpow2.f32 %v2497_v34 }
 0xabb   : > { %2541 = vadd.xlane.f32.xlu0 %v6759_v40  ;;  %v2499_v31 = vmul.f32 1.442695, %v2474_v63  ;;  %v2493_v6 = vmul.f32 1.442695, %v2471_v32 }
 0xabc   : > { %v2448_v42 = vpop.xlane.xlu1 %2447  ;;  %v2442_v30 = vpop.xlane.xlu0 %2441 }
 0xabd   : > { %5140 = vpow2.f32 %v2499_v31  ;;  %v2472_v43 = vsub.f32 %v6692_v15, %v2448_v42  ;;  %v2469_v14 = vsub.f32 %v6690_v19, %v2442_v30 }
 0xabe   : > { %v6764_v24 = vpop.eup %5128  ;;  %5142 = vpow2.f32 %v2493_v6 }
 0xabf   : > { %3113 = vmax.xlane.f32.xlu0 %v6733_v7  ;;  %2543 = vadd.xlane.f32.xlu1 %v6764_v24  ;;  %v6768_v47 = vpop.eup %5130  ;;  %v2495_v16 = vmul.f32 1.442695, %v2472_v43  ;;  %v2489_v27 = vmul.f32 1.442695, %v2469_v14 }
 0xac0   : > { %v2444_v28 = vpop.xlane.xlu1 %2443  ;;  %v2438_v46 = vpop.xlane.xlu0 %2437 }
 0xac1   : > { %v2467_v62 = vsub.f32 %v6680_v23, %v2438_v46  ;;  %5144 = vpow2.f32 %v2495_v16  ;;  %v2470_v41 = vsub.f32 %v6694_v55, %v2444_v28 }
 0xac2   : > { %v6774_v49 = vpop.eup %5132  ;;  %5146 = vpow2.f32 %v2489_v27 }
 0xac3   : > { %2537 = vadd.xlane.f32.xlu0 %v6768_v47  ;;  %3115 = vmax.xlane.f32.xlu1 %v6739_v48  ;;  %v6778_v11 = vpop.eup %5134  ;;  %v2485_v19 = vmul.f32 1.442695, %v2467_v62  ;;  %v2491_v22 = vmul.f32 1.442695, %v2470_v41 }
 0xac4   : > { %v2440_v56 = vpop.xlane.xlu1 %2439  ;;  %v2434_v5 = vpop.xlane.xlu0 %2433 }
 0xac5   : > { %v2465_v52 = vsub.f32 %v6682_v2, %v2434_v5  ;;  %v2468_v0 = vsub.f32 %v6684_v37, %v2440_v56  ;;  %5148 = vpow2.f32 %v2485_v19 }
 0xac6   : > { %v6784_v53 = vpop.eup %5136  ;;  %5150 = vpow2.f32 %v2491_v22 }
 0xac7   : > { %3109 = vmax.xlane.f32.xlu0 %v6717_v10  ;;  %2539 = vadd.xlane.f32.xlu1 %v6774_v49  ;;  %v6789_v36 = vpop.eup %5138  ;;  %v2481_v55 = vmul.f32 1.442695, %v2465_v52  ;;  %v2487_v32 = vmul.f32 1.442695, %v2468_v0 }
 0xac8   : > { %v2436_v15 = vpop.xlane.xlu1 %2435  ;;  %v3126_v13 = vpop.xlane.xlu0 %3125 }
 0xac9   : > { %v3143_v34 = vsub.f32 %v6741_v4, %v3126_v13  ;;  %v2466_v2 = vsub.f32 %v6686_v25, %v2436_v15  ;;  %5152 = vpow2.f32 %v2481_v55 }
 0xaca   : > { %v6796_v42 = vpop.eup %5140  ;;  %5154 = vpow2.f32 %v2487_v32 }
 0xacb   : > { %2533 = vadd.xlane.f32.xlu0 %v6778_v11  ;;  %3111 = vmax.xlane.f32.xlu1 %v6723_v12  ;;  %v6801_v63 = vpop.eup %5142  ;;  %v3173_v37 = vmul.f32 1.442695, %v3143_v34  ;;  %v2483_v46 = vmul.f32 1.442695, %v2466_v2 }
 0xacc   : > { %v3128_v23 = vpop.xlane.xlu1 %3127  ;;  %v3122_v30 = vpop.xlane.xlu0 %3121 }
 0xacd   : > { %v3141_v28 = vsub.f32 %v6745_v26, %v3122_v30  ;;  %v3144_v6 = vsub.f32 %v6749_v20, %v3128_v23  ;;  %5156 = vpow2.f32 %v3173_v37 }
 0xace   : > { %v6808_v43 = vpop.eup %5144  ;;  %5158 = vpow2.f32 %v2483_v46 }
 0xacf   : > { %3105 = vmax.xlane.f32.xlu0 %v6721_v1  ;;  %2535 = vadd.xlane.f32.xlu1 %v6784_v53  ;;  %v3169_v25 = vmul.f32 1.442695, %v3141_v28  ;;  %v6813_v5 = vpop.eup %5146  ;;  %v3175_v26 = vmul.f32 1.442695, %v3144_v6 }
 0xad0   : > { %v3124_v31 = vpop.xlane.xlu1 %3123  ;;  %v3118_v4 = vpop.xlane.xlu0 %3117 }
 0xad1   : > { %v3139_v56 = vsub.f32 %v6729_v18, %v3118_v4  ;;  %v3142_v14 = vsub.f32 %v6753_v60, %v3124_v31  ;;  %5160 = vpow2.f32 %v3169_v25 }
 0xad2   : > { %v6818_v27 = vpop.eup %5148  ;;  %5162 = vpow2.f32 %v3175_v26 }
 0xad3   : > { %2529 = vadd.xlane.f32.xlu0 %v6789_v36  ;;  %3107 = vmax.xlane.f32.xlu1 %v6727_v58  ;;  %v3165_v20 = vmul.f32 1.442695, %v3139_v56  ;;  %v3171_v62 = vmul.f32 1.442695, %v3142_v14  ;;  %v6821_v18 = vpop.eup %5150 }
 0xad4   : > { %v3120_v16 = vpop.xlane.xlu1 %3119 }
 0xad5   : > { %v3140_v15 = vsub.f32 %v6735_v54, %v3120_v16  ;;  %5164 = vpow2.f32 %v3165_v20 }
 0xad6   : > { %v6825_v60 = vpop.eup %5152  ;;  %5166 = vpow2.f32 %v3171_v62 }
 0xad7   : > { %3101 = vmax.xlane.f32.xlu0 %v6708_v39  ;;  %2531 = vadd.xlane.f32.xlu1 %v6796_v42  ;;  %v3167_v41 = vmul.f32 1.442695, %v3140_v15  ;;  %v6827_v13 = vpop.eup %5154 }
 0xad9   : > { %5168 = vpow2.f32 %v3167_v41 }
 0xada   : > { %v6831_v19 = vpop.eup %5156 }
 0xadb   : > { %2525 = vadd.xlane.f32.xlu0 %v6801_v63  ;;  %3103 = vmax.xlane.f32.xlu1 %v6712_v59  ;;  %v6833_v54 = vpop.eup %5158 }
 0xade   : > { %v6837_v52 = vpop.eup %5160 }
 0xadf   : > { %3097 = vmax.xlane.f32.xlu0 %v6710_v45  ;;  %2527 = vadd.xlane.f32.xlu1 %v6808_v43  ;;  %v6839_v22 = vpop.eup %5162 }
 0xae2   : > { %v6843_v0 = vpop.eup %5164 }
 0xae3   : > { %2521 = vadd.xlane.f32.xlu0 %v6813_v5  ;;  %3099 = vmax.xlane.f32.xlu1 %v6715_v51  ;;  %v6845_v23 = vpop.eup %5166 }
 0xae6   : > { %v6849_v30 = vpop.eup %5168 }
 0xae7   : > { %2517 = vadd.xlane.f32.xlu0 %v6818_v27  ;;  %2523 = vadd.xlane.f32.xlu1 %v6821_v18 }
 0xaeb   : > { %2513 = vadd.xlane.f32.xlu0 %v6825_v60  ;;  %2519 = vadd.xlane.f32.xlu1 %v6827_v13 }
 0xaef   : > { %3205 = vadd.xlane.f32.xlu0 %v6831_v19  ;;  %2515 = vadd.xlane.f32.xlu1 %v6833_v54 }
 0xaf3   : > { %3201 = vadd.xlane.f32.xlu0 %v6837_v52  ;;  %3207 = vadd.xlane.f32.xlu1 %v6839_v22 }
 0xaf7   : > { %3197 = vadd.xlane.f32.xlu0 %v6843_v0  ;;  %3203 = vadd.xlane.f32.xlu1 %v6845_v23 }
 0xafb   : > { %3199 = vadd.xlane.f32.xlu1 %v6849_v30 }
 0xb44   : > { %v2542_v55 = vpop.xlane.xlu0 %2541 }
 0xb45   : > { %5170 = vrcp.f32 %v2542_v55 }
 0xb48   : > { %v3114_v34 = vpop.xlane.xlu0 %3113  ;;  %v2544_v2 = vpop.xlane.xlu1 %2543 }
 0xb49   : > { %v3137_v32 = vsub.f32 %v6733_v7, %v3114_v34  ;;  %5172 = vrcp.f32 %v2544_v2 }
 0xb4b   : > { %v3161_v37 = vmul.f32 1.442695, %v3137_v32 }
 0xb4c   : > { %v2538_v28 = vpop.xlane.xlu0 %2537  ;;  %v3116_v31 = vpop.xlane.xlu1 %3115 }
 0xb4d   : > { %5174 = vpow2.f32 %v3161_v37  ;;  %v3138_v46 = vsub.f32 %v6739_v48, %v3116_v31 }
 0xb4e   : > { %5176 = vrcp.f32 %v2538_v28 }
 0xb4f   : > { %v3163_v6 = vmul.f32 1.442695, %v3138_v46 }
 0xb50   : > { %v3110_v4 = vpop.xlane.xlu0 %3109  ;;  %v2540_v56 = vpop.xlane.xlu1 %2539 }
 0xb51   : > { %v3135_v25 = vsub.f32 %v6717_v10, %v3110_v4  ;;  %5178 = vpow2.f32 %v3163_v6 }
 0xb52   : > { %5180 = vrcp.f32 %v2540_v56  ;;  %v5171_v16 = vpop.eup %5170 }
 0xb53   : > { %v3157_v26 = vmul.f32 1.442695, %v3135_v25  ;;  %v2575_v48 = vmul.f32 %v5171_v16, %v6759_v40 }
 0xb54   : > { %v2534_v14 = vpop.xlane.xlu0 %2533  ;;  %v3112_v7 = vpop.xlane.xlu1 %3111 }
 0xb55   : > { %5182 = vpow2.f32 %v3157_v26  ;;  %v3136_v20 = vsub.f32 %v6723_v12, %v3112_v7 }
 0xb56   : > { %v5173_v62 = vpop.eup %5172  ;;  %5184 = vrcp.f32 %v2534_v14 }
 0xb57   : > { %v3159_v15 = vmul.f32 1.442695, %v3136_v20  ;;  %v2576_v55 = vmul.f32 %v5173_v62, %v6764_v24 }
 0xb58   : > { %v3106_v41 = vpop.xlane.xlu0 %3105  ;;  %v2536_v34 = vpop.xlane.xlu1 %2535 }
 0xb59   : > { %v3133_v10 = vsub.f32 %v6721_v1, %v3106_v41  ;;  %5186 = vpow2.f32 %v3159_v15  ;;  %v2584_v2 = vpack.c.bf16 %v2576_v55, %v2575_v48 }
 0xb5a   : > { %v6859_v32 = vpop.eup %5174  ;;  %5188 = vrcp.f32 %v2536_v34 }
 0xb5b   : > { %v3153_v37 = vmul.f32 1.442695, %v3133_v10  ;;  %3193 = vadd.xlane.f32.xlu0 %v6859_v32  ;;  %4529 = vmatpush3.bf16.xpose.msra.mxu0 %v2584_v2  ;;  %v5177_v40 = vpop.eup %5176 }
 0xb5c   : > { %v2530_v12 = vpop.xlane.xlu0 %2529  ;;  %v3108_v28 = vpop.xlane.xlu1 %3107  ;;  %4530 = vmatprep.subr.bf16.mxu0 %v7339_v35  ;;  %v2573_v56 = vmul.f32 %v5177_v40, %v6768_v47 }
 0xb5d   : > { %5190 = vpow2.f32 %v3153_v37  ;;  %v3134_v24 = vsub.f32 %v6727_v58, %v3108_v28 }
 0xb5e   : > { %v6864_v31 = vpop.eup %5178  ;;  %5192 = vrcp.f32 %v2530_v12 }
 0xb5f   : > { %v5181_v1 = vpop.eup %5180  ;;  %v3155_v46 = vmul.f32 1.442695, %v3134_v24  ;;  %3195 = vadd.xlane.f32.xlu1 %v6864_v31 }
 0xb60   : > { %v3102_v6 = vpop.xlane.xlu0 %3101  ;;  %v2532_v25 = vpop.xlane.xlu1 %2531  ;;  %v2574_v26 = vmul.f32 %v5181_v1, %v6774_v49 }
 0xb61   : > { %v3131_v4 = vsub.f32 %v6708_v39, %v3102_v6  ;;  %5194 = vpow2.f32 %v3155_v46 }
 0xb62   : > { %v6870_v14 = vpop.eup %5182  ;;  %5196 = vrcp.f32 %v2532_v25  ;;  %v2583_v58 = vpack.c.bf16 %v2574_v26, %v2573_v56 }
 0xb63   : > { %v3149_v16 = vmul.f32 1.442695, %v3131_v4  ;;  %3189 = vadd.xlane.f32.xlu0 %v6870_v14  ;;  %v5185_v62 = vpop.eup %5184 }
 0xb64   : > { %v2526_v7 = vpop.xlane.xlu0 %2525  ;;  %4531 = vmatpush3.bf16.xpose.msra.mxu0 %v2583_v58  ;;  %v3104_v20 = vpop.xlane.xlu1 %3103  ;;  %v2571_v10 = vmul.f32 %v5185_v62, %v6778_v11 }
 0xb65   : > { %5198 = vpow2.f32 %v3149_v16  ;;  %v3132_v39 = vsub.f32 %v6712_v59, %v3104_v20  ;;  %4532 = vmatprep.subr.bf16.mxu0 %v7339_v35 }
 0xb66   : > { %v6875_v47 = vpop.eup %5186  ;;  %5200 = vrcp.f32 %v2526_v7 }
 0xb67   : > { %v5189_v49 = vpop.eup %5188  ;;  %v3151_v15 = vmul.f32 1.442695, %v3132_v39  ;;  %3191 = vadd.xlane.f32.xlu1 %v6875_v47 }
 0xb68   : > { %v3098_v41 = vpop.xlane.xlu0 %3097  ;;  %v2528_v55 = vpop.xlane.xlu1 %2527  ;;  %v2572_v34 = vmul.f32 %v5189_v49, %v6784_v53 }
 0xb69   : > { %v3129_v48 = vsub.f32 %v6710_v45, %v3098_v41  ;;  %5202 = vpow2.f32 %v3151_v15 }
 0xb6a   : > { %v6881_v2 = vpop.eup %5190  ;;  %5204 = vrcp.f32 %v2528_v55  ;;  %v2582_v37 = vpack.c.bf16 %v2572_v34, %v2571_v10 }
 0xb6b   : > { %v3145_v59 = vmul.f32 1.442695, %v3129_v48  ;;  %3185 = vadd.xlane.f32.xlu0 %v6881_v2  ;;  %v5193_v28 = vpop.eup %5192 }
 0xb6c   : > { %4533 = vmatpush3.bf16.xpose.msra.mxu0 %v2582_v37  ;;  %v3100_v12 = vpop.xlane.xlu1 %3099  ;;  %v2522_v40 = vpop.xlane.xlu0 %2521  ;;  %v2569_v46 = vmul.f32 %v5193_v28, %v6789_v36 }
 0xb6d   : > { %5206 = vpow2.f32 %v3145_v59  ;;  %v3130_v45 = vsub.f32 %v6715_v51, %v3100_v12  ;;  %4534 = vmatprep.subr.bf16.mxu0 %v7339_v35 }
 0xb6e   : > { %v6886_v11 = vpop.eup %5194  ;;  %5208 = vrcp.f32 %v2522_v40 }
 0xb6f   : > { %v5197_v53 = vpop.eup %5196  ;;  %v3147_v24 = vmul.f32 1.442695, %v3130_v45  ;;  %3187 = vadd.xlane.f32.xlu1 %v6886_v11 }
 0xb70   : > { %v2524_v1 = vpop.xlane.xlu1 %2523  ;;  %v2570_v6 = vmul.f32 %v5197_v53, %v6796_v42  ;;  %v2518_v26 = vpop.xlane.xlu0 %2517 }
 0xb71   : > { %5210 = vpow2.f32 %v3147_v24 }
 0xb72   : > { %v6891_v4 = vpop.eup %5198  ;;  %5212 = vrcp.f32 %v2524_v1  ;;  %v2581_v51 = vpack.c.bf16 %v2570_v6, %v2569_v46 }
 0xb73   : > { %3181 = vadd.xlane.f32.xlu0 %v6891_v4  ;;  %v5201_v56 = vpop.eup %5200 }
 0xb74   : > { %4535 = vmatpush3.bf16.xpose.msra.mxu0 %v2581_v51  ;;  %v2520_v25 = vpop.xlane.xlu1 %2519  ;;  %v2567_v36 = vmul.f32 %v5201_v56, %v6801_v63  ;;  %v2514_v49 = vpop.xlane.xlu0 %2513 }
 0xb75   : > { %4536 = vmatprep.subr.bf16.mxu0 %v7339_v35  ;;  %5214 = vrcp.f32 %v2520_v25 }
 0xb76   : > { %v6895_v16 = vpop.eup %5202  ;;  %5216 = vrcp.f32 %v2518_v26  ;;  %v7347_v26 = vld [vmem:[#allocation20_spill] sm:$0xff] }
 0xb77   : > { %v5205_v58 = vpop.eup %5204  ;;  %3183 = vadd.xlane.f32.xlu1 %v6895_v16 }
 0xb78   : > { %v2568_v42 = vmul.f32 %v5205_v58, %v6808_v43  ;;  %v2516_v62 = vpop.xlane.xlu1 %2515  ;;  %v3206_v59 = vpop.xlane.xlu0 %3205 }
 0xb79   : > { %5218 = vrcp.f32 %v2516_v62 }
 0xb7a   : > { %v6900_v7 = vpop.eup %5206  ;;  %v2580_v20 = vpack.c.bf16 %v2568_v42, %v2567_v36  ;;  %5220 = vrcp.f32 %v2514_v49 }
 0xb7b   : > { %3177 = vadd.xlane.f32.xlu0 %v6900_v7  ;;  %v5209_v39 = vpop.eup %5208 }
 0xb7c   : > { %4537 = vmatpush3.bf16.xpose.msra.mxu0 %v2580_v20  ;;  %v2565_v63 = vmul.f32 %v5209_v39, %v6813_v5  ;;  %v3208_v10 = vpop.xlane.xlu1 %3207  ;;  %v3202_v45 = vpop.xlane.xlu0 %3201 }
 0xb7d   : > { %4538 = vmatprep.subr.bf16.mxu0 %v7339_v35  ;;  %5222 = vrcp.f32 %v3208_v10 }
 0xb7e   : > { %v6904_v15 = vpop.eup %5210  ;;  %5224 = vrcp.f32 %v3206_v59 }
 0xb7f   : > { %3308 = vadd.xlane.f32.xlu0 %v6357_v21  ;;  %v5213_v41 = vpop.eup %5212  ;;  %3179 = vadd.xlane.f32.xlu1 %v6904_v15 }
 0xb80   : > { %v2566_v43 = vmul.f32 %v5213_v41, %v6821_v18  ;;  %v3204_v28 = vpop.xlane.xlu1 %3203  ;;  %v3198_v6 = vpop.xlane.xlu0 %3197 }
 0xb81   : > { %5226 = vrcp.f32 %v3204_v28 }
 0xb82   : > { %v2579_v48 = vpack.c.bf16 %v2566_v43, %v2565_v63  ;;  %v5215_v55 = vpop.eup %5214  ;;  %5228 = vrcp.f32 %v3202_v45 }
 0xb83   : > { %3312 = vadd.xlane.f32.xlu0 %v6380_v61  ;;  %3310 = vadd.xlane.f32.xlu1 %v6360_v38  ;;  %v5217_v34 = vpop.eup %5216  ;;  %v2564_v37 = vmul.f32 %v5215_v55, %v6827_v13 }
 0xb84   : > { %4539 = vmatpush3.bf16.xpose.msra.mxu0 %v2579_v48  ;;  %v2563_v5 = vmul.f32 %v5217_v34, %v6818_v27  ;;  %v3200_v1 = vpop.xlane.xlu1 %3199 }
 0xb85   : > { %4540 = vmatprep.subr.bf16.mxu0 %v7339_v35  ;;  %5230 = vrcp.f32 %v3200_v1 }
 0xb86   : > { %v2578_v18 = vpack.c.bf16 %v2564_v37, %v2563_v5  ;;  %v5219_v12 = vpop.eup %5218  ;;  %5232 = vrcp.f32 %v3198_v6 }
 0xb87   : > { %3316 = vadd.xlane.f32.xlu0 %v6045_v50  ;;  %3314 = vadd.xlane.f32.xlu1 %v6382_v9  ;;  %v5221_v40 = vpop.eup %5220  ;;  %v2562_v13 = vmul.f32 %v5219_v12, %v6833_v54 }
 0xb88   : > { %v2561_v27 = vmul.f32 %v5221_v40, %v6825_v60  ;;  %v7348_v60 = vld [vmem:[#allocation18_spill] sm:$0xff] }
 0xb89   : > { %v7349_v58 = vpack.c.bf16 %v7347_v26, %v7348_v60  ;;  %v7350_v26 = vld [vmem:[#allocation24_spill] sm:$0xff]  ;;  %v7351_v60 = vld [vmem:[#allocation22_spill] sm:$0xff] }
 0xb8a   : > { %v2577_v53 = vpack.c.bf16 %v2562_v13, %v2561_v27  ;;  %v5223_v24 = vpop.eup %5222 }
 0xb8b   : > { %3320 = vadd.xlane.f32.xlu0 %v6676_v29  ;;  %3318 = vadd.xlane.f32.xlu1 %v6047_v57  ;;  %v5225_v46 = vpop.eup %5224  ;;  %v3240_v51 = vmul.f32 %v5223_v24, %v6839_v22 }
 0xb8c   : > { %4541 = vmatpush3.bf16.xpose.msra.mxu0 %v2578_v18  ;;  %v3239_v54 = vmul.f32 %v5225_v46, %v6831_v19 }
 0xb8d   : > { %4542 = vmatprep.subr.bf16.mxu0 %v7339_v35 }
 0xb8e   : > { %v3248_v25 = vpack.c.bf16 %v3240_v51, %v3239_v54  ;;  %v5227_v56 = vpop.eup %5226 }
 0xb8f   : > { %3324 = vadd.xlane.f32.xlu0 %v6404_v33  ;;  %3322 = vadd.xlane.f32.xlu1 %v6678_v17  ;;  %v5229_v36 = vpop.eup %5228  ;;  %v3238_v42 = vmul.f32 %v5227_v56, %v6845_v23 }
 0xb90   : > { %v3237_v22 = vmul.f32 %v5229_v36, %v6837_v52 }
 0xb92   : > { %v3247_v20 = vpack.c.bf16 %v3238_v42, %v3237_v22  ;;  %v5231_v62 = vpop.eup %5230 }
 0xb93   : > { %3326 = vadd.xlane.f32.xlu1 %v6410_v3  ;;  %v5233_v19 = vpop.eup %5232  ;;  %v3236_v39 = vmul.f32 %v5231_v62, %v6849_v30 }
 0xb94   : > { %4543 = vmatpush3.bf16.xpose.msra.mxu0 %v2577_v53  ;;  %v3235_v49 = vmul.f32 %v5233_v19, %v6843_v0 }
 0xb95   : > { %4604 = vmatprep.subr.bf16.mxu0 %v7339_v35 }
 0xb96   : > { %v3246_v41 = vpack.c.bf16 %v3236_v39, %v3235_v49 }
 0xb9b   : > { %4545 = vmatmul.mubr.bf16.vlgmr.msra.gmra.mxu0 %v7349_v58  ;;  %v7352_v58 = vpack.c.bf16 %v7350_v26, %v7351_v60 }
 0xb9c   : > { %4605 = vmatpush3.bf16.xpose.msra.mxu0 %v3248_v25  ;;  %4620 = vmatprep.mubr.msk.bf16.mxu0 %vm5450_vm1, %v7339_v35 }
 0xb9d   : > { %4606 = vmatprep.subr.bf16.mxu0 %v7339_v35 }
 0xba4   : > { %4607 = vmatpush3.bf16.xpose.msra.mxu0 %v3247_v20 }
 0xba5   : > { %4608 = vmatprep.subr.bf16.mxu0 %v7339_v35 }
 0xbac   : > { %4609 = vmatpush3.bf16.xpose.msra.mxu0 %v3246_v41 }
 0xbad   : > { %4610 = vmatprep.subr.bf16.mxu0 %v7339_v35 }
 0xbe4   : > { %v3194_v63 = vpop.xlane.xlu0 %3193 }
 0xbe5   : > { %5234 = vrcp.f32 %v3194_v63 }
 0xbe8   : > { %v3196_v43 = vpop.xlane.xlu1 %3195 }
 0xbe9   : > { %5236 = vrcp.f32 %v3196_v43 }
 0xbec   : > { %v3190_v23 = vpop.xlane.xlu0 %3189 }
 0xbed   : > { %5238 = vrcp.f32 %v3190_v23 }
 0xbf0   : > { %v3192_v52 = vpop.xlane.xlu1 %3191 }
 0xbf1   : > { %5240 = vrcp.f32 %v3192_v52 }
 0xbf2   : > { %v5235_v48 = vpop.eup %5234 }
 0xbf3   : > { %v3233_v30 = vmul.f32 %v5235_v48, %v6859_v32 }
 0xbf4   : > { %v3186_v55 = vpop.xlane.xlu0 %3185 }
 0xbf5   : > { %5242 = vrcp.f32 %v3186_v55 }
 0xbf6   : > { %v5237_v10 = vpop.eup %5236 }
 0xbf7   : > { %v3234_v0 = vmul.f32 %v5237_v10, %v6864_v31 }
 0xbf8   : > { %v3188_v34 = vpop.xlane.xlu1 %3187 }
 0xbf9   : > { %5244 = vrcp.f32 %v3188_v34  ;;  %v3245_v59 = vpack.c.bf16 %v3234_v0, %v3233_v30 }
 0xbfa   : > { %v5239_v37 = vpop.eup %5238 }
 0xbfb   : > { %4611 = vmatpush3.bf16.xpose.msra.mxu0 %v3245_v59  ;;  %v3231_v12 = vmul.f32 %v5239_v37, %v6870_v14 }
 0xbfc   : > { %v3182_v5 = vpop.xlane.xlu0 %3181  ;;  %4612 = vmatprep.subr.bf16.mxu0 %v7339_v35 }
 0xbfd   : > { %5246 = vrcp.f32 %v3182_v5 }
 0xbfe   : > { %v5241_v18 = vpop.eup %5240 }
 0xbff   : > { %v3232_v28 = vmul.f32 %v5241_v18, %v6875_v47 }
 0xc00   : > { %v3184_v40 = vpop.xlane.xlu1 %3183 }
 0xc01   : > { %5248 = vrcp.f32 %v3184_v40  ;;  %v3244_v45 = vpack.c.bf16 %v3232_v28, %v3231_v12 }
 0xc02   : > { %v5243_v32 = vpop.eup %5242 }
 0xc03   : > { %4613 = vmatpush3.bf16.xpose.msra.mxu0 %v3244_v45  ;;  %v3229_v27 = vmul.f32 %v5243_v32, %v6881_v2 }
 0xc04   : > { %v3178_v31 = vpop.xlane.xlu0 %3177  ;;  %4614 = vmatprep.subr.bf16.mxu0 %v7339_v35 }
 0xc05   : > { %5250 = vrcp.f32 %v3178_v31 }
 0xc06   : > { %v5245_v13 = vpop.eup %5244 }
 0xc07   : > { %v3230_v53 = vmul.f32 %v5245_v13, %v6886_v11 }
 0xc08   : > { %v3180_v24 = vpop.xlane.xlu1 %3179 }
 0xc09   : > { %5252 = vrcp.f32 %v3180_v24  ;;  %v3243_v1 = vpack.c.bf16 %v3230_v53, %v3229_v27 }
 0xc0a   : > { %v5247_v14 = vpop.eup %5246 }
 0xc0b   : > { %4615 = vmatpush3.bf16.xpose.msra.mxu0 %v3243_v1  ;;  %v3227_v46 = vmul.f32 %v5247_v14, %v6891_v4 }
 0xc0c   : > { %4616 = vmatprep.subr.bf16.mxu0 %v7339_v35 }
 0xc0e   : > { %v5249_v47 = vpop.eup %5248 }
 0xc0f   : > { %v3228_v6 = vmul.f32 %v5249_v47, %v6895_v16 }
 0xc11   : > { %v3242_v51 = vpack.c.bf16 %v3228_v6, %v3227_v46 }
 0xc12   : > { %v5251_v54 = vpop.eup %5250 }
 0xc13   : > { %4617 = vmatpush3.bf16.xpose.msra.mxu0 %v3242_v51  ;;  %v3225_v11 = vmul.f32 %v5251_v54, %v6900_v7  ;;  %v3309_v7 = vpop.xlane.xlu0 %3308 }
 0xc14   : > { %4618 = vmatprep.subr.bf16.mxu0 %v7339_v35  ;;  %v3341_v62 = vmul.f32 0.0078125, %v3309_v7 }
 0xc16   : > { %v5253_v2 = vpop.eup %5252  ;;  %v6966_v49 = vsub.f32 %v6357_v21, %v3341_v62 }
 0xc17   : > { %v3226_v25 = vmul.f32 %v5253_v2, %v6904_v15  ;;  %v3311_v15 = vpop.xlane.xlu1 %3310  ;;  %v3313_v42 = vpop.xlane.xlu0 %3312 }
 0xc18   : > { %v3343_v19 = vmul.f32 0.0078125, %v3313_v42  ;;  %v3342_v41 = vmul.f32 0.0078125, %v3311_v15  ;;  %v3373_v30 = vmul.f32 %v6966_v49, %v6966_v49 }
 0xc19   : > { %v3241_v56 = vpack.c.bf16 %v3226_v25, %v3225_v11  ;;  %v3553_v25 = vld [vmem:[%s7271_s4 + $0x70] sm:$0xff] }
 0xc1a   : > { %v6972_v23 = vsub.f32 %v6380_v61, %v3343_v19  ;;  %v6975_v55 = vsub.f32 %v6360_v38, %v3342_v41 }
 0xc1b   : > { %4619 = vmatpush3.bf16.xpose.msra.mxu0 %v3241_v56  ;;  %v3315_v22 = vpop.xlane.xlu1 %3314  ;;  %v3317_v20 = vpop.xlane.xlu0 %3316  ;;  %v3554_v56 = vld [vmem:[%s7271_s4 + $0x78] sm:$0xff] }
 0xc1c   : > { %v3345_v52 = vmul.f32 0.0078125, %v3317_v20  ;;  %v3344_v10 = vmul.f32 0.0078125, %v3315_v22  ;;  %v3375_v18 = vmul.f32 %v6972_v23, %v6972_v23  ;;  %v3374_v45 = vmul.f32 %v6975_v55, %v6975_v55  ;;  %v3551_v22 = vld [vmem:[%s7271_s4 + $0x60] sm:$0xff]  ;;  %v3552_v20 = vld [vmem:[%s7271_s4 + $0x68] sm:$0xff] }
 0xc1d   : > { %v3562_v60 = vpack.c.bf16 %v3554_v56, %v3553_v25  ;;  %v3561_v19 = vpack.c.bf16 %v3552_v20, %v3551_v22  ;;  %v3540_v25 = vld [vmem:[%s7271_s4 + $0x8] sm:$0xff] }
 0xc1e   : > { %v6983_v59 = vsub.f32 %v6045_v50, %v3345_v52  ;;  %v6988_v12 = vsub.f32 %v6382_v9, %v3344_v10  ;;  %v3549_v10 = vld [vmem:[%s7271_s4 + $0x50] sm:$0xff] }
 0xc1f   : > { %v3319_v39 = vpop.xlane.xlu1 %3318  ;;  %v3321_v63 = vpop.xlane.xlu0 %3320  ;;  %4624 = vmatprep.subr.bf16.mxu1 %v3562_v60 }
 0xc20   : > { %v3347_v28 = vmul.f32 0.0078125, %v3321_v63  ;;  %v3346_v40 = vmul.f32 0.0078125, %v3319_v39  ;;  %v3377_v27 = vmul.f32 %v6983_v59, %v6983_v59  ;;  %v3376_v14 = vmul.f32 %v6988_v12, %v6988_v12  ;;  %4625 = vmatpush3.bf16.msra.mxu1 %v3562_v60 }
 0xc21   : > { %4626 = vmatprep.subr.bf16.mxu1 %v3561_v19 }
 0xc22   : > { %4621 = vmatmul.mubr.bf16.vlgmr.msra.gmra.mxu0 %v7352_v58  ;;  %v6995_v53 = vsub.f32 %v6676_v29, %v3347_v28  ;;  %v6998_v24 = vsub.f32 %v6047_v57, %v3346_v40  ;;  %v3547_v28 = vld [vmem:[%s7271_s4 + $0x40] sm:$0xff]  ;;  %v3548_v40 = vld [vmem:[%s7271_s4 + $0x48] sm:$0xff] }
 0xc23   : > { %v3323_v0 = vpop.xlane.xlu1 %3322  ;;  %v3325_v37 = vpop.xlane.xlu0 %3324 }
 0xc24   : > { %v3349_v32 = vmul.f32 0.0078125, %v3325_v37  ;;  %v3348_v1 = vmul.f32 0.0078125, %v3323_v0  ;;  %v3379_v2 = vmul.f32 %v6995_v53, %v6995_v53  ;;  %v3378_v11 = vmul.f32 %v6998_v24, %v6998_v24  ;;  %4627 = vmatpush3.bf16.msra.mxu1 %v3561_v19 }
 0xc26   : > { %v7003_v47 = vsub.f32 %v6404_v33, %v3349_v32  ;;  %v7006_v51 = vsub.f32 %v6678_v17, %v3348_v1  ;;  %v3543_v1 = vld [vmem:[%s7271_s4 + $0x20] sm:$0xff] }
 0xc27   : > { %v3327_v31 = vpop.xlane.xlu1 %3326 }
 0xc28   : > { %v3350_v46 = vmul.f32 0.0078125, %v3327_v31  ;;  %v3380_v42 = vmul.f32 %v7006_v51, %v7006_v51  ;;  %v3545_v31 = vld [vmem:[%s7271_s4 + $0x30] sm:$0xff] }
 0xc2a   : > { %v7019_v58 = vsub.f32 %v6410_v3, %v3350_v46 }
 0xc2c   : > { %v3382_v39 = vmul.f32 %v7019_v58, %v7019_v58 }
 0xc5b   : > { %v6957_v36 = vpop.f32.mrf.mxu0 }
 0xc5c   : > { %3328 = vadd.xlane.f32.xlu0 %v6957_v36 }
 0xc5d   : > { %v4546_v4 = vpop.f32.mrf.mxu0 }
 0xc5e   : > { %v3381_v4 = vmul.f32 %v7003_v47, %v7003_v47 }
 0xc5f   : > { %v6960_v16 = vpop.f32.mrf.mxu0 }
 0xc60   : > { %3332 = vadd.xlane.f32.xlu0 %v6700_v8  ;;  %3330 = vadd.xlane.f32.xlu1 %v6960_v16 }
 0xc61   : > { %v4547_v35 = vpop.f32.mrf.mxu0 }
 0xc64   : > { %3334 = vadd.xlane.f32.xlu1 %v6706_v44 }
 0xce2   : > { %v6968_v43 = vpop.f32.mrf.mxu0 }
 0xce3   : > { %3336 = vadd.xlane.f32.xlu0 %v6968_v43 }
 0xce4   : > { %v4622_v48 = vpop.f32.mrf.mxu0 }
 0xce5   : > { %v3329_v13 = vpop.xlane.xlu0 %3328 }
 0xce6   : > { %v6979_v34 = vpop.f32.mrf.mxu0  ;;  %v3351_v54 = vmul.f32 0.0078125, %v3329_v13  ;;  %v3546_v13 = vld [vmem:[%s7271_s4 + $0x38] sm:$0xff] }
 0xce7   : > { %3389 = vadd.xlane.f32.xlu0 %v3373_v30  ;;  %3338 = vadd.xlane.f32.xlu1 %v6979_v34  ;;  %v3550_v30 = vld [vmem:[%s7271_s4 + $0x58] sm:$0xff] }
 0xce8   : > { %v4623_v5 = vpop.f32.mrf.mxu0  ;;  %v7024_v35 = vsub.f32 %v6957_v36, %v3351_v54  ;;  %v3560_v0 = vpack.c.bf16 %v3550_v30, %v3549_v10  ;;  %v3542_v54 = vld [vmem:[%s7271_s4 + $0x18] sm:$0xff] }
 0xce9   : > { %v3331_v6 = vpop.xlane.xlu1 %3330  ;;  %v3333_v26 = vpop.xlane.xlu0 %3332 }
 0xcea   : > { %v3353_v7 = vmul.f32 0.0078125, %v3333_v26  ;;  %v3352_v15 = vmul.f32 0.0078125, %v3331_v6  ;;  %v3383_v48 = vmul.f32 %v7024_v35, %v7024_v35  ;;  %4628 = vmatprep.subr.bf16.mxu1 %v3560_v0  ;;  %v3541_v6 = vld [vmem:[%s7271_s4 + $0x10] sm:$0xff] }
 0xceb   : > { %3393 = vadd.xlane.f32.xlu0 %v3375_v18  ;;  %3391 = vadd.xlane.f32.xlu1 %v3374_v45  ;;  %v3559_v45 = vpack.c.bf16 %v3548_v40, %v3547_v28 }
 0xcec   : > { %v7037_v41 = vsub.f32 %v6700_v8, %v3353_v7  ;;  %v7040_v63 = vsub.f32 %v6960_v16, %v3352_v15  ;;  %4629 = vmatpush3.bf16.msra.mxu1 %v3560_v0 }
 0xced   : > { %v3335_v62 = vpop.xlane.xlu1 %3334  ;;  %4630 = vmatprep.subr.bf16.mxu1 %v3559_v45 }
 0xcee   : > { %v3354_v52 = vmul.f32 0.0078125, %v3335_v62  ;;  %v3385_v5 = vmul.f32 %v7037_v41, %v7037_v41  ;;  %v3384_v18 = vmul.f32 %v7040_v63, %v7040_v63 }
 0xcef   : > { %3397 = vadd.xlane.f32.xlu0 %v3377_v27  ;;  %3395 = vadd.xlane.f32.xlu1 %v3376_v14  ;;  %v3558_v27 = vpack.c.bf16 %v3546_v13, %v3545_v31  ;;  %v3544_v14 = vld [vmem:[%s7271_s4 + $0x28] sm:$0xff] }
 0xcf0   : > { %v7051_v37 = vsub.f32 %v6706_v44, %v3354_v52  ;;  %4631 = vmatpush3.bf16.msra.mxu1 %v3559_v45  ;;  %v3557_v46 = vpack.c.bf16 %v3544_v14, %v3543_v1 }
 0xcf1   : > { %4632 = vmatprep.subr.bf16.mxu1 %v3558_v27 }
 0xcf2   : > { %v3386_v32 = vmul.f32 %v7051_v37, %v7051_v37 }
 0xcf3   : > { %3401 = vadd.xlane.f32.xlu0 %v3379_v2  ;;  %3399 = vadd.xlane.f32.xlu1 %v3378_v11  ;;  %v3556_v2 = vpack.c.bf16 %v3542_v54, %v3541_v6  ;;  %v3539_v11 = vld [vmem:[%s7271_s4] sm:$0xff] }
 0xcf4   : > { %4633 = vmatpush3.bf16.msra.mxu1 %v3558_v27  ;;  %v3555_v56 = vpack.c.bf16 %v3540_v25, %v3539_v11 }
 0xcf5   : > { %4634 = vmatprep.subr.bf16.mxu1 %v3557_v46 }
 0xcf7   : > { %3405 = vadd.xlane.f32.xlu0 %v3381_v4  ;;  %3403 = vadd.xlane.f32.xlu1 %v3380_v42 }
 0xcf8   : > { %4635 = vmatpush3.bf16.msra.mxu1 %v3557_v46 }
 0xcf9   : > { %4636 = vmatprep.subr.bf16.mxu1 %v3556_v2 }
 0xcfb   : > { %3409 = vadd.xlane.f32.xlu0 %v3383_v48  ;;  %3407 = vadd.xlane.f32.xlu1 %v3382_v39 }
 0xcfc   : > { %4637 = vmatpush3.bf16.msra.mxu1 %v3556_v2 }
 0xcfd   : > { %4638 = vmatprep.subr.bf16.mxu1 %v3555_v56 }
 0xcff   : > { %3413 = vadd.xlane.f32.xlu0 %v3385_v5  ;;  %3411 = vadd.xlane.f32.xlu1 %v3384_v18 }
 0xd00   : > { %4639 = vmatpush3.bf16.msra.mxu1 %v3555_v56 }
 0xd03   : > { %3415 = vadd.xlane.f32.xlu1 %v3386_v32 }
 0xd6c   : > { %v3337_v26 = vpop.xlane.xlu0 %3336 }
 0xd6d   : > { %v3355_v60 = vmul.f32 0.0078125, %v3337_v26 }
 0xd6f   : > { %v7090_v4 = vsub.f32 %v6968_v43, %v3355_v60 }
 0xd70   : > { %v3390_v7 = vpop.xlane.xlu0 %3389  ;;  %v3339_v15 = vpop.xlane.xlu1 %3338 }
 0xd71   : > { %v3421_v42 = vmul.f32 0.0078125, %v3390_v7  ;;  %v3356_v22 = vmul.f32 0.0078125, %v3339_v15  ;;  %v3387_v20 = vmul.f32 %v7090_v4, %v7090_v4  ;;  %v7103_v15 = vld [vmem:[%s7269_s2] ss:$0 sm:$0xff] }
 0xd73   : > { %v3437_v62 = vadd.f32 1e-05, %v3421_v42  ;;  %v7095_v19 = vsub.f32 %v6979_v34, %v3356_v22  ;;  %3417 = vadd.xlane.f32.xlu0 %v3387_v20 }
 0xd74   : > { %v3394_v39 = vpop.xlane.xlu0 %3393  ;;  %v3392_v52 = vpop.xlane.xlu1 %3391 }
 0xd75   : > { %5254 = vrsqrt.f32 %v3437_v62  ;;  %v3423_v48 = vmul.f32 0.0078125, %v3394_v39  ;;  %v3422_v10 = vmul.f32 0.0078125, %v3392_v52  ;;  %v3388_v30 = vmul.f32 %v7095_v19, %v7095_v19 }
 0xd77   : > { %v3439_v0 = vadd.f32 1e-05, %v3423_v48  ;;  %v3438_v5 = vadd.f32 1e-05, %v3422_v10  ;;  %3419 = vadd.xlane.f32.xlu1 %v3388_v30 }
 0xd78   : > { %v3398_v18 = vpop.xlane.xlu0 %3397  ;;  %v3396_v28 = vpop.xlane.xlu1 %3395 }
 0xd79   : > { %5256 = vrsqrt.f32 %v3439_v0  ;;  %v3425_v40 = vmul.f32 0.0078125, %v3398_v18  ;;  %v3424_v45 = vmul.f32 0.0078125, %v3396_v28  ;;  %v7111_v28 = vld [vmem:[%s7270_s3] ss:$0 sm:$0xff] }
 0xd7a   : > { %5258 = vrsqrt.f32 %v3438_v5 }
 0xd7b   : > { %v3441_v32 = vadd.f32 1e-05, %v3425_v40  ;;  %v3440_v31 = vadd.f32 1e-05, %v3424_v45 }
 0xd7c   : > { %v3402_v13 = vpop.xlane.xlu0 %3401  ;;  %v3400_v27 = vpop.xlane.xlu1 %3399 }
 0xd7d   : > { %5260 = vrsqrt.f32 %v3441_v32  ;;  %v3427_v1 = vmul.f32 0.0078125, %v3402_v13  ;;  %v3426_v14 = vmul.f32 0.0078125, %v3400_v27 }
 0xd7e   : > { %5262 = vrsqrt.f32 %v3440_v31 }
 0xd7f   : > { %v3443_v46 = vadd.f32 1e-05, %v3427_v1  ;;  %v3442_v6 = vadd.f32 1e-05, %v3426_v14 }
 0xd80   : > { %v3406_v54 = vpop.xlane.xlu0 %3405  ;;  %v3404_v2 = vpop.xlane.xlu1 %3403 }
 0xd81   : > { %5264 = vrsqrt.f32 %v3443_v46  ;;  %v3429_v11 = vmul.f32 0.0078125, %v3406_v54  ;;  %v3428_v25 = vmul.f32 0.0078125, %v3404_v2 }
 0xd82   : > { %v5255_v56 = vpop.eup %5254  ;;  %5266 = vrsqrt.f32 %v3442_v6 }
 0xd83   : > { %v3445_v26 = vadd.f32 1e-05, %v3429_v11  ;;  %v3444_v60 = vadd.f32 1e-05, %v3428_v25  ;;  %v3469_v7 = vmul.f32 %v5255_v56, %v6966_v49 }
 0xd84   : > { %v3410_v42 = vpop.xlane.xlu0 %3409  ;;  %v3408_v22 = vpop.xlane.xlu1 %3407 }
 0xd85   : > { %5268 = vrsqrt.f32 %v3445_v26  ;;  %v3431_v20 = vmul.f32 0.0078125, %v3410_v42  ;;  %v3430_v62 = vmul.f32 0.0078125, %v3408_v22  ;;  %v3492_v30 = vmul.f32 %v7103_v15, %v3469_v7 }
 0xd86   : > { %v5257_v39 = vpop.eup %5256  ;;  %5270 = vrsqrt.f32 %v3444_v60 }
 0xd87   : > { %v5259_v52 = vpop.eup %5258  ;;  %v3447_v48 = vadd.f32 1e-05, %v3431_v20  ;;  %v3446_v10 = vadd.f32 1e-05, %v3430_v62  ;;  %v3471_v0 = vmul.f32 %v5257_v39, %v6972_v23  ;;  %v3515_v23 = vadd.f32 %v7111_v28, %v3492_v30 }
 0xd88   : > { %v3414_v49 = vpop.xlane.xlu0 %3413  ;;  %v3412_v5 = vpop.xlane.xlu1 %3411  ;;  %v3470_v18 = vmul.f32 %v5259_v52, %v6975_v55 }
 0xd89   : > { %5272 = vrsqrt.f32 %v3447_v48  ;;  %v3433_v40 = vmul.f32 0.0078125, %v3414_v49  ;;  %v3432_v45 = vmul.f32 0.0078125, %v3412_v5  ;;  %v3494_v14 = vmul.f32 %v7103_v15, %v3471_v0 }
 0xd8a   : > { %v5261_v32 = vpop.eup %5260  ;;  %5274 = vrsqrt.f32 %v3446_v10  ;;  %v3493_v31 = vmul.f32 %v7103_v15, %v3470_v18 }
 0xd8b   : > { %v5263_v13 = vpop.eup %5262  ;;  %v3449_v27 = vadd.f32 1e-05, %v3433_v40  ;;  %v3448_v1 = vadd.f32 1e-05, %v3432_v45  ;;  %v3473_v54 = vmul.f32 %v5261_v32, %v6983_v59  ;;  %v3517_v42 = vadd.f32 %v7111_v28, %v3494_v14 }
 0xd8c   : > { %v3472_v55 = vmul.f32 %v5263_v13, %v6988_v12  ;;  %v3416_v46 = vpop.xlane.xlu1 %3415  ;;  %v3516_v6 = vadd.f32 %v7111_v28, %v3493_v31 }
 0xd8d   : > { %5276 = vrsqrt.f32 %v3449_v27  ;;  %v3434_v2 = vmul.f32 0.0078125, %v3416_v46  ;;  %v3496_v59 = vmul.f32 %v7103_v15, %v3473_v54 }
 0xd8e   : > { %v5265_v11 = vpop.eup %5264  ;;  %v3495_v25 = vmul.f32 %v7103_v15, %v3472_v55  ;;  %5278 = vrsqrt.f32 %v3448_v1  ;;  %v3531_v56 = vpack.c.bf16 %v3516_v6, %v3515_v23 }
 0xd8f   : > { %v5267_v26 = vpop.eup %5266  ;;  %v3450_v60 = vadd.f32 1e-05, %v3434_v2  ;;  %v3475_v7 = vmul.f32 %v5265_v11, %v6995_v53  ;;  %v3519_v53 = vadd.f32 %v7111_v28, %v3496_v59  ;;  %v3749_v59 = vld [vmem:[%s7272_s5 + $0x8] sm:$0xff] }
 0xd90   : > { %4640 = vmatprep.mubr.bf16.mxu1 %v3531_v56  ;;  %v3518_v12 = vadd.f32 %v7111_v28, %v3495_v25  ;;  %v3474_v22 = vmul.f32 %v5267_v26, %v6998_v24 }
 0xd91   : > { %5280 = vrsqrt.f32 %v3450_v60  ;;  %v3498_v48 = vmul.f32 %v7103_v15, %v3475_v7 }
 0xd92   : > { %v5269_v20 = vpop.eup %5268  ;;  %v3532_v62 = vpack.c.bf16 %v3518_v12, %v3517_v42  ;;  %v3497_v39 = vmul.f32 %v7103_v15, %v3474_v22  ;;  %v3751_v42 = vld [vmem:[%s7272_s5 + $0x18] sm:$0xff]  ;;  %v3748_v22 = vld [vmem:[%s7272_s5] sm:$0xff] }
 0xd93   : > { %v5271_v52 = vpop.eup %5270  ;;  %v3477_v0 = vmul.f32 %v5269_v20, %v7003_v47  ;;  %v3521_v40 = vadd.f32 %v7111_v28, %v3498_v48  ;;  %v3752_v20 = vpack.c.bf16 %v3749_v59, %v3748_v22 }
 0xd94   : > { %4641 = vmatmul.mubr.bf16.vlgmr.msra.gmra.mxu1 %v3532_v62  ;;  %v3520_v10 = vadd.f32 %v7111_v28, %v3497_v39  ;;  %v3476_v30 = vmul.f32 %v5271_v52, %v7006_v51 }
 0xd95   : > { %v3500_v31 = vmul.f32 %v7103_v15, %v3477_v0 }
 0xd96   : > { %v5273_v24 = vpop.eup %5272  ;;  %v3533_v49 = vpack.c.bf16 %v3520_v10, %v3519_v53  ;;  %v3499_v5 = vmul.f32 %v7103_v15, %v3476_v30 }
 0xd97   : > { %v5275_v18 = vpop.eup %5274  ;;  %v3479_v13 = vmul.f32 %v5273_v24, %v7024_v35  ;;  %v3523_v14 = vadd.f32 %v7111_v28, %v3500_v31 }
 0xd98   : > { %4644 = vmatprep.mubr.bf16.mxu1 %v3533_v49  ;;  %v3522_v45 = vadd.f32 %v7111_v28, %v3499_v5  ;;  %v3478_v32 = vmul.f32 %v5275_v18, %v7019_v58 }
 0xd99   : > { %v3502_v58 = vmul.f32 %v7103_v15, %v3479_v13 }
 0xd9a   : > { %v5277_v27 = vpop.eup %5276  ;;  %v3534_v51 = vpack.c.bf16 %v3522_v45, %v3521_v40  ;;  %v3501_v47 = vmul.f32 %v7103_v15, %v3478_v32 }
 0xd9b   : > { %v5279_v1 = vpop.eup %5278  ;;  %v3481_v23 = vmul.f32 %v5277_v27, %v7037_v41  ;;  %v3525_v41 = vadd.f32 %v7111_v28, %v3502_v58 }
 0xd9c   : > { %4645 = vmatmul.mubr.bf16.gmra.mxu1 %v3534_v51  ;;  %v3524_v55 = vadd.f32 %v7111_v28, %v3501_v47  ;;  %v3480_v46 = vmul.f32 %v5279_v1, %v7040_v63 }
 0xd9d   : > { %v3504_v11 = vmul.f32 %v7103_v15, %v3481_v23 }
 0xd9e   : > { %v5281_v6 = vpop.eup %5280  ;;  %v3535_v54 = vpack.c.bf16 %v3524_v55, %v3523_v14  ;;  %v3503_v35 = vmul.f32 %v7103_v15, %v3480_v46 }
 0xd9f   : > { %v3482_v2 = vmul.f32 %v5281_v6, %v7051_v37  ;;  %v3527_v63 = vadd.f32 %v7111_v28, %v3504_v11  ;;  %v3750_v37 = vld [vmem:[%s7272_s5 + $0x10] sm:$0xff] }
 0xda0   : > { %4648 = vmatprep.mubr.bf16.mxu1 %v3535_v54  ;;  %v3526_v25 = vadd.f32 %v7111_v28, %v3503_v35  ;;  %v3753_v12 = vpack.c.bf16 %v3751_v42, %v3750_v37 }
 0xda1   : > { %v3505_v56 = vmul.f32 %v7103_v15, %v3482_v2 }
 0xda2   : > { %v3536_v26 = vpack.c.bf16 %v3526_v25, %v3525_v41  ;;  %4656 = vmatprep.subr.bf16.mxu0 %v3753_v12 }
 0xda3   : > { %v3528_v60 = vadd.f32 %v7111_v28, %v3505_v56  ;;  %4657 = vmatpush3.bf16.msra.mxu0 %v3753_v12 }
 0xda4   : > { %4649 = vmatmul.mubr.bf16.gmra.mxu1 %v3536_v26  ;;  %4658 = vmatprep.subr.bf16.mxu0 %v3752_v20 }
 0xda5   : > { %v3537_v7 = vpack.c.bf16 %v3528_v60, %v3527_v63 }
 0xda7   : > { %4652 = vmatprep.mubr.bf16.mxu1 %v3537_v7  ;;  %4659 = vmatpush3.bf16.msra.mxu0 %v3752_v20 }
 0xdfc   : > { %v3418_v62 = vpop.xlane.xlu0 %3417 }
 0xdfd   : > { %v3435_v39 = vmul.f32 0.0078125, %v3418_v62 }
 0xdff   : > { %v3451_v52 = vadd.f32 1e-05, %v3435_v39 }
 0xe00   : > { %v3420_v48 = vpop.xlane.xlu1 %3419 }
 0xe01   : > { %5282 = vrsqrt.f32 %v3451_v52  ;;  %v3436_v53 = vmul.f32 0.0078125, %v3420_v48 }
 0xe03   : > { %v3452_v10 = vadd.f32 1e-05, %v3436_v53 }
 0xe05   : > { %5284 = vrsqrt.f32 %v3452_v10 }
 0xe0e   : > { %v5283_v30 = vpop.eup %5282 }
 0xe0f   : > { %v3483_v0 = vmul.f32 %v5283_v30, %v7090_v4 }
 0xe11   : > { %v3506_v5 = vmul.f32 %v7103_v15, %v3483_v0 }
 0xe12   : > { %v5285_v24 = vpop.eup %5284 }
 0xe13   : > { %v3484_v49 = vmul.f32 %v5285_v24, %v7095_v19  ;;  %v3529_v40 = vadd.f32 %v7111_v28, %v3506_v5 }
 0xe15   : > { %v3507_v18 = vmul.f32 %v7103_v15, %v3484_v49 }
 0xe17   : > { %v3530_v45 = vadd.f32 %v7111_v28, %v3507_v18 }
 0xe19   : > { %v3538_v32 = vpack.c.bf16 %v3530_v45, %v3529_v40 }
 0xe1b   : > { %4653 = vmatmul.mubr.bf16.gmra.mxu1 %v3538_v32 }
 0xe54   : > { %v4642_v31 = vpop.f32.mrf.mxu1 }
 0xe55   : > { %v3678_v13 = vmul.f32 0.70710677, %v4642_v31  ;;  %v3662_v39 = vmul.f32 0.5, %v4642_v31 }
 0xe56   : > { %v3597_v27 = vpop.f32.mrf.mxu1 }
 0xe57   : > { %v3676_v51 = vmul.f32 0.70710677, %v3597_v27  ;;  %v3660_v59 = vmul.f32 0.5, %v3597_v27 }
 0xe58   : > { %v4643_v47 = vpop.f32.mrf.mxu1 }
 0xe59   : > { %5286 = verf.f32 %v3676_v51  ;;  %v3679_v4 = vmul.f32 0.70710677, %v4643_v47  ;;  %v3663_v12 = vmul.f32 0.5, %v4643_v47 }
 0xe5a   : > { %5288 = verf.f32 %v3678_v13  ;;  %v3600_v1 = vpop.f32.mrf.mxu1 }
 0xe5b   : > { %5290 = verf.f32 %v3679_v4  ;;  %v3677_v19 = vmul.f32 0.70710677, %v3600_v1  ;;  %v3661_v20 = vmul.f32 0.5, %v3600_v1 }
 0xe5c   : > { %v4646_v23 = vpop.f32.mrf.mxu1 }
 0xe5d   : > { %5292 = verf.f32 %v3677_v19  ;;  %v3682_v15 = vmul.f32 0.70710677, %v4646_v23  ;;  %v3666_v4 = vmul.f32 0.5, %v4646_v23 }
 0xe5e   : > { %v3613_v14 = vpop.f32.mrf.mxu1 }
 0xe5f   : > { %v3680_v55 = vmul.f32 0.70710677, %v3613_v14  ;;  %v3664_v31 = vmul.f32 0.5, %v3613_v14 }
 0xe60   : > { %v4647_v46 = vpop.f32.mrf.mxu1 }
 0xe61   : > { %5294 = verf.f32 %v3680_v55  ;;  %v3683_v28 = vmul.f32 0.70710677, %v4647_v46  ;;  %v3667_v27 = vmul.f32 0.5, %v4647_v46 }
 0xe62   : > { %5296 = verf.f32 %v3682_v15  ;;  %v3616_v58 = vpop.f32.mrf.mxu1 }
 0xe63   : > { %5298 = verf.f32 %v3683_v28  ;;  %v3681_v6 = vmul.f32 0.70710677, %v3616_v58  ;;  %v3665_v51 = vmul.f32 0.5, %v3616_v58 }
 0xe64   : > { %v7169_v54 = vpop.f32.mrf.mxu1 }
 0xe65   : > { %5300 = verf.f32 %v3681_v6  ;;  %v3686_v35 = vmul.f32 0.70710677, %v7169_v54 }
 0xe66   : > { %v5287_v2 = vpop.eup %5286  ;;  %v3629_v11 = vpop.f32.mrf.mxu1 }
 0xe67   : > { %v5289_v41 = vpop.eup %5288  ;;  %v3684_v56 = vmul.f32 0.70710677, %v3629_v11  ;;  %v3708_v63 = vadd.f32 1.0, %v5287_v2  ;;  %5302 = verf.f32 %v3686_v35 }
 0xe68   : > { %v5291_v25 = vpop.eup %5290  ;;  %v4651_v26 = vpop.f32.mrf.mxu1  ;;  %v3710_v42 = vadd.f32 1.0, %v5289_v41 }
 0xe69   : > { %v3711_v60 = vadd.f32 1.0, %v5291_v25  ;;  %v3687_v7 = vmul.f32 0.70710677, %v4651_v26  ;;  %5304 = verf.f32 %v3684_v56  ;;  %v3724_v53 = vmul.f32 %v3708_v63, %v3660_v59 }
 0xe6a   : > { %v5293_v37 = vpop.eup %5292  ;;  %v3632_v22 = vpop.f32.mrf.mxu1  ;;  %v3726_v0 = vmul.f32 %v3710_v42, %v3662_v39  ;;  %v3671_v58 = vmul.f32 0.5, %v4651_v26  ;;  %v3668_v63 = vmul.f32 0.5, %v3629_v11 }
 0xe6b   : > { %v3709_v62 = vadd.f32 1.0, %v5293_v37  ;;  %5306 = verf.f32 %v3687_v7  ;;  %v3727_v52 = vmul.f32 %v3711_v60, %v3663_v12  ;;  %v3685_v48 = vmul.f32 0.70710677, %v3632_v22 }
 0xe6c   : > { %v3669_v23 = vmul.f32 0.5, %v3632_v22  ;;  %v3670_v7 = vmul.f32 0.5, %v7169_v54 }
 0xe6d   : > { %v3725_v10 = vmul.f32 %v3709_v62, %v3661_v20  ;;  %5308 = verf.f32 %v3685_v48  ;;  %v3741_v18 = vpack.c.bf16 %v3727_v52, %v3726_v0 }
 0xe6e   : > { %v5295_v30 = vpop.eup %5294 }
 0xe6f   : > { %v5297_v24 = vpop.eup %5296  ;;  %v3740_v49 = vpack.c.bf16 %v3725_v10, %v3724_v53  ;;  %v3712_v40 = vadd.f32 1.0, %v5295_v30 }
 0xe70   : > { %v5299_v5 = vpop.eup %5298  ;;  %v3714_v13 = vadd.f32 1.0, %v5297_v24 }
 0xe71   : > { %v3715_v45 = vadd.f32 1.0, %v5299_v5  ;;  %4660 = vmatprep.mubr.msk.bf16.mxu0 %vm3754_vm2, %v3740_v49  ;;  %v3728_v19 = vmul.f32 %v3712_v40, %v3664_v31 }
 0xe72   : > { %v5301_v32 = vpop.eup %5300  ;;  %4661 = vmatmul.mubr.msk.bf16.vlgmr.msra.gmra.mxu0 %vm3754_vm2, %v3741_v18  ;;  %v3730_v28 = vmul.f32 %v3714_v13, %v3666_v4 }
 0xe73   : > { %v3713_v47 = vadd.f32 1.0, %v5301_v32  ;;  %v3731_v1 = vmul.f32 %v3715_v45, %v3667_v27 }
 0xe74   : > { %v5303_v55 = vpop.eup %5302 }
 0xe75   : > { %v3729_v15 = vmul.f32 %v3713_v47, %v3665_v51  ;;  %v3743_v41 = vpack.c.bf16 %v3731_v1, %v3730_v28  ;;  %v3718_v14 = vadd.f32 1.0, %v5303_v55 }
 0xe76   : > { %v5305_v6 = vpop.eup %5304 }
 0xe77   : > { %v3742_v35 = vpack.c.bf16 %v3729_v15, %v3728_v19  ;;  %v3716_v56 = vadd.f32 1.0, %v5305_v6  ;;  %v3734_v59 = vmul.f32 %v3718_v14, %v3670_v7 }
 0xe78   : > { %v5307_v2 = vpop.eup %5306 }
 0xe79   : > { %v3719_v25 = vadd.f32 1.0, %v5307_v2  ;;  %4664 = vmatprep.mubr.msk.bf16.mxu0 %vm3754_vm2, %v3742_v35  ;;  %v3732_v42 = vmul.f32 %v3716_v56, %v3668_v63 }
 0xe7a   : > { %4665 = vmatmul.mubr.msk.bf16.gmra.mxu0 %vm3754_vm2, %v3743_v41  ;;  %v5309_v46 = vpop.eup %5308 }
 0xe7b   : > { %v3717_v60 = vadd.f32 1.0, %v5309_v46  ;;  %v3735_v37 = vmul.f32 %v3719_v25, %v3671_v58 }
 0xe7d   : > { %v3733_v12 = vmul.f32 %v3717_v60, %v3669_v23  ;;  %v3745_v62 = vpack.c.bf16 %v3735_v37, %v3734_v59 }
 0xe7f   : > { %v3744_v20 = vpack.c.bf16 %v3733_v12, %v3732_v42 }
 0xe81   : > { %4668 = vmatprep.mubr.msk.bf16.mxu0 %vm3754_vm2, %v3744_v20 }
 0xe82   : > { %4669 = vmatmul.mubr.msk.bf16.gmra.mxu0 %vm3754_vm2, %v3745_v62 }
 0xedb   : > { %v4654_v39 = vpop.f32.mrf.mxu1 }
 0xedc   : > { %v3690_v52 = vmul.f32 0.70710677, %v4654_v39  ;;  %v3674_v27 = vmul.f32 0.5, %v4654_v39 }
 0xedd   : > { %v3645_v48 = vpop.f32.mrf.mxu1 }
 0xede   : > { %v3688_v53 = vmul.f32 0.70710677, %v3645_v48  ;;  %v3672_v45 = vmul.f32 0.5, %v3645_v48 }
 0xedf   : > { %v4655_v26 = vpop.f32.mrf.mxu1 }
 0xee0   : > { %5310 = verf.f32 %v3688_v53  ;;  %v3691_v11 = vmul.f32 0.70710677, %v4655_v26  ;;  %v3675_v40 = vmul.f32 0.5, %v4655_v26 }
 0xee1   : > { %5312 = verf.f32 %v3690_v52  ;;  %v3648_v22 = vpop.f32.mrf.mxu1 }
 0xee2   : > { %5314 = verf.f32 %v3691_v11  ;;  %v3689_v54 = vmul.f32 0.70710677, %v3648_v22  ;;  %v3673_v32 = vmul.f32 0.5, %v3648_v22 }
 0xee4   : > { %5316 = verf.f32 %v3689_v54 }
 0xeed   : > { %v5311_v10 = vpop.eup %5310 }
 0xeee   : > { %v5313_v30 = vpop.eup %5312  ;;  %v3720_v24 = vadd.f32 1.0, %v5311_v10 }
 0xeef   : > { %v5315_v0 = vpop.eup %5314  ;;  %v3722_v18 = vadd.f32 1.0, %v5313_v30 }
 0xef0   : > { %v3723_v49 = vadd.f32 1.0, %v5315_v0  ;;  %v3736_v51 = vmul.f32 %v3720_v24, %v3672_v45 }
 0xef1   : > { %v5317_v5 = vpop.eup %5316  ;;  %v3738_v4 = vmul.f32 %v3722_v18, %v3674_v27 }
 0xef2   : > { %v3721_v13 = vadd.f32 1.0, %v5317_v5  ;;  %v3739_v31 = vmul.f32 %v3723_v49, %v3675_v40 }
 0xef4   : > { %v3737_v47 = vmul.f32 %v3721_v13, %v3673_v32  ;;  %v3747_v19 = vpack.c.bf16 %v3739_v31, %v3738_v4 }
 0xef6   : > { %v3746_v1 = vpack.c.bf16 %v3737_v47, %v3736_v51 }
 0xef8   : > { %4672 = vmatprep.mubr.msk.bf16.mxu0 %vm3754_vm2, %v3746_v1 }
 0xef9   : > { %4673 = vmatmul.mubr.msk.bf16.gmra.mxu0 %vm3754_vm2, %v3747_v19 }
 0xf32   : > { %v4662_v15 = vpop.f32.mrf.mxu0 }
 0xf33   : > { %v3878_v55 = vadd.f32 %v4662_v15, %v6380_v61 }
 0xf34   : > { %v3813_v28 = vpop.f32.mrf.mxu0 }
 0xf35   : > { %3894 = vst [vmem:[%s7184_s13 + $0x10] sm:$0xff] %v3878_v55  ;;  %v3876_v6 = vadd.f32 %v3813_v28, %v6357_v21 }
 0xf36   : > { %v4663_v35 = vpop.f32.mrf.mxu0 }
 0xf37   : > { %3892 = vst [vmem:[%s7184_s13] sm:$0xff] %v3876_v6  ;;  %v3879_v2 = vadd.f32 %v4663_v35, %v6382_v9 }
 0xf38   : > { %v3816_v61 = vpop.f32.mrf.mxu0 }
 0xf39   : > { %3895 = vst [vmem:[%s7184_s13 + $0x18] sm:$0xff] %v3879_v2  ;;  %v3877_v41 = vadd.f32 %v3816_v61, %v6360_v38 }
 0xf3a   : > { %v4666_v25 = vpop.f32.mrf.mxu0 }
 0xf3b   : > { %3893 = vst [vmem:[%s7184_s13 + $0x8] sm:$0xff] %v3877_v41  ;;  %v3882_v56 = vadd.f32 %v4666_v25, %v6676_v29 }
 0xf3c   : > { %v3829_v46 = vpop.f32.mrf.mxu0 }
 0xf3d   : > { %3898 = vst [vmem:[%s7184_s13 + $0x30] sm:$0xff] %v3882_v56  ;;  %v3880_v21 = vadd.f32 %v3829_v46, %v6045_v50 }
 0xf3e   : > { %v4667_v14 = vpop.f32.mrf.mxu0 }
 0xf3f   : > { %3896 = vst [vmem:[%s7184_s13 + $0x20] sm:$0xff] %v3880_v21  ;;  %v3883_v9 = vadd.f32 %v4667_v14, %v6678_v17 }
 0xf40   : > { %v3832_v58 = vpop.f32.mrf.mxu0 }
 0xf41   : > { %3899 = vst [vmem:[%s7184_s13 + $0x38] sm:$0xff] %v3883_v9  ;;  %v3881_v38 = vadd.f32 %v3832_v58, %v6047_v57 }
 0xf42   : > { %v4670_v63 = vpop.f32.mrf.mxu0 }
 0xf43   : > { %3897 = vst [vmem:[%s7184_s13 + $0x28] sm:$0xff] %v3881_v38  ;;  %v3886_v29 = vadd.f32 %v4670_v63, %v6957_v36 }
 0xf44   : > { %v3845_v23 = vpop.f32.mrf.mxu0 }
 0xf45   : > { %3902 = vst [vmem:[%s7184_s13 + $0x50] sm:$0xff] %v3886_v29  ;;  %v3884_v50 = vadd.f32 %v3845_v23, %v6404_v33 }
 0xf46   : > { %v4671_v60 = vpop.f32.mrf.mxu0 }
 0xf47   : > { %3900 = vst [vmem:[%s7184_s13 + $0x40] sm:$0xff] %v3884_v50  ;;  %v3887_v17 = vadd.f32 %v4671_v60, %v6960_v16 }
 0xf48   : > { %v3848_v7 = vpop.f32.mrf.mxu0 }
 0xf49   : > { %3903 = vst [vmem:[%s7184_s13 + $0x58] sm:$0xff] %v3887_v17  ;;  %v3885_v57 = vadd.f32 %v3848_v7, %v6410_v3 }
 0xf4b   : > { %3901 = vst [vmem:[%s7184_s13 + $0x48] sm:$0xff] %v3885_v57 }
 0xfb9   : > { %v4674_v37 = vpop.f32.mrf.mxu0 }
 0xfba   : > { %v3890_v36 = vadd.f32 %v4674_v37, %v6968_v43 }
 0xfbb   : > { %v3861_v42 = vpop.f32.mrf.mxu0 }
 0xfbc   : > { %3906 = vst [vmem:[%s7184_s13 + $0x70] sm:$0xff] %v3890_v36  ;;  %v3888_v33 = vadd.f32 %v3861_v42, %v6700_v8 }
 0xfbd   : > { %v4675_v12 = vpop.f32.mrf.mxu0 }
 0xfbe   : > { %3904 = vst [vmem:[%s7184_s13 + $0x60] sm:$0xff] %v3888_v33  ;;  %v3891_v16 = vadd.f32 %v4675_v12, %v6979_v34 }
 0xfbf   : > { %v3864_v59 = vpop.f32.mrf.mxu0 }
 0xfc0   : > { %3907 = vst [vmem:[%s7184_s13 + $0x78] sm:$0xff] %v3891_v16  ;;  %v3889_v3 = vadd.f32 %v3864_v59, %v6706_v44 }
 0xfc2   : > { %3905 = vst [vmem:[%s7184_s13 + $0x68] sm:$0xff] %v3889_v3 }
 0xfc3   : > { %5385 = shalt.err (!%p5382_p0)
}
 0xfc4   : > { %s5386_s29 = scalar_lea.hbm %s7219_s14, 2048  ;;  %s5390_s11 = scalar_lea.hbm %s7273_s6, 4096 }
 0xfc5   : > { %p5387_p5 = scmp.ne.s32.totalorder %s7219_s14, %s5386_s29  ;;  %p5391_p4 = scmp.lt.s32.totalorder %s7219_s14, %s7273_s6 }
 0xfc6   : > { %p5392_p6 = scmp.lt.s32.totalorder %s5390_s11, %s5386_s29 }
 0xfc7   : > { %p5388_p9 = pnand %p5387_p5, %p7353_p11 }
 0xfc8   : > { %p5393_p8 = por %p5392_p6, %p5391_p4 }
 0xfc9   : > { %p5389_p1 = pneg %p5388_p9 }
 0xfcb   : > { %p5394_p3 = pnand %p5393_p8, %p5389_p1 }
 0xfcd   : > { %5397 = shalt.err (!%p5394_p3)
}
 0xfce   : > { %s5452_s7 = smov 128   ;;  %s5453_s15 = smov 8  }
 0xfcf   : > { %4682 = dma.vmem_to_hbm [thread:$0]  (%p7353_p11), %s7221_s8, 2048, %s7219_s14, %s3909_s25, %s5452_s7, %s5452_s7, %s5453_s15  }
 0xfd0 PF: > { %s3938_s16 = sand.u32 1, %s5428_s21   ;;  %p7354_p7 = scmp.ne.s32.totalorder %s7295_s28, 0 }
 0xfd1   : > { %p7355_p12 = scmp.ge.s32.totalorder %s5440_s24, 2  ;;  %s3939_s30 = scalar_lea.sflag [#allocation5], %s3938_s16 }
 0xfd3   : > { %p4693_p10 = pnand %p7355_p12, %p7354_p7 }
 0xfd5   : > { %p4694_p2 = pneg %p4693_p10 }
 0xfd7   : > { %5423 = dma.done.wait (%p4694_p2), %s3939_s30, 2048  }
 0xfd8   : > { %5425 = vsyncadd (%p4694_p2), %s3939_s30, 4294965248  ;;  %p20_p13 = scmp.ge.s32.totalorder %s5543_s9, 4   ;;  %s7356_s21 = smov %s5432_s22 }
 0xfd9   : > { %s7357_s22 = smov %s5436_s23  ;;  %s7358_s23 = smov %s5560_s17 }
 0xfda   : > { %s7359_s24 = smov %s5543_s9  ;;  %22 = sbr.rel (!%p20_p13) target bundleno = 6 (0x6), region = 93 }
 0xfdf   :  { %3944 = vsyncpa [#allocation4], 1 }
 0xfe0   :  { %3946 = vsyncpa [#allocation4 + $0x1], 1 }
 0xfe1   :  { %3947 = vsyncpa [#allocation7], 1 }
 0xfe2   :  { %3948 = vsyncpa [#allocation5], 1 }
 0xfe3   :  { %3950 = vsyncpa [#allocation5 + $0x1], 1 }

</bundles_post_ra>
